<compile_context>
chip_gen: v6e
topology: v6e:2x2x1
jax: 0.10.0
libtpu: 0.0.40
codegen_flags: <defaults>
</compile_context>

<pallas_src>
import functools
import math

import jax
import jax.numpy as jnp
from jax.experimental import pallas as pl
from jax.experimental.pallas import tpu as pltpu

_PARALLEL = pltpu.CompilerParams(dimension_semantics=("parallel",))


def _gelu(x):
    # tanh-approximate GELU (EUP-friendly); documented deviation from erf-GELU.
    return 0.5 * x * (1.0 + jnp.tanh(0.7978845608028654 * (x + 0.044715 * x * x * x)))


def _layernorm_f32(y, g, b):
    mu = jnp.mean(y, axis=-1, keepdims=True)
    var = jnp.mean(jnp.square(y - mu), axis=-1, keepdims=True)
    return (y - mu) * jax.lax.rsqrt(var + 1e-12) * g + b


def _pick_row_block(rows):
    """Row tile for row-parallel kernels: multiple of 8, divides `rows`,
    capped at 512, and yields >=2 grid steps when possible (v7x dual-TC)."""
    for cand in (512, 256, 128, 64, 32, 16, 8):
        if cand < rows and rows % cand == 0:
            return cand
    return rows


# ----------------------------- Pallas kernels -------------------------------

def _emb_ln_kernel(we_ref, pe_ref, te_ref, g_ref, b_ref, o_ref):
    """Fused word+pos+type embedding sum (f32) + layernorm -> bf16 rows."""
    y = (we_ref[...].astype(jnp.float32)
         + pe_ref[...].astype(jnp.float32)
         + te_ref[...].astype(jnp.float32))
    o_ref[...] = _layernorm_f32(y, g_ref[...], b_ref[...]).astype(o_ref.dtype)


def _layer_kernel(x_ref, m_ref, wqkv_ref, bqkv_ref, wo_ref, bo_ref,
                  g1_ref, beta1_ref, w1_ref, b1_ref, w2_ref, b2_ref,
                  g2_ref, beta2_ref, o_ref, *, nh, dh, scale):
    """One full transformer layer: fused QKV + attention + out-proj + LN +
    FFN (dense/gelu/dense) + LN, all in VMEM."""
    h_dim = nh * dh
    x_bf = x_ref[0]                                          # (S, H) bf16
    mask = m_ref[0].astype(jnp.float32)                      # (1, S) additive

    # --- attention sub-block -------------------------------------------------
    qkv = jnp.dot(x_bf, wqkv_ref[...],
                  preferred_element_type=jnp.float32) + bqkv_ref[...]   # (S,3H)
    # one bf16 cast per operand; fold 1/sqrt(dh) into q (not into (S,S) scores)
    q = (qkv[:, :h_dim] * scale).astype(jnp.bfloat16)
    k = qkv[:, h_dim:2 * h_dim].astype(jnp.bfloat16)
    v = qkv[:, 2 * h_dim:3 * h_dim].astype(jnp.bfloat16)

    ctx_heads = []
    for hh in range(nh):                                     # static unroll
        sl = slice(hh * dh, (hh + 1) * dh)
        s = jax.lax.dot_general(q[:, sl], k[:, sl], (((1,), (1,)), ((), ())),
                                preferred_element_type=jnp.float32) + mask
        s = s - jnp.max(s, axis=-1, keepdims=True)
        p = jnp.exp(s)
        p = p * pl.reciprocal(jnp.sum(p, axis=-1, keepdims=True), approx=True)
        ctx_heads.append(jnp.dot(p.astype(jnp.bfloat16), v[:, sl],
                                 preferred_element_type=jnp.float32
                                 ).astype(jnp.bfloat16))
    ctx = jnp.concatenate(ctx_heads, axis=-1)                # (S, H) bf16
    # single out-projection with full K=H contraction (one MXU pass)
    attn = jnp.dot(ctx, wo_ref[...],
                   preferred_element_type=jnp.float32) + bo_ref[...]
    y1 = attn + x_bf.astype(jnp.float32)                     # f32 cast only here
    x1 = _layernorm_f32(y1, g1_ref[...], beta1_ref[...])     # (S, H) f32

    # --- FFN sub-block -------------------------------------------------------
    hmid = jnp.dot(x1.astype(jnp.bfloat16), w1_ref[...],
                   preferred_element_type=jnp.float32) + b1_ref[...]
    hmid = _gelu(hmid)
    out = jnp.dot(hmid.astype(jnp.bfloat16), w2_ref[...],
                  preferred_element_type=jnp.float32) + b2_ref[...]
    y2 = out + x1
    o_ref[0] = _layernorm_f32(y2, g2_ref[...], beta2_ref[...]).astype(o_ref.dtype)


def _mlm_head_kernel(x_ref, w_ref, b_ref, g_ref, beta_ref, embt_ref, db_ref,
                     cmask_ref, labels_ref, logits_ref, aux_ref, *, yes_token):
    """Fused: MLM dense + gelu + LN + tied decoder + yes-token cls logits +
    per-row MLM cross-entropy pieces (no HBM round-trip of f32 logits)."""
    x_bf = x_ref[...]                                        # (R, H) bf16
    h = jnp.dot(x_bf, w_ref[...],
                preferred_element_type=jnp.float32) + b_ref[...]
    h = _gelu(h)
    h = _layernorm_f32(h, g_ref[...], beta_ref[...])
    # tied decoder against pre-transposed (H, V) word embedding
    logits = jnp.dot(h.astype(jnp.bfloat16), embt_ref[...],
                     preferred_element_type=jnp.float32) + db_ref[...]  # (R,V) f32
    logits_ref[...] = logits.astype(logits_ref.dtype)        # bf16 writeback

    # per-row cross-entropy pieces, matching torch ignore_index=-100 semantics
    labels = labels_ref[...]                                 # (R, 1) int32
    mx = jnp.max(logits, axis=-1, keepdims=True)
    lse = jnp.log(jnp.sum(jnp.exp(logits - mx), axis=-1, keepdims=True)) + mx
    cols = jax.lax.broadcasted_iota(jnp.int32, logits.shape, 1)
    picked = jnp.sum(jnp.where(cols == labels, logits, 0.0),
                     axis=-1, keepdims=True)
    valid = (labels != -100).astype(jnp.float32)             # (R, 1)
    nll = (lse - picked) * valid                             # (R, 1)

    # cls logits: static lane slice of in-register f32 logits + mask add
    cls = (logits[:, yes_token:yes_token + 1]
           + cmask_ref[...].astype(jnp.float32))             # (R, 1)

    # lane-dense aux slab: col0 = cls, col1 = nll, col2 = valid (unmasked vst)
    lane = jax.lax.broadcasted_iota(jnp.int32, aux_ref.shape, 1)
    aux = jnp.where(lane == 0, cls,
          jnp.where(lane == 1, nll,
          jnp.where(lane == 2, valid, 0.0)))
    aux_ref[...] = aux.astype(aux_ref.dtype)


# --------------------------- kernel wrappers ---------------------------------

def embed_layernorm(we, pe, te, gamma, beta):
    rows, h = we.shape
    rb = _pick_row_block(rows)
    return pl.pallas_call(
        _emb_ln_kernel,
        out_shape=jax.ShapeDtypeStruct((rows, h), jnp.bfloat16),
        grid=(rows // rb,),
        in_specs=[pl.BlockSpec((rb, h), lambda i: (i, 0)),
                  pl.BlockSpec((rb, h), lambda i: (i, 0)),
                  pl.BlockSpec((rb, h), lambda i: (i, 0)),
                  pl.BlockSpec((1, h), lambda i: (0, 0)),
                  pl.BlockSpec((1, h), lambda i: (0, 0))],
        out_specs=pl.BlockSpec((rb, h), lambda i: (i, 0)),
        compiler_params=_PARALLEL,
    )(we, pe, te, gamma.reshape(1, -1), beta.reshape(1, -1))


def transformer_layer(x, add_mask, layer, nh, dh):
    b, s, h = x.shape
    inter = layer["w1"].shape[1]
    kernel = functools.partial(_layer_kernel, nh=nh, dh=dh,
                               scale=1.0 / math.sqrt(dh))
    # TODO(synk): at production H, mark the weight BlockSpecs below as
    #             single-buffered (pipeline_mode=pl.Buffered(1)); they are
    #             grid-invariant so double-buffering wastes VMEM on v7x.
    return pl.pallas_call(
        kernel,
        out_shape=jax.ShapeDtypeStruct((b, s, h), jnp.bfloat16),
        grid=(b,),
        in_specs=[
            pl.BlockSpec((1, s, h), lambda i: (i, 0, 0)),       # x
            pl.BlockSpec((1, 1, s), lambda i: (i, 0, 0)),       # additive mask
            pl.BlockSpec((h, 3 * h), lambda i: (0, 0)),         # wqkv
            pl.BlockSpec((1, 3 * h), lambda i: (0, 0)),         # bqkv
            pl.BlockSpec((h, h), lambda i: (0, 0)),             # wo
            pl.BlockSpec((1, h), lambda i: (0, 0)),             # bo
            pl.BlockSpec((1, h), lambda i: (0, 0)),             # ln1_g
            pl.BlockSpec((1, h), lambda i: (0, 0)),             # ln1_b
            pl.BlockSpec((h, inter), lambda i: (0, 0)),         # w1
            pl.BlockSpec((1, inter), lambda i: (0, 0)),         # b1
            pl.BlockSpec((inter, h), lambda i: (0, 0)),         # w2
            pl.BlockSpec((1, h), lambda i: (0, 0)),             # b2
            pl.BlockSpec((1, h), lambda i: (0, 0)),             # ln2_g
            pl.BlockSpec((1, h), lambda i: (0, 0)),             # ln2_b
        ],
        out_specs=pl.BlockSpec((1, s, h), lambda i: (i, 0, 0)),
        compiler_params=_PARALLEL,
    )(x, add_mask, layer["wqkv"], layer["bqkv"].reshape(1, -1), layer["wo"],
      layer["bo"].reshape(1, -1), layer["ln1_g"].reshape(1, -1),
      layer["ln1_b"].reshape(1, -1), layer["w1"], layer["b1"].reshape(1, -1),
      layer["w2"], layer["b2"].reshape(1, -1), layer["ln2_g"].reshape(1, -1),
      layer["ln2_b"].reshape(1, -1))


def mlm_head(x2d, mlm_w, mlm_b, ln_g, ln_b, word_emb_t, dec_b, clsmask2d,
             labels2d, yes_token):
    rows, h = x2d.shape
    v = word_emb_t.shape[1]
    rb = _pick_row_block(rows)
    kernel = functools.partial(_mlm_head_kernel, yes_token=yes_token)
    # TODO(synk): at production V, tile the decoder + CE over (row, vocab)
    #             blocks with running (max, lse, picked) accumulators.
    logits, aux = pl.pallas_call(
        kernel,
        out_shape=(jax.ShapeDtypeStruct((rows, v), jnp.bfloat16),
                   jax.ShapeDtypeStruct((rows, 128), jnp.float32)),
        grid=(rows // rb,),
        in_specs=[
            pl.BlockSpec((rb, h), lambda i: (i, 0)),            # x rows
            pl.BlockSpec((h, h), lambda i: (0, 0)),             # mlm_w
            pl.BlockSpec((1, h), lambda i: (0, 0)),             # mlm_b
            pl.BlockSpec((1, h), lambda i: (0, 0)),             # ln_g
            pl.BlockSpec((1, h), lambda i: (0, 0)),             # ln_b
            pl.BlockSpec((h, v), lambda i: (0, 0)),             # word_emb^T
            pl.BlockSpec((1, v), lambda i: (0, 0)),             # dec_b
            pl.BlockSpec((rb, 1), lambda i: (i, 0)),            # cls mask rows
            pl.BlockSpec((rb, 1), lambda i: (i, 0)),            # mlm labels rows
        ],
        out_specs=(pl.BlockSpec((rb, v), lambda i: (i, 0)),
                   pl.BlockSpec((rb, 128), lambda i: (i, 0))),
        compiler_params=_PARALLEL,
    )(x2d, mlm_w, mlm_b.reshape(1, -1), ln_g.reshape(1, -1),
      ln_b.reshape(1, -1), word_emb_t, dec_b.reshape(1, -1), clsmask2d,
      labels2d)
    return logits, aux


def _cls_cross_entropy(logits, labels):
    # (B, S) x (B,) cross entropy - tiny, plain JAX (no launch).
    logits = logits.astype(jnp.float32)
    mx = jnp.max(logits, axis=-1)
    lse = jnp.log(jnp.sum(jnp.exp(logits - mx[:, None]), axis=-1)) + mx
    picked = jnp.take_along_axis(
        logits, labels[:, None].astype(jnp.int32), axis=-1)[:, 0]
    return jnp.mean(lse - picked)


# ------------------------- synthetic MLM encoder -----------------------------

CFG = dict(vocab=512, hidden=128, heads=2, layers=2, intermediate=256,
           max_pos=64, type_vocab=2)


def init_params(key, cfg):
    def normal(k, shape):
        return (0.02 * jax.random.normal(k, shape, dtype=jnp.float32)
                ).astype(jnp.bfloat16)

    keys = iter(jax.random.split(key, 64))
    h, i, v = cfg["hidden"], cfg["intermediate"], cfg["vocab"]
    params = {
        "word_emb": normal(next(keys), (v, h)),
        "pos_emb": normal(next(keys), (cfg["max_pos"], h)),
        "type_emb": normal(next(keys), (cfg["type_vocab"], h)),
        "emb_ln_g": jnp.ones((h,), jnp.float32),
        "emb_ln_b": jnp.zeros((h,), jnp.float32),
        "mlm_w": normal(next(keys), (h, h)),
        "mlm_b": jnp.zeros((h,), jnp.float32),
        "mlm_ln_g": jnp.ones((h,), jnp.float32),
        "mlm_ln_b": jnp.zeros((h,), jnp.float32),
        "dec_b": jnp.zeros((v,), jnp.float32),
        "layers": [],
    }
    for _ in range(cfg["layers"]):
        params["layers"].append({
            "wqkv": normal(next(keys), (h, 3 * h)),
            "bqkv": jnp.zeros((3 * h,), jnp.float32),
            "wo": normal(next(keys), (h, h)), "bo": jnp.zeros((h,), jnp.float32),
            "ln1_g": jnp.ones((h,), jnp.float32), "ln1_b": jnp.zeros((h,), jnp.float32),
            "w1": normal(next(keys), (h, i)), "b1": jnp.zeros((i,), jnp.float32),
            "w2": normal(next(keys), (i, h)), "b2": jnp.zeros((h,), jnp.float32),
            "ln2_g": jnp.ones((h,), jnp.float32), "ln2_b": jnp.zeros((h,), jnp.float32),
        })
    return params


def encoder_forward(params, input_ids, attention_mask, token_type_ids,
                    position_ids, clslabels_mask, mlmlabels, yes_token, cfg):
    b, s = input_ids.shape
    nh = cfg["heads"]
    dh = cfg["hidden"] // nh
    rows = b * s

    # Embedding gathers stay in plain JAX (table gathers); sum + LN is one
    # fused kernel over bf16 row tiles.
    # TODO(synk): fuse the gathers via PrefetchScalarGridSpec row-gather maps.
    we = params["word_emb"][input_ids.reshape(rows)]
    pe = params["pos_emb"][position_ids.reshape(rows)]
    te = params["type_emb"][token_type_ids.reshape(rows)]
    x2d = embed_layernorm(we, pe, te, params["emb_ln_g"], params["emb_ln_b"])
    x = x2d.reshape(b, s, cfg["hidden"])                     # (B, S, H) bf16

    add_mask = ((1.0 - attention_mask.astype(jnp.float32)) * -1e9
                ).reshape(b, 1, s)                           # (B, 1, S)

    for layer in params["layers"]:
        x = transformer_layer(x, add_mask, layer, nh, dh)    # one call / layer

    # Pre-transpose the tied decoder weight once per forward so the in-kernel
    # matmul needs no XLU transpose per grid step.
    word_emb_t = jnp.transpose(params["word_emb"])           # (H, V) bf16

    clsmask2d = clslabels_mask.astype(jnp.float32).reshape(rows, 1)
    labels2d = mlmlabels.reshape(rows, 1).astype(jnp.int32)
    logits2d, aux = mlm_head(
        x.reshape(rows, cfg["hidden"]), params["mlm_w"], params["mlm_b"],
        params["mlm_ln_g"], params["mlm_ln_b"], word_emb_t, params["dec_b"],
        clsmask2d, labels2d, yes_token)

    mlm_logits = logits2d.reshape(b, s, cfg["vocab"])        # bf16 logits
    cls_logits = aux[:, 0].reshape(b, s)                     # f32
    # torch CrossEntropyLoss(mean) is NaN when every label is ignored; we clamp
    # the denominator instead (documented deviation).
    mask_loss = jnp.sum(aux[:, 1]) / jnp.maximum(jnp.sum(aux[:, 2]), 1.0)
    return mask_loss, mlm_logits, cls_logits


# ------------------------------ UniMCModel ----------------------------------

def unimc_forward(params, cfg, yes_token, input_ids, attention_mask,
                  token_type_ids, position_ids=None, mlmlabels=None,
                  clslabels=None, clslabels_mask=None, mlmlabels_mask=None):
    b, s = input_ids.shape
    if position_ids is None:
        position_ids = jnp.broadcast_to(
            jnp.arange(s, dtype=jnp.int32)[None, :], (b, s))
    if clslabels_mask is None:
        clslabels_mask = jnp.zeros((b, s), jnp.float32)
    labels = (mlmlabels if mlmlabels is not None
              else jnp.full((b, s), -100, jnp.int32))

    mask_loss, mlm_logits, cls_logits = encoder_forward(
        params, input_ids, attention_mask, token_type_ids, position_ids,
        clslabels_mask, labels, yes_token, cfg)

    if mlmlabels is None:
        return 0, mlm_logits, cls_logits

    cls_loss = _cls_cross_entropy(cls_logits, clslabels)
    all_loss = mask_loss + cls_loss
    return all_loss, mlm_logits, cls_logits


# --------------------------------- main --------------------------------------

if __name__ == "__main__":
    key = jax.random.PRNGKey(0)
    pkey, ikey = jax.random.split(key)

    B, S = 2, 8
    yes_token = 5
    params = init_params(pkey, CFG)

    input_ids = jax.random.randint(ikey, (B, S), 0, CFG["vocab"], dtype=jnp.int32)
    attention_mask = jnp.ones((B, S), jnp.int32)
    token_type_ids = jnp.zeros((B, S), jnp.int32)

    # MLM labels: -100 everywhere except two masked positions.
    mlmlabels = jnp.full((B, S), -100, jnp.int32)
    mlmlabels = mlmlabels.at[0, 2].set(7).at[1, 5].set(11)

    # Classification: first 4 positions are candidate answers; pick one per row.
    clslabels = jnp.array([1, 2], jnp.int32)
    pos = jnp.arange(S)[None, :]
    clslabels_mask = jnp.where(pos < 4, 0.0, -10000.0).astype(jnp.float32)
    clslabels_mask = jnp.broadcast_to(clslabels_mask, (B, S))

    fwd = jax.jit(functools.partial(unimc_forward, params, CFG, yes_token))
    all_loss, mlm_logits, cls_logits = fwd(
        input_ids, attention_mask, token_type_ids, mlmlabels=mlmlabels,
        clslabels=clslabels, clslabels_mask=clslabels_mask)

    jax.block_until_ready((all_loss, mlm_logits, cls_logits))
    assert mlm_logits.shape == (B, S, CFG["vocab"])
    assert cls_logits.shape == (B, S)
    assert all_loss.shape == ()
    print("KERNEL_OK")
</pallas_src>

<mosaic_0001>
module attributes {stable_mosaic.version = 11 : i64} {
  func.func @_emb_ln_kernel(%arg0: i32, %arg1: memref<8x128xbf16, #tpu.memory_space<vmem>>, %arg2: memref<8x128xbf16, #tpu.memory_space<vmem>>, %arg3: memref<8x128xbf16, #tpu.memory_space<vmem>>, %arg4: memref<1x128xf32, #tpu.memory_space<vmem>>, %arg5: memref<1x128xf32, #tpu.memory_space<vmem>>, %arg6: memref<8x128xbf16, #tpu.memory_space<vmem>>) attributes {dimension_semantics = [#tpu.dimension_semantics<parallel>], iteration_bounds = array<i64: 2>, scalar_prefetch = 0 : i64, scratch_operands = 0 : i64, tpu.core_type = #tpu.core_type<tc>, window_params = [{transform_indices = @transform_0, window_bounds = array<i64: 8, 128>}, {transform_indices = @transform_1, window_bounds = array<i64: 8, 128>}, {transform_indices = @transform_2, window_bounds = array<i64: 8, 128>}, {pipeline_mode = #tpu.pipeline_mode<synchronous>, transform_indices = @transform_3, window_bounds = array<i64: 1, 128>}, {pipeline_mode = #tpu.pipeline_mode<synchronous>, transform_indices = @transform_4, window_bounds = array<i64: 1, 128>}, {transform_indices = @transform_5, window_bounds = array<i64: 8, 128>}]} {
    %c0 = arith.constant 0 : index
    %c0_0 = arith.constant 0 : index
    %0 = vector.load %arg1[%c0, %c0_0] : memref<8x128xbf16, #tpu.memory_space<vmem>>, vector<8x128xbf16>
    %1 = arith.extf %0 : vector<8x128xbf16> to vector<8x128xf32>
    %c0_1 = arith.constant 0 : index
    %c0_2 = arith.constant 0 : index
    %2 = vector.load %arg2[%c0_1, %c0_2] : memref<8x128xbf16, #tpu.memory_space<vmem>>, vector<8x128xbf16>
    %3 = arith.extf %2 : vector<8x128xbf16> to vector<8x128xf32>
    %4 = arith.addf %1, %3 : vector<8x128xf32>
    %c0_3 = arith.constant 0 : index
    %c0_4 = arith.constant 0 : index
    %5 = vector.load %arg3[%c0_3, %c0_4] : memref<8x128xbf16, #tpu.memory_space<vmem>>, vector<8x128xbf16>
    %6 = arith.extf %5 : vector<8x128xbf16> to vector<8x128xf32>
    %7 = arith.addf %4, %6 : vector<8x128xf32>
    %c0_5 = arith.constant 0 : index
    %c0_6 = arith.constant 0 : index
    %8 = vector.load %arg4[%c0_5, %c0_6] : memref<1x128xf32, #tpu.memory_space<vmem>>, vector<1x128xf32>
    %c0_7 = arith.constant 0 : index
    %c0_8 = arith.constant 0 : index
    %9 = vector.load %arg5[%c0_7, %c0_8] : memref<1x128xf32, #tpu.memory_space<vmem>>, vector<1x128xf32>
    %cst = arith.constant dense<0.000000e+00> : vector<8xf32>
    %10 = vector.multi_reduction <add>, %7, %cst [1] : vector<8x128xf32> to vector<8xf32>
    %11 = vector.shape_cast %10 : vector<8xf32> to vector<8x1xf32>
    %cst_9 = arith.constant 1.280000e+02 : f32
    %12 = vector.broadcast %cst_9 : f32 to vector<8x1xf32>
    %13 = arith.divf %11, %12 : vector<8x1xf32>
    %14 = vector.broadcast %13 : vector<8x1xf32> to vector<8x128xf32>
    %15 = arith.subf %7, %14 : vector<8x128xf32>
    %16 = arith.mulf %15, %15 : vector<8x128xf32>
    %cst_10 = arith.constant dense<0.000000e+00> : vector<8xf32>
    %17 = vector.multi_reduction <add>, %16, %cst_10 [1] : vector<8x128xf32> to vector<8xf32>
    %18 = vector.shape_cast %17 : vector<8xf32> to vector<8x1xf32>
    %cst_11 = arith.constant 1.280000e+02 : f32
    %19 = vector.broadcast %cst_11 : f32 to vector<8x1xf32>
    %20 = arith.divf %18, %19 : vector<8x1xf32>
    %21 = vector.broadcast %13 : vector<8x1xf32> to vector<8x128xf32>
    %22 = arith.subf %7, %21 : vector<8x128xf32>
    %cst_12 = arith.constant 9.99999996E-13 : f32
    %23 = vector.broadcast %cst_12 : f32 to vector<8x1xf32>
    %24 = arith.addf %20, %23 : vector<8x1xf32>
    %25 = math.rsqrt %24 : vector<8x1xf32>
    %26 = vector.broadcast %25 : vector<8x1xf32> to vector<8x128xf32>
    %27 = arith.mulf %22, %26 : vector<8x128xf32>
    %28 = vector.broadcast %8 : vector<1x128xf32> to vector<8x128xf32>
    %29 = arith.mulf %27, %28 : vector<8x128xf32>
    %30 = vector.broadcast %9 : vector<1x128xf32> to vector<8x128xf32>
    %31 = arith.addf %29, %30 : vector<8x128xf32>
    %32 = arith.truncf %31 : vector<8x128xf32> to vector<8x128xbf16>
    %c0_13 = arith.constant 0 : index
    %c0_14 = arith.constant 0 : index
    %33 = vector.load %arg6[%c0_13, %c0_14] : memref<8x128xbf16, #tpu.memory_space<vmem>>, vector<8x128xbf16>
    tpu.vector_store %arg6[%c0_13, %c0_14], %32 {strides = array<i32>} : memref<8x128xbf16, #tpu.memory_space<vmem>>, vector<8x128xbf16>,
    return
  }
  func.func @transform_0(%arg0: i32) -> (i32, i32) {
    %c0_i32 = arith.constant 0 : i32
    %c0_i32_0 = arith.constant 0 : i32
    return %arg0, %c0_i32 : i32, i32
  }
  func.func @transform_1(%arg0: i32) -> (i32, i32) {
    %c0_i32 = arith.constant 0 : i32
    %c0_i32_0 = arith.constant 0 : i32
    return %arg0, %c0_i32 : i32, i32
  }
  func.func @transform_2(%arg0: i32) -> (i32, i32) {
    %c0_i32 = arith.constant 0 : i32
    %c0_i32_0 = arith.constant 0 : i32
    return %arg0, %c0_i32 : i32, i32
  }
  func.func @transform_3(%arg0: i32) -> (i32, i32) {
    %c0_i32 = arith.constant 0 : i32
    %c0_i32_0 = arith.constant 0 : i32
    %c0_i32_1 = arith.constant 0 : i32
    return %c0_i32, %c0_i32_0 : i32, i32
  }
  func.func @transform_4(%arg0: i32) -> (i32, i32) {
    %c0_i32 = arith.constant 0 : i32
    %c0_i32_0 = arith.constant 0 : i32
    %c0_i32_1 = arith.constant 0 : i32
    return %c0_i32, %c0_i32_0 : i32, i32
  }
  func.func @transform_5(%arg0: i32) -> (i32, i32) {
    %c0_i32 = arith.constant 0 : i32
    %c0_i32_0 = arith.constant 0 : i32
    return %arg0, %c0_i32 : i32, i32
  }
}

module attributes {stable_mosaic.version = 11 : i64} {
  func.func @_layer_kernel(%arg0: i32, %arg1: memref<1x8x128xbf16, #tpu.memory_space<vmem>>, %arg2: memref<1x1x8xf32, #tpu.memory_space<vmem>>, %arg3: memref<128x384xbf16, #tpu.memory_space<vmem>>, %arg4: memref<1x384xf32, #tpu.memory_space<vmem>>, %arg5: memref<128x128xbf16, #tpu.memory_space<vmem>>, %arg6: memref<1x128xf32, #tpu.memory_space<vmem>>, %arg7: memref<1x128xf32, #tpu.memory_space<vmem>>, %arg8: memref<1x128xf32, #tpu.memory_space<vmem>>, %arg9: memref<128x256xbf16, #tpu.memory_space<vmem>>, %arg10: memref<1x256xf32, #tpu.memory_space<vmem>>, %arg11: memref<256x128xbf16, #tpu.memory_space<vmem>>, %arg12: memref<1x128xf32, #tpu.memory_space<vmem>>, %arg13: memref<1x128xf32, #tpu.memory_space<vmem>>, %arg14: memref<1x128xf32, #tpu.memory_space<vmem>>, %arg15: memref<1x8x128xbf16, #tpu.memory_space<vmem>>) attributes {dimension_semantics = [#tpu.dimension_semantics<parallel>], iteration_bounds = array<i64: 2>, scalar_prefetch = 0 : i64, scratch_operands = 0 : i64, tpu.core_type = #tpu.core_type<tc>, window_params = [{transform_indices = @transform_0, window_bounds = array<i64: 1, 8, 128>}, {transform_indices = @transform_1, window_bounds = array<i64: 1, 1, 8>}, {pipeline_mode = #tpu.pipeline_mode<synchronous>, transform_indices = @transform_2, window_bounds = array<i64: 128, 384>}, {pipeline_mode = #tpu.pipeline_mode<synchronous>, transform_indices = @transform_3, window_bounds = array<i64: 1, 384>}, {pipeline_mode = #tpu.pipeline_mode<synchronous>, transform_indices = @transform_4, window_bounds = array<i64: 128, 128>}, {pipeline_mode = #tpu.pipeline_mode<synchronous>, transform_indices = @transform_5, window_bounds = array<i64: 1, 128>}, {pipeline_mode = #tpu.pipeline_mode<synchronous>, transform_indices = @transform_6, window_bounds = array<i64: 1, 128>}, {pipeline_mode = #tpu.pipeline_mode<synchronous>, transform_indices = @transform_7, window_bounds = array<i64: 1, 128>}, {pipeline_mode = #tpu.pipeline_mode<synchronous>, transform_indices = @transform_8, window_bounds = array<i64: 128, 256>}, {pipeline_mode = #tpu.pipeline_mode<synchronous>, transform_indices = @transform_9, window_bounds = array<i64: 1, 256>}, {pipeline_mode = #tpu.pipeline_mode<synchronous>, transform_indices = @transform_10, window_bounds = array<i64: 256, 128>}, {pipeline_mode = #tpu.pipeline_mode<synchronous>, transform_indices = @transform_11, window_bounds = array<i64: 1, 128>}, {pipeline_mode = #tpu.pipeline_mode<synchronous>, transform_indices = @transform_12, window_bounds = array<i64: 1, 128>}, {pipeline_mode = #tpu.pipeline_mode<synchronous>, transform_indices = @transform_13, window_bounds = array<i64: 1, 128>}, {transform_indices = @transform_14, window_bounds = array<i64: 1, 8, 128>}]} {
    %c0 = arith.constant 0 : index
    %c0_0 = arith.constant 0 : index
    %c0_1 = arith.constant 0 : index
    %0 = vector.load %arg1[%c0, %c0_0, %c0_1] : memref<1x8x128xbf16, #tpu.memory_space<vmem>>, vector<1x8x128xbf16>
    %1 = vector.shape_cast %0 : vector<1x8x128xbf16> to vector<8x128xbf16>
    %c0_2 = arith.constant 0 : index
    %c0_3 = arith.constant 0 : index
    %c0_4 = arith.constant 0 : index
    %2 = vector.load %arg2[%c0_2, %c0_3, %c0_4] : memref<1x1x8xf32, #tpu.memory_space<vmem>>, vector<1x1x8xf32>
    %3 = vector.shape_cast %2 : vector<1x1x8xf32> to vector<1x8xf32>
    %c0_5 = arith.constant 0 : index
    %c0_6 = arith.constant 0 : index
    %4 = vector.load %arg3[%c0_5, %c0_6] : memref<128x384xbf16, #tpu.memory_space<vmem>>, vector<128x384xbf16>
    %cst = arith.constant dense<0.000000e+00> : vector<8x384xf32>
    %5 = tpu.matmul %1, %4, %cst {dimension_numbers = #tpu.dot_dimension_numbers<[1], [0], [0], [1], [0, 0, 1, 1], [], []>} : vector<8x128xbf16>, vector<128x384xbf16>, vector<8x384xf32> -> vector<8x384xf32>
    %c0_7 = arith.constant 0 : index
    %c0_8 = arith.constant 0 : index
    %6 = vector.load %arg4[%c0_7, %c0_8] : memref<1x384xf32, #tpu.memory_space<vmem>>, vector<1x384xf32>
    %7 = vector.broadcast %6 : vector<1x384xf32> to vector<8x384xf32>
    %8 = arith.addf %5, %7 : vector<8x384xf32>
    %9 = vector.extract_strided_slice %8 {offsets = [0, 0], sizes = [8, 128], strides = [1, 1]} : vector<8x384xf32> to vector<8x128xf32>
    %cst_9 = arith.constant 1.250000e-01 : f32
    %10 = vector.broadcast %cst_9 : f32 to vector<8x128xf32>
    %11 = arith.mulf %9, %10 : vector<8x128xf32>
    %12 = arith.truncf %11 : vector<8x128xf32> to vector<8x128xbf16>
    %13 = vector.extract_strided_slice %8 {offsets = [0, 128], sizes = [8, 128], strides = [1, 1]} : vector<8x384xf32> to vector<8x128xf32>
    %14 = arith.truncf %13 : vector<8x128xf32> to vector<8x128xbf16>
    %15 = vector.extract_strided_slice %8 {offsets = [0, 256], sizes = [8, 128], strides = [1, 1]} : vector<8x384xf32> to vector<8x128xf32>
    %16 = arith.truncf %15 : vector<8x128xf32> to vector<8x128xbf16>
    %17 = vector.extract_strided_slice %12 {offsets = [0, 0], sizes = [8, 64], strides = [1, 1]} : vector<8x128xbf16> to vector<8x64xbf16>
    %18 = vector.extract_strided_slice %14 {offsets = [0, 0], sizes = [8, 64], strides = [1, 1]} : vector<8x128xbf16> to vector<8x64xbf16>
    %cst_10 = arith.constant dense<0.000000e+00> : vector<8x8xf32>
    %19 = tpu.matmul %17, %18, %cst_10 {dimension_numbers = #tpu.dot_dimension_numbers<[1], [1], [0], [0], [0, 0, 1, 0], [], []>} : vector<8x64xbf16>, vector<8x64xbf16>, vector<8x8xf32> -> vector<8x8xf32>
    %20 = vector.broadcast %3 : vector<1x8xf32> to vector<8x8xf32>
    %21 = arith.addf %19, %20 : vector<8x8xf32>
    %cst_11 = arith.constant dense<0xFF800000> : vector<8xf32>
    %22 = vector.multi_reduction <maximumf>, %21, %cst_11 [1] : vector<8x8xf32> to vector<8xf32>
    %23 = vector.shape_cast %22 : vector<8xf32> to vector<8x1xf32>
    %24 = vector.broadcast %23 : vector<8x1xf32> to vector<8x8xf32>
    %25 = arith.subf %21, %24 : vector<8x8xf32>
    %26 = math.exp %25 : vector<8x8xf32>
    %cst_12 = arith.constant dense<0.000000e+00> : vector<8xf32>
    %27 = vector.multi_reduction <add>, %26, %cst_12 [1] : vector<8x8xf32> to vector<8xf32>
    %28 = vector.shape_cast %27 : vector<8xf32> to vector<8x1xf32>
    %29 = tpu.reciprocal %28 {approx = true} : vector<8x1xf32> -> vector<8x1xf32>
    %30 = vector.broadcast %29 : vector<8x1xf32> to vector<8x8xf32>
    %31 = arith.mulf %26, %30 : vector<8x8xf32>
    %32 = arith.truncf %31 : vector<8x8xf32> to vector<8x8xbf16>
    %33 = vector.extract_strided_slice %16 {offsets = [0, 0], sizes = [8, 64], strides = [1, 1]} : vector<8x128xbf16> to vector<8x64xbf16>
    %cst_13 = arith.constant dense<0.000000e+00> : vector<8x64xf32>
    %34 = tpu.matmul %32, %33, %cst_13 {dimension_numbers = #tpu.dot_dimension_numbers<[1], [0], [0], [1], [0, 0, 1, 1], [], []>} : vector<8x8xbf16>, vector<8x64xbf16>, vector<8x64xf32> -> vector<8x64xf32>
    %35 = arith.truncf %34 : vector<8x64xf32> to vector<8x64xbf16>
    %36 = vector.extract_strided_slice %12 {offsets = [0, 64], sizes = [8, 64], strides = [1, 1]} : vector<8x128xbf16> to vector<8x64xbf16>
    %37 = vector.extract_strided_slice %14 {offsets = [0, 64], sizes = [8, 64], strides = [1, 1]} : vector<8x128xbf16> to vector<8x64xbf16>
    %cst_14 = arith.constant dense<0.000000e+00> : vector<8x8xf32>
    %38 = tpu.matmul %36, %37, %cst_14 {dimension_numbers = #tpu.dot_dimension_numbers<[1], [1], [0], [0], [0, 0, 1, 0], [], []>} : vector<8x64xbf16>, vector<8x64xbf16>, vector<8x8xf32> -> vector<8x8xf32>
    %39 = vector.broadcast %3 : vector<1x8xf32> to vector<8x8xf32>
    %40 = arith.addf %38, %39 : vector<8x8xf32>
    %cst_15 = arith.constant dense<0xFF800000> : vector<8xf32>
    %41 = vector.multi_reduction <maximumf>, %40, %cst_15 [1] : vector<8x8xf32> to vector<8xf32>
    %42 = vector.shape_cast %41 : vector<8xf32> to vector<8x1xf32>
    %43 = vector.broadcast %42 : vector<8x1xf32> to vector<8x8xf32>
    %44 = arith.subf %40, %43 : vector<8x8xf32>
    %45 = math.exp %44 : vector<8x8xf32>
    %cst_16 = arith.constant dense<0.000000e+00> : vector<8xf32>
    %46 = vector.multi_reduction <add>, %45, %cst_16 [1] : vector<8x8xf32> to vector<8xf32>
    %47 = vector.shape_cast %46 : vector<8xf32> to vector<8x1xf32>
    %48 = tpu.reciprocal %47 {approx = true} : vector<8x1xf32> -> vector<8x1xf32>
    %49 = vector.broadcast %48 : vector<8x1xf32> to vector<8x8xf32>
    %50 = arith.mulf %45, %49 : vector<8x8xf32>
    %51 = arith.truncf %50 : vector<8x8xf32> to vector<8x8xbf16>
    %52 = vector.extract_strided_slice %16 {offsets = [0, 64], sizes = [8, 64], strides = [1, 1]} : vector<8x128xbf16> to vector<8x64xbf16>
    %cst_17 = arith.constant dense<0.000000e+00> : vector<8x64xf32>
    %53 = tpu.matmul %51, %52, %cst_17 {dimension_numbers = #tpu.dot_dimension_numbers<[1], [0], [0], [1], [0, 0, 1, 1], [], []>} : vector<8x8xbf16>, vector<8x64xbf16>, vector<8x64xf32> -> vector<8x64xf32>
    %54 = arith.truncf %53 : vector<8x64xf32> to vector<8x64xbf16>
    %55 = tpu.concatenate %35, %54 in 1 : vector<8x64xbf16>, vector<8x64xbf16> -> vector<8x128xbf16>
    %c0_18 = arith.constant 0 : index
    %c0_19 = arith.constant 0 : index
    %56 = vector.load %arg5[%c0_18, %c0_19] : memref<128x128xbf16, #tpu.memory_space<vmem>>, vector<128x128xbf16>
    %cst_20 = arith.constant dense<0.000000e+00> : vector<8x128xf32>
    %57 = tpu.matmul %55, %56, %cst_20 {dimension_numbers = #tpu.dot_dimension_numbers<[1], [0], [0], [1], [0, 0, 1, 1], [], []>} : vector<8x128xbf16>, vector<128x128xbf16>, vector<8x128xf32> -> vector<8x128xf32>
    %c0_21 = arith.constant 0 : index
    %c0_22 = arith.constant 0 : index
    %58 = vector.load %arg6[%c0_21, %c0_22] : memref<1x128xf32, #tpu.memory_space<vmem>>, vector<1x128xf32>
    %59 = vector.broadcast %58 : vector<1x128xf32> to vector<8x128xf32>
    %60 = arith.addf %57, %59 : vector<8x128xf32>
    %61 = arith.extf %1 : vector<8x128xbf16> to vector<8x128xf32>
    %62 = arith.addf %60, %61 : vector<8x128xf32>
    %c0_23 = arith.constant 0 : index
    %c0_24 = arith.constant 0 : index
    %63 = vector.load %arg7[%c0_23, %c0_24] : memref<1x128xf32, #tpu.memory_space<vmem>>, vector<1x128xf32>
    %c0_25 = arith.constant 0 : index
    %c0_26 = arith.constant 0 : index
    %64 = vector.load %arg8[%c0_25, %c0_26] : memref<1x128xf32, #tpu.memory_space<vmem>>, vector<1x128xf32>
    %cst_27 = arith.constant dense<0.000000e+00> : vector<8xf32>
    %65 = vector.multi_reduction <add>, %62, %cst_27 [1] : vector<8x128xf32> to vector<8xf32>
    %66 = vector.shape_cast %65 : vector<8xf32> to vector<8x1xf32>
    %cst_28 = arith.constant 1.280000e+02 : f32
    %67 = vector.broadcast %cst_28 : f32 to vector<8x1xf32>
    %68 = arith.divf %66, %67 : vector<8x1xf32>
    %69 = vector.broadcast %68 : vector<8x1xf32> to vector<8x128xf32>
    %70 = arith.subf %62, %69 : vector<8x128xf32>
    %71 = arith.mulf %70, %70 : vector<8x128xf32>
    %cst_29 = arith.constant dense<0.000000e+00> : vector<8xf32>
    %72 = vector.multi_reduction <add>, %71, %cst_29 [1] : vector<8x128xf32> to vector<8xf32>
    %73 = vector.shape_cast %72 : vector<8xf32> to vector<8x1xf32>
    %cst_30 = arith.constant 1.280000e+02 : f32
    %74 = vector.broadcast %cst_30 : f32 to vector<8x1xf32>
    %75 = arith.divf %73, %74 : vector<8x1xf32>
    %76 = vector.broadcast %68 : vector<8x1xf32> to vector<8x128xf32>
    %77 = arith.subf %62, %76 : vector<8x128xf32>
    %cst_31 = arith.constant 9.99999996E-13 : f32
    %78 = vector.broadcast %cst_31 : f32 to vector<8x1xf32>
    %79 = arith.addf %75, %78 : vector<8x1xf32>
    %80 = math.rsqrt %79 : vector<8x1xf32>
    %81 = vector.broadcast %80 : vector<8x1xf32> to vector<8x128xf32>
    %82 = arith.mulf %77, %81 : vector<8x128xf32>
    %83 = vector.broadcast %63 : vector<1x128xf32> to vector<8x128xf32>
    %84 = arith.mulf %82, %83 : vector<8x128xf32>
    %85 = vector.broadcast %64 : vector<1x128xf32> to vector<8x128xf32>
    %86 = arith.addf %84, %85 : vector<8x128xf32>
    %87 = arith.truncf %86 : vector<8x128xf32> to vector<8x128xbf16>
    %c0_32 = arith.constant 0 : index
    %c0_33 = arith.constant 0 : index
    %88 = vector.load %arg9[%c0_32, %c0_33] : memref<128x256xbf16, #tpu.memory_space<vmem>>, vector<128x256xbf16>
    %cst_34 = arith.constant dense<0.000000e+00> : vector<8x256xf32>
    %89 = tpu.matmul %87, %88, %cst_34 {dimension_numbers = #tpu.dot_dimension_numbers<[1], [0], [0], [1], [0, 0, 1, 1], [], []>} : vector<8x128xbf16>, vector<128x256xbf16>, vector<8x256xf32> -> vector<8x256xf32>
    %c0_35 = arith.constant 0 : index
    %c0_36 = arith.constant 0 : index
    %90 = vector.load %arg10[%c0_35, %c0_36] : memref<1x256xf32, #tpu.memory_space<vmem>>, vector<1x256xf32>
    %91 = vector.broadcast %90 : vector<1x256xf32> to vector<8x256xf32>
    %92 = arith.addf %89, %91 : vector<8x256xf32>
    %cst_37 = arith.constant 5.000000e-01 : f32
    %93 = vector.broadcast %cst_37 : f32 to vector<8x256xf32>
    %94 = arith.mulf %93, %92 : vector<8x256xf32>
    %cst_38 = arith.constant 4.471500e-02 : f32
    %95 = vector.broadcast %cst_38 : f32 to vector<8x256xf32>
    %96 = arith.mulf %95, %92 : vector<8x256xf32>
    %97 = arith.mulf %96, %92 : vector<8x256xf32>
    %98 = arith.mulf %97, %92 : vector<8x256xf32>
    %99 = arith.addf %92, %98 : vector<8x256xf32>
    %cst_39 = arith.constant 0.797884583 : f32
    %100 = vector.broadcast %cst_39 : f32 to vector<8x256xf32>
    %101 = arith.mulf %100, %99 : vector<8x256xf32>
    %102 = math.tanh %101 : vector<8x256xf32>
    %cst_40 = arith.constant 1.000000e+00 : f32
    %103 = vector.broadcast %cst_40 : f32 to vector<8x256xf32>
    %104 = arith.addf %103, %102 : vector<8x256xf32>
    %105 = arith.mulf %94, %104 : vector<8x256xf32>
    %106 = arith.truncf %105 : vector<8x256xf32> to vector<8x256xbf16>
    %c0_41 = arith.constant 0 : index
    %c0_42 = arith.constant 0 : index
    %107 = vector.load %arg11[%c0_41, %c0_42] : memref<256x128xbf16, #tpu.memory_space<vmem>>, vector<256x128xbf16>
    %cst_43 = arith.constant dense<0.000000e+00> : vector<8x128xf32>
    %108 = tpu.matmul %106, %107, %cst_43 {dimension_numbers = #tpu.dot_dimension_numbers<[1], [0], [0], [1], [0, 0, 1, 1], [], []>} : vector<8x256xbf16>, vector<256x128xbf16>, vector<8x128xf32> -> vector<8x128xf32>
    %c0_44 = arith.constant 0 : index
    %c0_45 = arith.constant 0 : index
    %109 = vector.load %arg12[%c0_44, %c0_45] : memref<1x128xf32, #tpu.memory_space<vmem>>, vector<1x128xf32>
    %110 = vector.broadcast %109 : vector<1x128xf32> to vector<8x128xf32>
    %111 = arith.addf %108, %110 : vector<8x128xf32>
    %112 = arith.addf %111, %86 : vector<8x128xf32>
    %c0_46 = arith.constant 0 : index
    %c0_47 = arith.constant 0 : index
    %113 = vector.load %arg13[%c0_46, %c0_47] : memref<1x128xf32, #tpu.memory_space<vmem>>, vector<1x128xf32>
    %c0_48 = arith.constant 0 : index
    %c0_49 = arith.constant 0 : index
    %114 = vector.load %arg14[%c0_48, %c0_49] : memref<1x128xf32, #tpu.memory_space<vmem>>, vector<1x128xf32>
    %cst_50 = arith.constant dense<0.000000e+00> : vector<8xf32>
    %115 = vector.multi_reduction <add>, %112, %cst_50 [1] : vector<8x128xf32> to vector<8xf32>
    %116 = vector.shape_cast %115 : vector<8xf32> to vector<8x1xf32>
    %cst_51 = arith.constant 1.280000e+02 : f32
    %117 = vector.broadcast %cst_51 : f32 to vector<8x1xf32>
    %118 = arith.divf %116, %117 : vector<8x1xf32>
    %119 = vector.broadcast %118 : vector<8x1xf32> to vector<8x128xf32>
    %120 = arith.subf %112, %119 : vector<8x128xf32>
    %121 = arith.mulf %120, %120 : vector<8x128xf32>
    %cst_52 = arith.constant dense<0.000000e+00> : vector<8xf32>
    %122 = vector.multi_reduction <add>, %121, %cst_52 [1] : vector<8x128xf32> to vector<8xf32>
    %123 = vector.shape_cast %122 : vector<8xf32> to vector<8x1xf32>
    %cst_53 = arith.constant 1.280000e+02 : f32
    %124 = vector.broadcast %cst_53 : f32 to vector<8x1xf32>
    %125 = arith.divf %123, %124 : vector<8x1xf32>
    %126 = vector.broadcast %118 : vector<8x1xf32> to vector<8x128xf32>
    %127 = arith.subf %112, %126 : vector<8x128xf32>
    %cst_54 = arith.constant 9.99999996E-13 : f32
    %128 = vector.broadcast %cst_54 : f32 to vector<8x1xf32>
    %129 = arith.addf %125, %128 : vector<8x1xf32>
    %130 = math.rsqrt %129 : vector<8x1xf32>
    %131 = vector.broadcast %130 : vector<8x1xf32> to vector<8x128xf32>
    %132 = arith.mulf %127, %131 : vector<8x128xf32>
    %133 = vector.broadcast %113 : vector<1x128xf32> to vector<8x128xf32>
    %134 = arith.mulf %132, %133 : vector<8x128xf32>
    %135 = vector.broadcast %114 : vector<1x128xf32> to vector<8x128xf32>
    %136 = arith.addf %134, %135 : vector<8x128xf32>
    %137 = arith.truncf %136 : vector<8x128xf32> to vector<8x128xbf16>
    %c0_55 = arith.constant 0 : index
    %c0_56 = arith.constant 0 : index
    %c0_57 = arith.constant 0 : index
    %138 = vector.load %arg15[%c0_55, %c0_56, %c0_57] : memref<1x8x128xbf16, #tpu.memory_space<vmem>>, vector<1x8x128xbf16>
    %139 = vector.shape_cast %138 : vector<1x8x128xbf16> to vector<8x128xbf16>
    %140 = vector.shape_cast %137 : vector<8x128xbf16> to vector<1x8x128xbf16>
    tpu.vector_store %arg15[%c0_55, %c0_56, %c0_57], %140 {strides = array<i32>} : memref<1x8x128xbf16, #tpu.memory_space<vmem>>, vector<1x8x128xbf16>,
    return
  }
  func.func @transform_0(%arg0: i32) -> (i32, i32, i32) {
    %c0_i32 = arith.constant 0 : i32
    %c0_i32_0 = arith.constant 0 : i32
    %c0_i32_1 = arith.constant 0 : i32
    return %arg0, %c0_i32, %c0_i32_0 : i32, i32, i32
  }
  func.func @transform_1(%arg0: i32) -> (i32, i32, i32) {
    %c0_i32 = arith.constant 0 : i32
    %c0_i32_0 = arith.constant 0 : i32
    %c0_i32_1 = arith.constant 0 : i32
    return %arg0, %c0_i32, %c0_i32_0 : i32, i32, i32
  }
  func.func @transform_2(%arg0: i32) -> (i32, i32) {
    %c0_i32 = arith.constant 0 : i32
    %c0_i32_0 = arith.constant 0 : i32
    %c0_i32_1 = arith.constant 0 : i32
    return %c0_i32, %c0_i32_0 : i32, i32
  }
  func.func @transform_3(%arg0: i32) -> (i32, i32) {
    %c0_i32 = arith.constant 0 : i32
    %c0_i32_0 = arith.constant 0 : i32
    %c0_i32_1 = arith.constant 0 : i32
    return %c0_i32, %c0_i32_0 : i32, i32
  }
  func.func @transform_4(%arg0: i32) -> (i32, i32) {
    %c0_i32 = arith.constant 0 : i32
    %c0_i32_0 = arith.constant 0 : i32
    %c0_i32_1 = arith.constant 0 : i32
    return %c0_i32, %c0_i32_0 : i32, i32
  }
  func.func @transform_5(%arg0: i32) -> (i32, i32) {
    %c0_i32 = arith.constant 0 : i32
    %c0_i32_0 = arith.constant 0 : i32
    %c0_i32_1 = arith.constant 0 : i32
    return %c0_i32, %c0_i32_0 : i32, i32
  }
  func.func @transform_6(%arg0: i32) -> (i32, i32) {
    %c0_i32 = arith.constant 0 : i32
    %c0_i32_0 = arith.constant 0 : i32
    %c0_i32_1 = arith.constant 0 : i32
    return %c0_i32, %c0_i32_0 : i32, i32
  }
  func.func @transform_7(%arg0: i32) -> (i32, i32) {
    %c0_i32 = arith.constant 0 : i32
    %c0_i32_0 = arith.constant 0 : i32
    %c0_i32_1 = arith.constant 0 : i32
    return %c0_i32, %c0_i32_0 : i32, i32
  }
  func.func @transform_8(%arg0: i32) -> (i32, i32) {
    %c0_i32 = arith.constant 0 : i32
    %c0_i32_0 = arith.constant 0 : i32
    %c0_i32_1 = arith.constant 0 : i32
    return %c0_i32, %c0_i32_0 : i32, i32
  }
  func.func @transform_9(%arg0: i32) -> (i32, i32) {
    %c0_i32 = arith.constant 0 : i32
    %c0_i32_0 = arith.constant 0 : i32
    %c0_i32_1 = arith.constant 0 : i32
    return %c0_i32, %c0_i32_0 : i32, i32
  }
  func.func @transform_10(%arg0: i32) -> (i32, i32) {
    %c0_i32 = arith.constant 0 : i32
    %c0_i32_0 = arith.constant 0 : i32
    %c0_i32_1 = arith.constant 0 : i32
    return %c0_i32, %c0_i32_0 : i32, i32
  }
  func.func @transform_11(%arg0: i32) -> (i32, i32) {
    %c0_i32 = arith.constant 0 : i32
    %c0_i32_0 = arith.constant 0 : i32
    %c0_i32_1 = arith.constant 0 : i32
    return %c0_i32, %c0_i32_0 : i32, i32
  }
  func.func @transform_12(%arg0: i32) -> (i32, i32) {
    %c0_i32 = arith.constant 0 : i32
    %c0_i32_0 = arith.constant 0 : i32
    %c0_i32_1 = arith.constant 0 : i32
    return %c0_i32, %c0_i32_0 : i32, i32
  }
  func.func @transform_13(%arg0: i32) -> (i32, i32) {
    %c0_i32 = arith.constant 0 : i32
    %c0_i32_0 = arith.constant 0 : i32
    %c0_i32_1 = arith.constant 0 : i32
    return %c0_i32, %c0_i32_0 : i32, i32
  }
  func.func @transform_14(%arg0: i32) -> (i32, i32, i32) {
    %c0_i32 = arith.constant 0 : i32
    %c0_i32_0 = arith.constant 0 : i32
    %c0_i32_1 = arith.constant 0 : i32
    return %arg0, %c0_i32, %c0_i32_0 : i32, i32, i32
  }
}

module attributes {stable_mosaic.version = 11 : i64} {
  func.func @_layer_kernel(%arg0: i32, %arg1: memref<1x8x128xbf16, #tpu.memory_space<vmem>>, %arg2: memref<1x1x8xf32, #tpu.memory_space<vmem>>, %arg3: memref<128x384xbf16, #tpu.memory_space<vmem>>, %arg4: memref<1x384xf32, #tpu.memory_space<vmem>>, %arg5: memref<128x128xbf16, #tpu.memory_space<vmem>>, %arg6: memref<1x128xf32, #tpu.memory_space<vmem>>, %arg7: memref<1x128xf32, #tpu.memory_space<vmem>>, %arg8: memref<1x128xf32, #tpu.memory_space<vmem>>, %arg9: memref<128x256xbf16, #tpu.memory_space<vmem>>, %arg10: memref<1x256xf32, #tpu.memory_space<vmem>>, %arg11: memref<256x128xbf16, #tpu.memory_space<vmem>>, %arg12: memref<1x128xf32, #tpu.memory_space<vmem>>, %arg13: memref<1x128xf32, #tpu.memory_space<vmem>>, %arg14: memref<1x128xf32, #tpu.memory_space<vmem>>, %arg15: memref<1x8x128xbf16, #tpu.memory_space<vmem>>) attributes {dimension_semantics = [#tpu.dimension_semantics<parallel>], iteration_bounds = array<i64: 2>, scalar_prefetch = 0 : i64, scratch_operands = 0 : i64, tpu.core_type = #tpu.core_type<tc>, window_params = [{transform_indices = @transform_0, window_bounds = array<i64: 1, 8, 128>}, {transform_indices = @transform_1, window_bounds = array<i64: 1, 1, 8>}, {pipeline_mode = #tpu.pipeline_mode<synchronous>, transform_indices = @transform_2, window_bounds = array<i64: 128, 384>}, {pipeline_mode = #tpu.pipeline_mode<synchronous>, transform_indices = @transform_3, window_bounds = array<i64: 1, 384>}, {pipeline_mode = #tpu.pipeline_mode<synchronous>, transform_indices = @transform_4, window_bounds = array<i64: 128, 128>}, {pipeline_mode = #tpu.pipeline_mode<synchronous>, transform_indices = @transform_5, window_bounds = array<i64: 1, 128>}, {pipeline_mode = #tpu.pipeline_mode<synchronous>, transform_indices = @transform_6, window_bounds = array<i64: 1, 128>}, {pipeline_mode = #tpu.pipeline_mode<synchronous>, transform_indices = @transform_7, window_bounds = array<i64: 1, 128>}, {pipeline_mode = #tpu.pipeline_mode<synchronous>, transform_indices = @transform_8, window_bounds = array<i64: 128, 256>}, {pipeline_mode = #tpu.pipeline_mode<synchronous>, transform_indices = @transform_9, window_bounds = array<i64: 1, 256>}, {pipeline_mode = #tpu.pipeline_mode<synchronous>, transform_indices = @transform_10, window_bounds = array<i64: 256, 128>}, {pipeline_mode = #tpu.pipeline_mode<synchronous>, transform_indices = @transform_11, window_bounds = array<i64: 1, 128>}, {pipeline_mode = #tpu.pipeline_mode<synchronous>, transform_indices = @transform_12, window_bounds = array<i64: 1, 128>}, {pipeline_mode = #tpu.pipeline_mode<synchronous>, transform_indices = @transform_13, window_bounds = array<i64: 1, 128>}, {transform_indices = @transform_14, window_bounds = array<i64: 1, 8, 128>}]} {
    %c0 = arith.constant 0 : index
    %c0_0 = arith.constant 0 : index
    %c0_1 = arith.constant 0 : index
    %0 = vector.load %arg1[%c0, %c0_0, %c0_1] : memref<1x8x128xbf16, #tpu.memory_space<vmem>>, vector<1x8x128xbf16>
    %1 = vector.shape_cast %0 : vector<1x8x128xbf16> to vector<8x128xbf16>
    %c0_2 = arith.constant 0 : index
    %c0_3 = arith.constant 0 : index
    %c0_4 = arith.constant 0 : index
    %2 = vector.load %arg2[%c0_2, %c0_3, %c0_4] : memref<1x1x8xf32, #tpu.memory_space<vmem>>, vector<1x1x8xf32>
    %3 = vector.shape_cast %2 : vector<1x1x8xf32> to vector<1x8xf32>
    %c0_5 = arith.constant 0 : index
    %c0_6 = arith.constant 0 : index
    %4 = vector.load %arg3[%c0_5, %c0_6] : memref<128x384xbf16, #tpu.memory_space<vmem>>, vector<128x384xbf16>
    %cst = arith.constant dense<0.000000e+00> : vector<8x384xf32>
    %5 = tpu.matmul %1, %4, %cst {dimension_numbers = #tpu.dot_dimension_numbers<[1], [0], [0], [1], [0, 0, 1, 1], [], []>} : vector<8x128xbf16>, vector<128x384xbf16>, vector<8x384xf32> -> vector<8x384xf32>
    %c0_7 = arith.constant 0 : index
    %c0_8 = arith.constant 0 : index
    %6 = vector.load %arg4[%c0_7, %c0_8] : memref<1x384xf32, #tpu.memory_space<vmem>>, vector<1x384xf32>
    %7 = vector.broadcast %6 : vector<1x384xf32> to vector<8x384xf32>
    %8 = arith.addf %5, %7 : vector<8x384xf32>
    %9 = vector.extract_strided_slice %8 {offsets = [0, 0], sizes = [8, 128], strides = [1, 1]} : vector<8x384xf32> to vector<8x128xf32>
    %cst_9 = arith.constant 1.250000e-01 : f32
    %10 = vector.broadcast %cst_9 : f32 to vector<8x128xf32>
    %11 = arith.mulf %9, %10 : vector<8x128xf32>
    %12 = arith.truncf %11 : vector<8x128xf32> to vector<8x128xbf16>
    %13 = vector.extract_strided_slice %8 {offsets = [0, 128], sizes = [8, 128], strides = [1, 1]} : vector<8x384xf32> to vector<8x128xf32>
    %14 = arith.truncf %13 : vector<8x128xf32> to vector<8x128xbf16>
    %15 = vector.extract_strided_slice %8 {offsets = [0, 256], sizes = [8, 128], strides = [1, 1]} : vector<8x384xf32> to vector<8x128xf32>
    %16 = arith.truncf %15 : vector<8x128xf32> to vector<8x128xbf16>
    %17 = vector.extract_strided_slice %12 {offsets = [0, 0], sizes = [8, 64], strides = [1, 1]} : vector<8x128xbf16> to vector<8x64xbf16>
    %18 = vector.extract_strided_slice %14 {offsets = [0, 0], sizes = [8, 64], strides = [1, 1]} : vector<8x128xbf16> to vector<8x64xbf16>
    %cst_10 = arith.constant dense<0.000000e+00> : vector<8x8xf32>
    %19 = tpu.matmul %17, %18, %cst_10 {dimension_numbers = #tpu.dot_dimension_numbers<[1], [1], [0], [0], [0, 0, 1, 0], [], []>} : vector<8x64xbf16>, vector<8x64xbf16>, vector<8x8xf32> -> vector<8x8xf32>
    %20 = vector.broadcast %3 : vector<1x8xf32> to vector<8x8xf32>
    %21 = arith.addf %19, %20 : vector<8x8xf32>
    %cst_11 = arith.constant dense<0xFF800000> : vector<8xf32>
    %22 = vector.multi_reduction <maximumf>, %21, %cst_11 [1] : vector<8x8xf32> to vector<8xf32>
    %23 = vector.shape_cast %22 : vector<8xf32> to vector<8x1xf32>
    %24 = vector.broadcast %23 : vector<8x1xf32> to vector<8x8xf32>
    %25 = arith.subf %21, %24 : vector<8x8xf32>
    %26 = math.exp %25 : vector<8x8xf32>
    %cst_12 = arith.constant dense<0.000000e+00> : vector<8xf32>
    %27 = vector.multi_reduction <add>, %26, %cst_12 [1] : vector<8x8xf32> to vector<8xf32>
    %28 = vector.shape_cast %27 : vector<8xf32> to vector<8x1xf32>
    %29 = tpu.reciprocal %28 {approx = true} : vector<8x1xf32> -> vector<8x1xf32>
    %30 = vector.broadcast %29 : vector<8x1xf32> to vector<8x8xf32>
    %31 = arith.mulf %26, %30 : vector<8x8xf32>
    %32 = arith.truncf %31 : vector<8x8xf32> to vector<8x8xbf16>
    %33 = vector.extract_strided_slice %16 {offsets = [0, 0], sizes = [8, 64], strides = [1, 1]} : vector<8x128xbf16> to vector<8x64xbf16>
    %cst_13 = arith.constant dense<0.000000e+00> : vector<8x64xf32>
    %34 = tpu.matmul %32, %33, %cst_13 {dimension_numbers = #tpu.dot_dimension_numbers<[1], [0], [0], [1], [0, 0, 1, 1], [], []>} : vector<8x8xbf16>, vector<8x64xbf16>, vector<8x64xf32> -> vector<8x64xf32>
    %35 = arith.truncf %34 : vector<8x64xf32> to vector<8x64xbf16>
    %36 = vector.extract_strided_slice %12 {offsets = [0, 64], sizes = [8, 64], strides = [1, 1]} : vector<8x128xbf16> to vector<8x64xbf16>
    %37 = vector.extract_strided_slice %14 {offsets = [0, 64], sizes = [8, 64], strides = [1, 1]} : vector<8x128xbf16> to vector<8x64xbf16>
    %cst_14 = arith.constant dense<0.000000e+00> : vector<8x8xf32>
    %38 = tpu.matmul %36, %37, %cst_14 {dimension_numbers = #tpu.dot_dimension_numbers<[1], [1], [0], [0], [0, 0, 1, 0], [], []>} : vector<8x64xbf16>, vector<8x64xbf16>, vector<8x8xf32> -> vector<8x8xf32>
    %39 = vector.broadcast %3 : vector<1x8xf32> to vector<8x8xf32>
    %40 = arith.addf %38, %39 : vector<8x8xf32>
    %cst_15 = arith.constant dense<0xFF800000> : vector<8xf32>
    %41 = vector.multi_reduction <maximumf>, %40, %cst_15 [1] : vector<8x8xf32> to vector<8xf32>
    %42 = vector.shape_cast %41 : vector<8xf32> to vector<8x1xf32>
    %43 = vector.broadcast %42 : vector<8x1xf32> to vector<8x8xf32>
    %44 = arith.subf %40, %43 : vector<8x8xf32>
    %45 = math.exp %44 : vector<8x8xf32>
    %cst_16 = arith.constant dense<0.000000e+00> : vector<8xf32>
    %46 = vector.multi_reduction <add>, %45, %cst_16 [1] : vector<8x8xf32> to vector<8xf32>
    %47 = vector.shape_cast %46 : vector<8xf32> to vector<8x1xf32>
    %48 = tpu.reciprocal %47 {approx = true} : vector<8x1xf32> -> vector<8x1xf32>
    %49 = vector.broadcast %48 : vector<8x1xf32> to vector<8x8xf32>
    %50 = arith.mulf %45, %49 : vector<8x8xf32>
    %51 = arith.truncf %50 : vector<8x8xf32> to vector<8x8xbf16>
    %52 = vector.extract_strided_slice %16 {offsets = [0, 64], sizes = [8, 64], strides = [1, 1]} : vector<8x128xbf16> to vector<8x64xbf16>
    %cst_17 = arith.constant dense<0.000000e+00> : vector<8x64xf32>
    %53 = tpu.matmul %51, %52, %cst_17 {dimension_numbers = #tpu.dot_dimension_numbers<[1], [0], [0], [1], [0, 0, 1, 1], [], []>} : vector<8x8xbf16>, vector<8x64xbf16>, vector<8x64xf32> -> vector<8x64xf32>
    %54 = arith.truncf %53 : vector<8x64xf32> to vector<8x64xbf16>
    %55 = tpu.concatenate %35, %54 in 1 : vector<8x64xbf16>, vector<8x64xbf16> -> vector<8x128xbf16>
    %c0_18 = arith.constant 0 : index
    %c0_19 = arith.constant 0 : index
    %56 = vector.load %arg5[%c0_18, %c0_19] : memref<128x128xbf16, #tpu.memory_space<vmem>>, vector<128x128xbf16>
    %cst_20 = arith.constant dense<0.000000e+00> : vector<8x128xf32>
    %57 = tpu.matmul %55, %56, %cst_20 {dimension_numbers = #tpu.dot_dimension_numbers<[1], [0], [0], [1], [0, 0, 1, 1], [], []>} : vector<8x128xbf16>, vector<128x128xbf16>, vector<8x128xf32> -> vector<8x128xf32>
    %c0_21 = arith.constant 0 : index
    %c0_22 = arith.constant 0 : index
    %58 = vector.load %arg6[%c0_21, %c0_22] : memref<1x128xf32, #tpu.memory_space<vmem>>, vector<1x128xf32>
    %59 = vector.broadcast %58 : vector<1x128xf32> to vector<8x128xf32>
    %60 = arith.addf %57, %59 : vector<8x128xf32>
    %61 = arith.extf %1 : vector<8x128xbf16> to vector<8x128xf32>
    %62 = arith.addf %60, %61 : vector<8x128xf32>
    %c0_23 = arith.constant 0 : index
    %c0_24 = arith.constant 0 : index
    %63 = vector.load %arg7[%c0_23, %c0_24] : memref<1x128xf32, #tpu.memory_space<vmem>>, vector<1x128xf32>
    %c0_25 = arith.constant 0 : index
    %c0_26 = arith.constant 0 : index
    %64 = vector.load %arg8[%c0_25, %c0_26] : memref<1x128xf32, #tpu.memory_space<vmem>>, vector<1x128xf32>
    %cst_27 = arith.constant dense<0.000000e+00> : vector<8xf32>
    %65 = vector.multi_reduction <add>, %62, %cst_27 [1] : vector<8x128xf32> to vector<8xf32>
    %66 = vector.shape_cast %65 : vector<8xf32> to vector<8x1xf32>
    %cst_28 = arith.constant 1.280000e+02 : f32
    %67 = vector.broadcast %cst_28 : f32 to vector<8x1xf32>
    %68 = arith.divf %66, %67 : vector<8x1xf32>
    %69 = vector.broadcast %68 : vector<8x1xf32> to vector<8x128xf32>
    %70 = arith.subf %62, %69 : vector<8x128xf32>
    %71 = arith.mulf %70, %70 : vector<8x128xf32>
    %cst_29 = arith.constant dense<0.000000e+00> : vector<8xf32>
    %72 = vector.multi_reduction <add>, %71, %cst_29 [1] : vector<8x128xf32> to vector<8xf32>
    %73 = vector.shape_cast %72 : vector<8xf32> to vector<8x1xf32>
    %cst_30 = arith.constant 1.280000e+02 : f32
    %74 = vector.broadcast %cst_30 : f32 to vector<8x1xf32>
    %75 = arith.divf %73, %74 : vector<8x1xf32>
    %76 = vector.broadcast %68 : vector<8x1xf32> to vector<8x128xf32>
    %77 = arith.subf %62, %76 : vector<8x128xf32>
    %cst_31 = arith.constant 9.99999996E-13 : f32
    %78 = vector.broadcast %cst_31 : f32 to vector<8x1xf32>
    %79 = arith.addf %75, %78 : vector<8x1xf32>
    %80 = math.rsqrt %79 : vector<8x1xf32>
    %81 = vector.broadcast %80 : vector<8x1xf32> to vector<8x128xf32>
    %82 = arith.mulf %77, %81 : vector<8x128xf32>
    %83 = vector.broadcast %63 : vector<1x128xf32> to vector<8x128xf32>
    %84 = arith.mulf %82, %83 : vector<8x128xf32>
    %85 = vector.broadcast %64 : vector<1x128xf32> to vector<8x128xf32>
    %86 = arith.addf %84, %85 : vector<8x128xf32>
    %87 = arith.truncf %86 : vector<8x128xf32> to vector<8x128xbf16>
    %c0_32 = arith.constant 0 : index
    %c0_33 = arith.constant 0 : index
    %88 = vector.load %arg9[%c0_32, %c0_33] : memref<128x256xbf16, #tpu.memory_space<vmem>>, vector<128x256xbf16>
    %cst_34 = arith.constant dense<0.000000e+00> : vector<8x256xf32>
    %89 = tpu.matmul %87, %88, %cst_34 {dimension_numbers = #tpu.dot_dimension_numbers<[1], [0], [0], [1], [0, 0, 1, 1], [], []>} : vector<8x128xbf16>, vector<128x256xbf16>, vector<8x256xf32> -> vector<8x256xf32>
    %c0_35 = arith.constant 0 : index
    %c0_36 = arith.constant 0 : index
    %90 = vector.load %arg10[%c0_35, %c0_36] : memref<1x256xf32, #tpu.memory_space<vmem>>, vector<1x256xf32>
    %91 = vector.broadcast %90 : vector<1x256xf32> to vector<8x256xf32>
    %92 = arith.addf %89, %91 : vector<8x256xf32>
    %cst_37 = arith.constant 5.000000e-01 : f32
    %93 = vector.broadcast %cst_37 : f32 to vector<8x256xf32>
    %94 = arith.mulf %93, %92 : vector<8x256xf32>
    %cst_38 = arith.constant 4.471500e-02 : f32
    %95 = vector.broadcast %cst_38 : f32 to vector<8x256xf32>
    %96 = arith.mulf %95, %92 : vector<8x256xf32>
    %97 = arith.mulf %96, %92 : vector<8x256xf32>
    %98 = arith.mulf %97, %92 : vector<8x256xf32>
    %99 = arith.addf %92, %98 : vector<8x256xf32>
    %cst_39 = arith.constant 0.797884583 : f32
    %100 = vector.broadcast %cst_39 : f32 to vector<8x256xf32>
    %101 = arith.mulf %100, %99 : vector<8x256xf32>
    %102 = math.tanh %101 : vector<8x256xf32>
    %cst_40 = arith.constant 1.000000e+00 : f32
    %103 = vector.broadcast %cst_40 : f32 to vector<8x256xf32>
    %104 = arith.addf %103, %102 : vector<8x256xf32>
    %105 = arith.mulf %94, %104 : vector<8x256xf32>
    %106 = arith.truncf %105 : vector<8x256xf32> to vector<8x256xbf16>
    %c0_41 = arith.constant 0 : index
    %c0_42 = arith.constant 0 : index
    %107 = vector.load %arg11[%c0_41, %c0_42] : memref<256x128xbf16, #tpu.memory_space<vmem>>, vector<256x128xbf16>
    %cst_43 = arith.constant dense<0.000000e+00> : vector<8x128xf32>
    %108 = tpu.matmul %106, %107, %cst_43 {dimension_numbers = #tpu.dot_dimension_numbers<[1], [0], [0], [1], [0, 0, 1, 1], [], []>} : vector<8x256xbf16>, vector<256x128xbf16>, vector<8x128xf32> -> vector<8x128xf32>
    %c0_44 = arith.constant 0 : index
    %c0_45 = arith.constant 0 : index
    %109 = vector.load %arg12[%c0_44, %c0_45] : memref<1x128xf32, #tpu.memory_space<vmem>>, vector<1x128xf32>
    %110 = vector.broadcast %109 : vector<1x128xf32> to vector<8x128xf32>
    %111 = arith.addf %108, %110 : vector<8x128xf32>
    %112 = arith.addf %111, %86 : vector<8x128xf32>
    %c0_46 = arith.constant 0 : index
    %c0_47 = arith.constant 0 : index
    %113 = vector.load %arg13[%c0_46, %c0_47] : memref<1x128xf32, #tpu.memory_space<vmem>>, vector<1x128xf32>
    %c0_48 = arith.constant 0 : index
    %c0_49 = arith.constant 0 : index
    %114 = vector.load %arg14[%c0_48, %c0_49] : memref<1x128xf32, #tpu.memory_space<vmem>>, vector<1x128xf32>
    %cst_50 = arith.constant dense<0.000000e+00> : vector<8xf32>
    %115 = vector.multi_reduction <add>, %112, %cst_50 [1] : vector<8x128xf32> to vector<8xf32>
    %116 = vector.shape_cast %115 : vector<8xf32> to vector<8x1xf32>
    %cst_51 = arith.constant 1.280000e+02 : f32
    %117 = vector.broadcast %cst_51 : f32 to vector<8x1xf32>
    %118 = arith.divf %116, %117 : vector<8x1xf32>
    %119 = vector.broadcast %118 : vector<8x1xf32> to vector<8x128xf32>
    %120 = arith.subf %112, %119 : vector<8x128xf32>
    %121 = arith.mulf %120, %120 : vector<8x128xf32>
    %cst_52 = arith.constant dense<0.000000e+00> : vector<8xf32>
    %122 = vector.multi_reduction <add>, %121, %cst_52 [1] : vector<8x128xf32> to vector<8xf32>
    %123 = vector.shape_cast %122 : vector<8xf32> to vector<8x1xf32>
    %cst_53 = arith.constant 1.280000e+02 : f32
    %124 = vector.broadcast %cst_53 : f32 to vector<8x1xf32>
    %125 = arith.divf %123, %124 : vector<8x1xf32>
    %126 = vector.broadcast %118 : vector<8x1xf32> to vector<8x128xf32>
    %127 = arith.subf %112, %126 : vector<8x128xf32>
    %cst_54 = arith.constant 9.99999996E-13 : f32
    %128 = vector.broadcast %cst_54 : f32 to vector<8x1xf32>
    %129 = arith.addf %125, %128 : vector<8x1xf32>
    %130 = math.rsqrt %129 : vector<8x1xf32>
    %131 = vector.broadcast %130 : vector<8x1xf32> to vector<8x128xf32>
    %132 = arith.mulf %127, %131 : vector<8x128xf32>
    %133 = vector.broadcast %113 : vector<1x128xf32> to vector<8x128xf32>
    %134 = arith.mulf %132, %133 : vector<8x128xf32>
    %135 = vector.broadcast %114 : vector<1x128xf32> to vector<8x128xf32>
    %136 = arith.addf %134, %135 : vector<8x128xf32>
    %137 = arith.truncf %136 : vector<8x128xf32> to vector<8x128xbf16>
    %c0_55 = arith.constant 0 : index
    %c0_56 = arith.constant 0 : index
    %c0_57 = arith.constant 0 : index
    %138 = vector.load %arg15[%c0_55, %c0_56, %c0_57] : memref<1x8x128xbf16, #tpu.memory_space<vmem>>, vector<1x8x128xbf16>
    %139 = vector.shape_cast %138 : vector<1x8x128xbf16> to vector<8x128xbf16>
    %140 = vector.shape_cast %137 : vector<8x128xbf16> to vector<1x8x128xbf16>
    tpu.vector_store %arg15[%c0_55, %c0_56, %c0_57], %140 {strides = array<i32>} : memref<1x8x128xbf16, #tpu.memory_space<vmem>>, vector<1x8x128xbf16>,
    return
  }
  func.func @transform_0(%arg0: i32) -> (i32, i32, i32) {
    %c0_i32 = arith.constant 0 : i32
    %c0_i32_0 = arith.constant 0 : i32
    %c0_i32_1 = arith.constant 0 : i32
    return %arg0, %c0_i32, %c0_i32_0 : i32, i32, i32
  }
  func.func @transform_1(%arg0: i32) -> (i32, i32, i32) {
    %c0_i32 = arith.constant 0 : i32
    %c0_i32_0 = arith.constant 0 : i32
    %c0_i32_1 = arith.constant 0 : i32
    return %arg0, %c0_i32, %c0_i32_0 : i32, i32, i32
  }
  func.func @transform_2(%arg0: i32) -> (i32, i32) {
    %c0_i32 = arith.constant 0 : i32
    %c0_i32_0 = arith.constant 0 : i32
    %c0_i32_1 = arith.constant 0 : i32
    return %c0_i32, %c0_i32_0 : i32, i32
  }
  func.func @transform_3(%arg0: i32) -> (i32, i32) {
    %c0_i32 = arith.constant 0 : i32
    %c0_i32_0 = arith.constant 0 : i32
    %c0_i32_1 = arith.constant 0 : i32
    return %c0_i32, %c0_i32_0 : i32, i32
  }
  func.func @transform_4(%arg0: i32) -> (i32, i32) {
    %c0_i32 = arith.constant 0 : i32
    %c0_i32_0 = arith.constant 0 : i32
    %c0_i32_1 = arith.constant 0 : i32
    return %c0_i32, %c0_i32_0 : i32, i32
  }
  func.func @transform_5(%arg0: i32) -> (i32, i32) {
    %c0_i32 = arith.constant 0 : i32
    %c0_i32_0 = arith.constant 0 : i32
    %c0_i32_1 = arith.constant 0 : i32
    return %c0_i32, %c0_i32_0 : i32, i32
  }
  func.func @transform_6(%arg0: i32) -> (i32, i32) {
    %c0_i32 = arith.constant 0 : i32
    %c0_i32_0 = arith.constant 0 : i32
    %c0_i32_1 = arith.constant 0 : i32
    return %c0_i32, %c0_i32_0 : i32, i32
  }
  func.func @transform_7(%arg0: i32) -> (i32, i32) {
    %c0_i32 = arith.constant 0 : i32
    %c0_i32_0 = arith.constant 0 : i32
    %c0_i32_1 = arith.constant 0 : i32
    return %c0_i32, %c0_i32_0 : i32, i32
  }
  func.func @transform_8(%arg0: i32) -> (i32, i32) {
    %c0_i32 = arith.constant 0 : i32
    %c0_i32_0 = arith.constant 0 : i32
    %c0_i32_1 = arith.constant 0 : i32
    return %c0_i32, %c0_i32_0 : i32, i32
  }
  func.func @transform_9(%arg0: i32) -> (i32, i32) {
    %c0_i32 = arith.constant 0 : i32
    %c0_i32_0 = arith.constant 0 : i32
    %c0_i32_1 = arith.constant 0 : i32
    return %c0_i32, %c0_i32_0 : i32, i32
  }
  func.func @transform_10(%arg0: i32) -> (i32, i32) {
    %c0_i32 = arith.constant 0 : i32
    %c0_i32_0 = arith.constant 0 : i32
    %c0_i32_1 = arith.constant 0 : i32
    return %c0_i32, %c0_i32_0 : i32, i32
  }
  func.func @transform_11(%arg0: i32) -> (i32, i32) {
    %c0_i32 = arith.constant 0 : i32
    %c0_i32_0 = arith.constant 0 : i32
    %c0_i32_1 = arith.constant 0 : i32
    return %c0_i32, %c0_i32_0 : i32, i32
  }
  func.func @transform_12(%arg0: i32) -> (i32, i32) {
    %c0_i32 = arith.constant 0 : i32
    %c0_i32_0 = arith.constant 0 : i32
    %c0_i32_1 = arith.constant 0 : i32
    return %c0_i32, %c0_i32_0 : i32, i32
  }
  func.func @transform_13(%arg0: i32) -> (i32, i32) {
    %c0_i32 = arith.constant 0 : i32
    %c0_i32_0 = arith.constant 0 : i32
    %c0_i32_1 = arith.constant 0 : i32
    return %c0_i32, %c0_i32_0 : i32, i32
  }
  func.func @transform_14(%arg0: i32) -> (i32, i32, i32) {
    %c0_i32 = arith.constant 0 : i32
    %c0_i32_0 = arith.constant 0 : i32
    %c0_i32_1 = arith.constant 0 : i32
    return %arg0, %c0_i32, %c0_i32_0 : i32, i32, i32
  }
}

module attributes {stable_mosaic.version = 11 : i64} {
  func.func @_mlm_head_kernel(%arg0: i32, %arg1: memref<8x128xbf16, #tpu.memory_space<vmem>>, %arg2: memref<128x128xbf16, #tpu.memory_space<vmem>>, %arg3: memref<1x128xf32, #tpu.memory_space<vmem>>, %arg4: memref<1x128xf32, #tpu.memory_space<vmem>>, %arg5: memref<1x128xf32, #tpu.memory_space<vmem>>, %arg6: memref<128x512xbf16, #tpu.memory_space<vmem>>, %arg7: memref<1x512xf32, #tpu.memory_space<vmem>>, %arg8: memref<8x1xf32, #tpu.memory_space<vmem>>, %arg9: memref<8x1xi32, #tpu.memory_space<vmem>>, %arg10: memref<8x512xbf16, #tpu.memory_space<vmem>>, %arg11: memref<8x128xf32, #tpu.memory_space<vmem>>) attributes {dimension_semantics = [#tpu.dimension_semantics<parallel>], iteration_bounds = array<i64: 2>, scalar_prefetch = 0 : i64, scratch_operands = 0 : i64, tpu.core_type = #tpu.core_type<tc>, window_params = [{transform_indices = @transform_0, window_bounds = array<i64: 8, 128>}, {pipeline_mode = #tpu.pipeline_mode<synchronous>, transform_indices = @transform_1, window_bounds = array<i64: 128, 128>}, {pipeline_mode = #tpu.pipeline_mode<synchronous>, transform_indices = @transform_2, window_bounds = array<i64: 1, 128>}, {pipeline_mode = #tpu.pipeline_mode<synchronous>, transform_indices = @transform_3, window_bounds = array<i64: 1, 128>}, {pipeline_mode = #tpu.pipeline_mode<synchronous>, transform_indices = @transform_4, window_bounds = array<i64: 1, 128>}, {pipeline_mode = #tpu.pipeline_mode<synchronous>, transform_indices = @transform_5, window_bounds = array<i64: 128, 512>}, {pipeline_mode = #tpu.pipeline_mode<synchronous>, transform_indices = @transform_6, window_bounds = array<i64: 1, 512>}, {transform_indices = @transform_7, window_bounds = array<i64: 8, 1>}, {transform_indices = @transform_8, window_bounds = array<i64: 8, 1>}, {transform_indices = @transform_9, window_bounds = array<i64: 8, 512>}, {transform_indices = @transform_10, window_bounds = array<i64: 8, 128>}]} {
    %c0 = arith.constant 0 : index
    %c0_0 = arith.constant 0 : index
    %0 = vector.load %arg1[%c0, %c0_0] : memref<8x128xbf16, #tpu.memory_space<vmem>>, vector<8x128xbf16>
    %c0_1 = arith.constant 0 : index
    %c0_2 = arith.constant 0 : index
    %1 = vector.load %arg2[%c0_1, %c0_2] : memref<128x128xbf16, #tpu.memory_space<vmem>>, vector<128x128xbf16>
    %cst = arith.constant dense<0.000000e+00> : vector<8x128xf32>
    %2 = tpu.matmul %0, %1, %cst {dimension_numbers = #tpu.dot_dimension_numbers<[1], [0], [0], [1], [0, 0, 1, 1], [], []>} : vector<8x128xbf16>, vector<128x128xbf16>, vector<8x128xf32> -> vector<8x128xf32>
    %c0_3 = arith.constant 0 : index
    %c0_4 = arith.constant 0 : index
    %3 = vector.load %arg3[%c0_3, %c0_4] : memref<1x128xf32, #tpu.memory_space<vmem>>, vector<1x128xf32>
    %4 = vector.broadcast %3 : vector<1x128xf32> to vector<8x128xf32>
    %5 = arith.addf %2, %4 : vector<8x128xf32>
    %cst_5 = arith.constant 5.000000e-01 : f32
    %6 = vector.broadcast %cst_5 : f32 to vector<8x128xf32>
    %7 = arith.mulf %6, %5 : vector<8x128xf32>
    %cst_6 = arith.constant 4.471500e-02 : f32
    %8 = vector.broadcast %cst_6 : f32 to vector<8x128xf32>
    %9 = arith.mulf %8, %5 : vector<8x128xf32>
    %10 = arith.mulf %9, %5 : vector<8x128xf32>
    %11 = arith.mulf %10, %5 : vector<8x128xf32>
    %12 = arith.addf %5, %11 : vector<8x128xf32>
    %cst_7 = arith.constant 0.797884583 : f32
    %13 = vector.broadcast %cst_7 : f32 to vector<8x128xf32>
    %14 = arith.mulf %13, %12 : vector<8x128xf32>
    %15 = math.tanh %14 : vector<8x128xf32>
    %cst_8 = arith.constant 1.000000e+00 : f32
    %16 = vector.broadcast %cst_8 : f32 to vector<8x128xf32>
    %17 = arith.addf %16, %15 : vector<8x128xf32>
    %18 = arith.mulf %7, %17 : vector<8x128xf32>
    %c0_9 = arith.constant 0 : index
    %c0_10 = arith.constant 0 : index
    %19 = vector.load %arg4[%c0_9, %c0_10] : memref<1x128xf32, #tpu.memory_space<vmem>>, vector<1x128xf32>
    %c0_11 = arith.constant 0 : index
    %c0_12 = arith.constant 0 : index
    %20 = vector.load %arg5[%c0_11, %c0_12] : memref<1x128xf32, #tpu.memory_space<vmem>>, vector<1x128xf32>
    %cst_13 = arith.constant dense<0.000000e+00> : vector<8xf32>
    %21 = vector.multi_reduction <add>, %18, %cst_13 [1] : vector<8x128xf32> to vector<8xf32>
    %22 = vector.shape_cast %21 : vector<8xf32> to vector<8x1xf32>
    %cst_14 = arith.constant 1.280000e+02 : f32
    %23 = vector.broadcast %cst_14 : f32 to vector<8x1xf32>
    %24 = arith.divf %22, %23 : vector<8x1xf32>
    %25 = vector.broadcast %24 : vector<8x1xf32> to vector<8x128xf32>
    %26 = arith.subf %18, %25 : vector<8x128xf32>
    %27 = arith.mulf %26, %26 : vector<8x128xf32>
    %cst_15 = arith.constant dense<0.000000e+00> : vector<8xf32>
    %28 = vector.multi_reduction <add>, %27, %cst_15 [1] : vector<8x128xf32> to vector<8xf32>
    %29 = vector.shape_cast %28 : vector<8xf32> to vector<8x1xf32>
    %cst_16 = arith.constant 1.280000e+02 : f32
    %30 = vector.broadcast %cst_16 : f32 to vector<8x1xf32>
    %31 = arith.divf %29, %30 : vector<8x1xf32>
    %32 = vector.broadcast %24 : vector<8x1xf32> to vector<8x128xf32>
    %33 = arith.subf %18, %32 : vector<8x128xf32>
    %cst_17 = arith.constant 9.99999996E-13 : f32
    %34 = vector.broadcast %cst_17 : f32 to vector<8x1xf32>
    %35 = arith.addf %31, %34 : vector<8x1xf32>
    %36 = math.rsqrt %35 : vector<8x1xf32>
    %37 = vector.broadcast %36 : vector<8x1xf32> to vector<8x128xf32>
    %38 = arith.mulf %33, %37 : vector<8x128xf32>
    %39 = vector.broadcast %19 : vector<1x128xf32> to vector<8x128xf32>
    %40 = arith.mulf %38, %39 : vector<8x128xf32>
    %41 = vector.broadcast %20 : vector<1x128xf32> to vector<8x128xf32>
    %42 = arith.addf %40, %41 : vector<8x128xf32>
    %43 = arith.truncf %42 : vector<8x128xf32> to vector<8x128xbf16>
    %c0_18 = arith.constant 0 : index
    %c0_19 = arith.constant 0 : index
    %44 = vector.load %arg6[%c0_18, %c0_19] : memref<128x512xbf16, #tpu.memory_space<vmem>>, vector<128x512xbf16>
    %cst_20 = arith.constant dense<0.000000e+00> : vector<8x512xf32>
    %45 = tpu.matmul %43, %44, %cst_20 {dimension_numbers = #tpu.dot_dimension_numbers<[1], [0], [0], [1], [0, 0, 1, 1], [], []>} : vector<8x128xbf16>, vector<128x512xbf16>, vector<8x512xf32> -> vector<8x512xf32>
    %c0_21 = arith.constant 0 : index
    %c0_22 = arith.constant 0 : index
    %46 = vector.load %arg7[%c0_21, %c0_22] : memref<1x512xf32, #tpu.memory_space<vmem>>, vector<1x512xf32>
    %47 = vector.broadcast %46 : vector<1x512xf32> to vector<8x512xf32>
    %48 = arith.addf %45, %47 : vector<8x512xf32>
    %49 = arith.truncf %48 : vector<8x512xf32> to vector<8x512xbf16>
    %c0_23 = arith.constant 0 : index
    %c0_24 = arith.constant 0 : index
    %50 = vector.load %arg10[%c0_23, %c0_24] : memref<8x512xbf16, #tpu.memory_space<vmem>>, vector<8x512xbf16>
    tpu.vector_store %arg10[%c0_23, %c0_24], %49 {strides = array<i32>} : memref<8x512xbf16, #tpu.memory_space<vmem>>, vector<8x512xbf16>,
    %c0_25 = arith.constant 0 : index
    %c0_26 = arith.constant 0 : index
    %51 = vector.load %arg9[%c0_25, %c0_26] : memref<8x1xi32, #tpu.memory_space<vmem>>, vector<8x1xi32>
    %cst_27 = arith.constant dense<0xFF800000> : vector<8xf32>
    %52 = vector.multi_reduction <maximumf>, %48, %cst_27 [1] : vector<8x512xf32> to vector<8xf32>
    %53 = vector.shape_cast %52 : vector<8xf32> to vector<8x1xf32>
    %54 = vector.broadcast %53 : vector<8x1xf32> to vector<8x512xf32>
    %55 = arith.subf %48, %54 : vector<8x512xf32>
    %56 = math.exp %55 : vector<8x512xf32>
    %cst_28 = arith.constant dense<0.000000e+00> : vector<8xf32>
    %57 = vector.multi_reduction <add>, %56, %cst_28 [1] : vector<8x512xf32> to vector<8xf32>
    %58 = vector.shape_cast %57 : vector<8xf32> to vector<8x1xf32>
    %59 = math.log %58 : vector<8x1xf32>
    %60 = arith.addf %59, %53 : vector<8x1xf32>
    %61 = tpu.iota {dimensions = array<i32: 1>} : vector<8x512xi32>
    %62 = vector.broadcast %51 : vector<8x1xi32> to vector<8x512xi32>
    %63 = arith.cmpi eq, %61, %62 : vector<8x512xi32>
    %cst_29 = arith.constant 0.000000e+00 : f32
    %64 = vector.broadcast %cst_29 : f32 to vector<8x512xf32>
    %65 = arith.select %63, %48, %64 : vector<8x512xi1>, vector<8x512xf32>
    %cst_30 = arith.constant dense<0.000000e+00> : vector<8xf32>
    %66 = vector.multi_reduction <add>, %65, %cst_30 [1] : vector<8x512xf32> to vector<8xf32>
    %67 = vector.shape_cast %66 : vector<8xf32> to vector<8x1xf32>
    %c-100_i32 = arith.constant -100 : i32
    %68 = vector.broadcast %c-100_i32 : i32 to vector<8x1xi32>
    %69 = arith.cmpi ne, %51, %68 : vector<8x1xi32>
    %70 = arith.extui %69 : vector<8x1xi1> to vector<8x1xi32>
    %71 = arith.sitofp %70 : vector<8x1xi32> to vector<8x1xf32>
    %72 = arith.subf %60, %67 : vector<8x1xf32>
    %73 = arith.mulf %72, %71 : vector<8x1xf32>
    %74 = vector.extract_strided_slice %48 {offsets = [0, 5], sizes = [8, 1], strides = [1, 1]} : vector<8x512xf32> to vector<8x1xf32>
    %c0_31 = arith.constant 0 : index
    %c0_32 = arith.constant 0 : index
    %75 = vector.load %arg8[%c0_31, %c0_32] : memref<8x1xf32, #tpu.memory_space<vmem>>, vector<8x1xf32>
    %76 = arith.addf %74, %75 : vector<8x1xf32>
    %77 = tpu.iota {dimensions = array<i32: 1>} : vector<8x128xi32>
    %c0_i32 = arith.constant 0 : i32
    %78 = vector.broadcast %c0_i32 : i32 to vector<8x128xi32>
    %79 = arith.cmpi eq, %77, %78 : vector<8x128xi32>
    %c1_i32 = arith.constant 1 : i32
    %80 = vector.broadcast %c1_i32 : i32 to vector<8x128xi32>
    %81 = arith.cmpi eq, %77, %80 : vector<8x128xi32>
    %c2_i32 = arith.constant 2 : i32
    %82 = vector.broadcast %c2_i32 : i32 to vector<8x128xi32>
    %83 = arith.cmpi eq, %77, %82 : vector<8x128xi32>
    %cst_33 = arith.constant 0.000000e+00 : f32
    %84 = vector.shape_cast %71 : vector<8x1xf32> to vector<8x1xf32>
    %85 = vector.broadcast %84 : vector<8x1xf32> to vector<8x128xf32>
    %86 = vector.broadcast %cst_33 : f32 to vector<8x128xf32>
    %87 = arith.select %83, %85, %86 : vector<8x128xi1>, vector<8x128xf32>
    %88 = vector.shape_cast %73 : vector<8x1xf32> to vector<8x1xf32>
    %89 = vector.broadcast %88 : vector<8x1xf32> to vector<8x128xf32>
    %90 = arith.select %81, %89, %87 : vector<8x128xi1>, vector<8x128xf32>
    %91 = vector.shape_cast %76 : vector<8x1xf32> to vector<8x1xf32>
    %92 = vector.broadcast %91 : vector<8x1xf32> to vector<8x128xf32>
    %93 = arith.select %79, %92, %90 : vector<8x128xi1>, vector<8x128xf32>
    %c0_34 = arith.constant 0 : index
    %c0_35 = arith.constant 0 : index
    %94 = vector.load %arg11[%c0_34, %c0_35] : memref<8x128xf32, #tpu.memory_space<vmem>>, vector<8x128xf32>
    tpu.vector_store %arg11[%c0_34, %c0_35], %93 {strides = array<i32>} : memref<8x128xf32, #tpu.memory_space<vmem>>, vector<8x128xf32>,
    return
  }
  func.func @transform_0(%arg0: i32) -> (i32, i32) {
    %c0_i32 = arith.constant 0 : i32
    %c0_i32_0 = arith.constant 0 : i32
    return %arg0, %c0_i32 : i32, i32
  }
  func.func @transform_1(%arg0: i32) -> (i32, i32) {
    %c0_i32 = arith.constant 0 : i32
    %c0_i32_0 = arith.constant 0 : i32
    %c0_i32_1 = arith.constant 0 : i32
    return %c0_i32, %c0_i32_0 : i32, i32
  }
  func.func @transform_2(%arg0: i32) -> (i32, i32) {
    %c0_i32 = arith.constant 0 : i32
    %c0_i32_0 = arith.constant 0 : i32
    %c0_i32_1 = arith.constant 0 : i32
    return %c0_i32, %c0_i32_0 : i32, i32
  }
  func.func @transform_3(%arg0: i32) -> (i32, i32) {
    %c0_i32 = arith.constant 0 : i32
    %c0_i32_0 = arith.constant 0 : i32
    %c0_i32_1 = arith.constant 0 : i32
    return %c0_i32, %c0_i32_0 : i32, i32
  }
  func.func @transform_4(%arg0: i32) -> (i32, i32) {
    %c0_i32 = arith.constant 0 : i32
    %c0_i32_0 = arith.constant 0 : i32
    %c0_i32_1 = arith.constant 0 : i32
    return %c0_i32, %c0_i32_0 : i32, i32
  }
  func.func @transform_5(%arg0: i32) -> (i32, i32) {
    %c0_i32 = arith.constant 0 : i32
    %c0_i32_0 = arith.constant 0 : i32
    %c0_i32_1 = arith.constant 0 : i32
    return %c0_i32, %c0_i32_0 : i32, i32
  }
  func.func @transform_6(%arg0: i32) -> (i32, i32) {
    %c0_i32 = arith.constant 0 : i32
    %c0_i32_0 = arith.constant 0 : i32
    %c0_i32_1 = arith.constant 0 : i32
    return %c0_i32, %c0_i32_0 : i32, i32
  }
  func.func @transform_7(%arg0: i32) -> (i32, i32) {
    %c0_i32 = arith.constant 0 : i32
    %c0_i32_0 = arith.constant 0 : i32
    return %arg0, %c0_i32 : i32, i32
  }
  func.func @transform_8(%arg0: i32) -> (i32, i32) {
    %c0_i32 = arith.constant 0 : i32
    %c0_i32_0 = arith.constant 0 : i32
    return %arg0, %c0_i32 : i32, i32
  }
  func.func @transform_9(%arg0: i32) -> (i32, i32) {
    %c0_i32 = arith.constant 0 : i32
    %c0_i32_0 = arith.constant 0 : i32
    return %arg0, %c0_i32 : i32, i32
  }
  func.func @transform_10(%arg0: i32) -> (i32, i32) {
    %c0_i32 = arith.constant 0 : i32
    %c0_i32_0 = arith.constant 0 : i32
    return %arg0, %c0_i32 : i32, i32
  }
}

</mosaic_0001>

<bundles_post_ra>
// kernel: unimc_forward.4
= control target key start
LH: loop header
LB: loop body
LE: loop exit
PB: predicated region body
PF: predicated region fallthrough
CT: control target
= control target key end

     0   :  { %s430_s18 = smov 0   ;;  %s465_s0 = inlined_call_operand.vmem [shape: bf16[16,128], index: 0, kind: input, shape index: {}]   ;;  %s466_s1 = inlined_call_operand.vmem [shape: bf16[16,128], index: 1, kind: input, shape index: {}]   ;;  %s467_s2 = inlined_call_operand.vmem [shape: bf16[16,128], index: 2, kind: input, shape index: {}]   ;;  %s468_s3 = inlined_call_operand.vmem [shape: f32[1,128], index: 3, kind: input, shape index: {}]   ;;  %s469_s4 = inlined_call_operand.vmem [shape: f32[1,128], index: 4, kind: input, shape index: {}]   ;;  %s470_s5 = inlined_call_operand.vmem [shape: bf16[16,128], index: 5, kind: output, shape index: {}]  }
   0x1 LB: > { %s369_s19 = sadd.s32 4294967295, %s398_s18   ;;  %p373_p0 = scmp.ge.s32.totalorder %s398_s18, 1  ;;  %s398_s18 = sphi %s430_s18, %s15_s18  }
   0x2   : > { %p204_p1 = scmp.lt.s32.totalorder %s398_s18, 3 }
   0x4   : > { %p205_p2 = pnand %p373_p0, %p204_p1 }
   0x5   : > { %p238_p3 = scmp.lt.s32.totalorder (!%p205_p2), %s369_s19, 1 }
   0x6   : > { %208 = sbr.rel (%p205_p2) target bundleno = 331 (0x14b), region = 40 }
   0xb   : > { %s472_s19 = smov (!%p238_p3, %s369_s19), 1  ;;  %v378_v16 = vld [vmem:[%s468_s3] ss:$0 sm:$0xff] }
   0xc   : > { %s438_s20 = sshll.u32 %s472_s19, 2  ;;  %v379_v18 = vld [vmem:[%s469_s4] ss:$0 sm:$0xff] }
   0xd   : > { %s241_s23 = scalar_lea.vmem %s465_s0, %s438_s20  ;;  %s245_s26 = scalar_lea.vmem %s466_s1, %s438_s20 }
   0xe   : > { %s249_s29 = scalar_lea.vmem %s467_s2, %s438_s20  ;;  %v254_v0 = vld [vmem:[%s241_s23] sm:$0xf]  ;;  %s253_s11 = scalar_lea.vmem %s470_s5, %s438_s20 }
   0xf   : > { %v256_v1 = vld [vmem:[%s245_s26] sm:$0xf]  ;;  %v255_v2 = vunpack.c.l.bf16 %v254_v0 }
  0x10   : > { %v257_v3 = vunpack.c.l.bf16 %v256_v1  ;;  %v259_v4 = vld [vmem:[%s249_s29] sm:$0xf] }
  0x11   : > { %v260_v5 = vunpack.c.l.bf16 %v259_v4 }
  0x12   : > { %v258_v6 = vadd.f32 %v257_v3, %v255_v2 }
  0x14   : > { %v261_v7 = vadd.f32 %v260_v5, %v258_v6 }
  0x16   : > { %264 = vadd.xlane.f32.xlu0 %v261_v7 }
  0x9f   : > { %v265_v8 = vpop.xlane.xlu0 %264 }
  0xa0   : > { %v267_v9 = vmul.f32 0.0078125, %v265_v8 }
  0xa2   : > { %v268_v10 = vsub.f32 %v261_v7, %v267_v9 }
  0xa4   : > { %v269_v11 = vmul.f32 %v268_v10, %v268_v10 }
  0xa6   : > { %270 = vadd.xlane.f32.xlu0 %v269_v11 }
 0x12f   : > { %v271_v12 = vpop.xlane.xlu0 %270 }
 0x130   : > { %v272_v13 = vmul.f32 0.0078125, %v271_v12 }
 0x132   : > { %v273_v14 = vadd.f32 1e-12, %v272_v13 }
 0x134   : > { %390 = vrsqrt.f32 %v273_v14 }
 0x141   : > { %v391_v15 = vpop.eup %390 }
 0x142   : > { %v275_v17 = vmul.f32 %v391_v15, %v268_v10 }
 0x144   : > { %v282_v19 = vmul.f32 %v378_v16, %v275_v17 }
 0x146   : > { %v289_v20 = vadd.f32 %v379_v18, %v282_v19 }
 0x148   : > { %v290_v21 = vpack.c.bf16 %v289_v20, %v289_v20 }
 0x14a   : > { %291 = vst [vmem:[%s253_s11] sm:$0xf] %v290_v21 }
 0x14b PF: > { %s15_s18 = sadd.s32 1, %s398_s18  }
 0x14c   : > { %p12_p4 = scmp.ge.s32.totalorder %s15_s18, 4  }
 0x14e   :  { %14 = sbr.rel (!%p12_p4) target bundleno = 1 (0x1), region = 76 }

// kernel: squeeze.4
= control target key start
LH: loop header
LB: loop body
LE: loop exit
PB: predicated region body
PF: predicated region fallthrough
CT: control target
= control target key end

     0   :  { %vm8_vm0 = vcmask 64512   ;;  %s42_s0 = inlined_call_operand.vmem [shape: f32[16], index: 0, kind: input, shape index: {}]   ;;  %s43_s1 = inlined_call_operand.vmem [shape: f32[2,8], index: 1, kind: output, shape index: {}]  }
   0x1   :  { %v5_v0 = vld [vmem:[%s42_s0] sm:$0x1]  ;;  %s25_s0 = smov 120  }
   0x2   :  { %6 = vst [vmem:[#allocation1] sm:$0x1] %v5_v0 }
   0x9   :  { %v10_v1 = vld [vmem:[#allocation1] sm:$0x1]  }
   0xa   :  { %v7_v2 = vld [vmem:[#allocation1] sm:$0x1]   ;;  %11 = vrot.lane.b32.xlu0 %v10_v1, %s25_s0 }
   0xb   :  { %9 = vst.msk [vmem:[#allocation0] sm:$0x1] %vm8_vm0, %v7_v2  }
  0x7c   :  { %v12_v3 = vpop.permute.xlu0 %11  }
  0x7d   :  { %15 = vst.msk [vmem:[#allocation0 + $0x1] sm:$0x1] %vm8_vm0, %v12_v3  }
  0x84   :  { %v20_v4 = vld [vmem:[#allocation0] sm:$0x3] }
  0x85   :  { %23 = vst [vmem:[%s43_s1] sm:$0x3] %v20_v4 }

// kernel: unimc_forward.7
= control target key start
LH: loop header
LB: loop body
LE: loop exit
PB: predicated region body
PF: predicated region fallthrough
CT: control target
= control target key end

     0   :  { %s1684_s0 = inlined_call_operand.vmem [shape: bf16[16,128], index: 0, kind: input, shape index: {}]   ;;  %s1685_s1 = inlined_call_operand.vmem [shape: bf16[128,128], index: 1, kind: input, shape index: {}]   ;;  %s1686_s2 = inlined_call_operand.vmem [shape: f32[1,128], index: 2, kind: input, shape index: {}, may-alias: {2,4}]   ;;  %s1687_s3 = inlined_call_operand.vmem [shape: f32[1,128], index: 3, kind: input, shape index: {}]   ;;  %s1688_s4 = inlined_call_operand.vmem [shape: f32[1,128], index: 4, kind: input, shape index: {}, may-alias: {2,4}]   ;;  %s1689_s5 = inlined_call_operand.vmem [shape: bf16[128,512], index: 5, kind: input, shape index: {}]   ;;  %s1690_s6 = inlined_call_operand.vmem [shape: f32[1,512], index: 6, kind: input, shape index: {}]   ;;  %s1691_s7 = inlined_call_operand.vmem [shape: f32[16,1], index: 7, kind: input, shape index: {}]   ;;  %s1692_s8 = inlined_call_operand.vmem [shape: s32[16,1], index: 8, kind: input, shape index: {}]   ;;  %s1693_s9 = inlined_call_operand.hbm [shape: bf16[16,512], index: 9, kind: output, shape index: {0}]   ;;  %s1694_s10 = inlined_call_operand.vmem [shape: f32[16,128], index: 10, kind: output, shape index: {1}]  }
   0x1   :  { %1695 = sst [smem:[#allocation5_spill]] %s1684_s0 }
   0x2   :  { %16 = vsyncpa [#allocation3], 0 }
   0x3   :  { %18 = vsyncpa [#allocation3 + $0x1], 0  ;;  %s1406_s13 = smov 0   ;;  %s1408_s14 = smov 0  }
   0x4   :  { %s1410_s15 = smov 0   ;;  %s1412_s16 = smov 0  }
   0x5 LB: > { %s1427_s17 = sadd.s32 4294967295, %s1343_s16   ;;  %s1074_s18 = sadd.s32 4294967294, %s1343_s16   ;;  %s1343_s16 = sphi %s1412_s16, %s1702_s16   ;;  %s1339_s15 = sphi %s1410_s15, %s1701_s15   ;;  %s1335_s14 = sphi %s1408_s14, %s1700_s14   ;;  %s1331_s13 = sphi %s1406_s13, %s1699_s13  }
   0x6   : > { %s1431_s19 = sadd.s32 1, %s1343_s16   ;;  %s235_s20 = sadd.s32 1, %s1339_s15 }
   0x7   : > { %s232_s21 = ssub.s32 %s1343_s16, %s1431_s19  ;;  %p245_p0 = scmp.ne.s32.totalorder %s1339_s15, %s1335_s14 }
   0x8   : > { %p233_p1 = scmp.eq.s32.totalorder %s232_s21, 0  ;;  %p246_p2 = scmp.eq.s32.totalorder %s1427_s17, 1 }
   0x9   : > { %p251_p3 = scmp.ne.s32.totalorder %s1335_s14, %s1331_s13  ;;  %p252_p4 = scmp.eq.s32.totalorder %s1074_s18, 1 }
   0xa   : > { %s1442_s22 = scalar_select %p233_p1, %s1339_s15, %s235_s20  }
   0xb   : > { %p1444_p5 = por %p246_p2, %p245_p0  ;;  %p1448_p6 = por %p252_p4, %p251_p3 }
   0xc   : > { %p1077_p7 = scmp.ge.s32.totalorder %s1343_s16, 1  ;;  %p335_p8 = scmp.lt.s32.totalorder %s1343_s16, 3 }
   0xe   : > { %p336_p9 = pnand %p1077_p7, %p335_p8 }
   0xf   : > { %p384_p10 = scmp.lt.s32.totalorder (!%p336_p9), %s1427_s17, 1  ;;  %s1698_s0 = sld [smem:[#allocation5_spill]] (!%p336_p9) }
  0x10   : > { %339 = sbr.rel (%p336_p9) target bundleno = 1240 (0x4d8), region = 56  ;;  %s375_s27 = sand.u32 (!%p336_p9), 1, %s1335_s14  }
  0x11   : > { %s1078_s28 = sshll.u32 (!%p336_p9), %s375_s27, 4  ;;  %s1348_s25 = smov (!%p336_p9), 5  }
  0x15   : > { %v1213_v0 = vld [vmem:[%s1685_s1 + $0x38] sm:$0xff]   ;;  %v1345_v1 = vmov 0.0   ;;  %v1214_v2 = vld [vmem:[%s1685_s1 + $0x30] sm:$0xff]   ;;  %vm1346_vm0 = vmmov 0   ;;  %v1215_v3 = vld [vmem:[%s1685_s1 + $0x28] sm:$0xff]   ;;  %s1481_s26 = scalar_select %p384_p10, %s1427_s17, 1 }
  0x16   : > { %1146 = vmatprep.subr.bf16.mxu0 %v1345_v1  ;;  %1162 = vmatprep.mubr.msk.bf16.mxu0 %vm1346_vm0, %v1345_v1  ;;  %v1216_v4 = vld [vmem:[%s1685_s1 + $0x20] sm:$0xff]   ;;  %v1217_v5 = vld [vmem:[%s1685_s1 + $0x18] sm:$0xff]   ;;  %v1218_v6 = vld [vmem:[%s1685_s1 + $0x10] sm:$0xff]   ;;  %v1347_v55 = vmov 0  }
  0x17   : > { %1147 = vmatpush3.bf16.msra.mxu0 %v1213_v0  ;;  %v1219_v7 = vld [vmem:[%s1685_s1 + $0x8] sm:$0xff]   ;;  %s1079_s29 = sshll.u32 %s1481_s26, 2  ;;  %v1220_v8 = vld [vmem:[%s1685_s1] sm:$0xff]   ;;  %797 = vmatprep.mubr.bf16.mxu1 %v1347_v55  ;;  %s1615_s30 = sshll.u32 %s1481_s26, 3 }
  0x18   : > { %1148 = vmatprep.subr.bf16.mxu0 %v1345_v1  ;;  %s387_s20 = scalar_lea.vmem %s1698_s0, %s1079_s29  ;;  %v1083_v10 = vld [vmem:[%s1686_s2] ss:$0 sm:$0xff]  ;;  %v1221_v25 = vld [vmem:[%s1689_s5 + $0xe4] ss:$16 sps:$4 sm:$0xff]   ;;  %v1223_v26 = vld [vmem:[%s1689_s5 + $0xe8] ss:$16 sps:$4 sm:$0xff]   ;;  %1210 = vset.pattern.permute.xlu1 %v1347_v55  ;;  %s395_s18 = scalar_lea.vmem %s1692_s8, %s1615_s30 }
  0x19   : > { %v401_v9 = vld [vmem:[%s387_s20] sm:$0xf]  ;;  %v1225_v27 = vld [vmem:[%s1689_s5 + $0xec] ss:$16 sps:$4 sm:$0xff]   ;;  %v1227_v29 = vld [vmem:[%s1689_s5 + $0xc4] ss:$16 sps:$4 sm:$0xff]   ;;  %765 = vmatprep.subr.bf16.mxu1 %v1221_v25  ;;  %s391_s21 = scalar_lea.vmem %s1691_s7, %s1615_s30 }
  0x1a   : > { %v1226_v28 = vld [vmem:[%s1689_s5 + $0xe0] ss:$16 sps:$4 sm:$0xff]   ;;  %v1231_v30 = vld [vmem:[%s1689_s5 + $0xcc] ss:$16 sps:$4 sm:$0xff]   ;;  %v1229_v31 = vld [vmem:[%s1689_s5 + $0xc8] ss:$16 sps:$4 sm:$0xff]  }
  0x1b   : > { %1149 = vmatpush3.bf16.msra.mxu0 %v1214_v2  ;;  %766 = vmatpush1.bf16.msra.mxu1 %v1226_v28  ;;  %v1232_v32 = vld [vmem:[%s1689_s5 + $0xc0] ss:$16 sps:$4 sm:$0xff]   ;;  %v1233_v37 = vld [vmem:[%s1689_s5 + $0xa4] ss:$16 sps:$4 sm:$0xff]   ;;  %v1237_v38 = vld [vmem:[%s1689_s5 + $0xac] ss:$16 sps:$4 sm:$0xff]  }
  0x1c   : > { %1150 = vmatprep.subr.bf16.mxu0 %v1345_v1  ;;  %767 = vmatprep.subr.bf16.mxu1 %v1227_v29  ;;  %v1235_v39 = vld [vmem:[%s1689_s5 + $0xa8] ss:$16 sps:$4 sm:$0xff]   ;;  %v1238_v40 = vld [vmem:[%s1689_s5 + $0xa0] ss:$16 sps:$4 sm:$0xff]   ;;  %v1239_v41 = vld [vmem:[%s1689_s5 + $0x84] ss:$16 sps:$4 sm:$0xff]  }
  0x1d   : > { %v1241_v42 = vld [vmem:[%s1689_s5 + $0x88] ss:$16 sps:$4 sm:$0xff]   ;;  %v1243_v43 = vld [vmem:[%s1689_s5 + $0x8c] ss:$16 sps:$4 sm:$0xff]   ;;  %v1244_v44 = vld [vmem:[%s1689_s5 + $0x80] ss:$16 sps:$4 sm:$0xff]  }
  0x1e   : > { %v1245_v45 = vld [vmem:[%s1689_s5 + $0x64] ss:$16 sps:$4 sm:$0xff]   ;;  %v1249_v46 = vld [vmem:[%s1689_s5 + $0x6c] ss:$16 sps:$4 sm:$0xff]   ;;  %v1247_v47 = vld [vmem:[%s1689_s5 + $0x68] ss:$16 sps:$4 sm:$0xff]  }
  0x1f   : > { %1151 = vmatpush3.bf16.msra.mxu0 %v1215_v3  ;;  %768 = vmatpush1.bf16.msra.mxu1 %v1232_v32  ;;  %v1250_v48 = vld [vmem:[%s1689_s5 + $0x60] ss:$16 sps:$4 sm:$0xff]   ;;  %v1251_v49 = vld [vmem:[%s1689_s5 + $0x44] ss:$16 sps:$4 sm:$0xff]   ;;  %v1255_v50 = vld [vmem:[%s1689_s5 + $0x4c] ss:$16 sps:$4 sm:$0xff]  }
  0x20   : > { %1152 = vmatprep.subr.bf16.mxu0 %v1345_v1  ;;  %769 = vmatprep.subr.bf16.mxu1 %v1233_v37  ;;  %v1253_v51 = vld [vmem:[%s1689_s5 + $0x48] ss:$16 sps:$4 sm:$0xff]   ;;  %v1256_v52 = vld [vmem:[%s1689_s5 + $0x40] ss:$16 sps:$4 sm:$0xff]   ;;  %v1257_v53 = vld [vmem:[%s1689_s5 + $0x24] ss:$16 sps:$4 sm:$0xff]  }
  0x21   : > { %v1261_v54 = vld [vmem:[%s1689_s5 + $0x2c] ss:$16 sps:$4 sm:$0xff]   ;;  %v1259_v56 = vld [vmem:[%s1689_s5 + $0x28] ss:$16 sps:$4 sm:$0xff]   ;;  %v1262_v57 = vld [vmem:[%s1689_s5 + $0x20] ss:$16 sps:$4 sm:$0xff]  }
  0x22   : > { %v1263_v58 = vld [vmem:[%s1689_s5 + $0x4] ss:$16 sps:$4 sm:$0xff]   ;;  %v1267_v59 = vld [vmem:[%s1689_s5 + $0xc] ss:$16 sps:$4 sm:$0xff]   ;;  %v1265_v60 = vld [vmem:[%s1689_s5 + $0x8] ss:$16 sps:$4 sm:$0xff]  }
  0x23   : > { %1153 = vmatpush3.bf16.msra.mxu0 %v1216_v4  ;;  %770 = vmatpush1.bf16.msra.mxu1 %v1238_v40  ;;  %v1268_v61 = vld [vmem:[%s1689_s5] ss:$16 sps:$4 sm:$0xff]   ;;  %s1610_s29 = scalar_lea.vmem [#allocation2], %s1078_s28  ;;  %s1136_s28 = sshll.u32 %s1427_s17, 8 }
  0x24   : > { %1154 = vmatprep.subr.bf16.mxu0 %v1345_v1  ;;  %771 = vmatprep.subr.bf16.mxu1 %v1239_v41  ;;  %v1092_v3 = vld [vmem:[%s1687_s3] ss:$0 sm:$0xff]  ;;  %s964_s26 = sshll.u32 %s1610_s29, 4  ;;  %s946_s20 = scalar_lea.sflag [#allocation3], %s375_s27  ;;  %s965_s26 = int_to_ptr.vmem [resolvable:$true] %s964_s26 }
  0x25   : > { %v865_v37 = vld [vmem:[%s395_s18] sm:$0xff]  ;;  %s1639_s18 = scalar_lea.hbm %s1693_s9, %s1136_s28 }
  0x26   : > { %vm912_vm1 = vcmp.ne.s32.totalorder %v865_v37, 4294967196 }
  0x27   : > { %1155 = vmatpush3.bf16.msra.mxu0 %v1217_v5  ;;  %772 = vmatpush1.bf16.msra.mxu1 %v1244_v44  ;;  %v1093_v5 = vld [vmem:[%s1688_s4] ss:$0 sm:$0xff] }
  0x28   : > { %1156 = vmatprep.subr.bf16.mxu0 %v1345_v1  ;;  %773 = vmatprep.subr.bf16.mxu1 %v1245_v45 }
  0x2b   : > { %1157 = vmatpush3.bf16.msra.mxu0 %v1218_v6  ;;  %774 = vmatpush1.bf16.msra.mxu1 %v1250_v48 }
  0x2c   : > { %1158 = vmatprep.subr.bf16.mxu0 %v1345_v1  ;;  %775 = vmatprep.subr.bf16.mxu1 %v1251_v49 }
  0x2f   : > { %1159 = vmatpush3.bf16.msra.mxu0 %v1219_v7  ;;  %776 = vmatpush1.bf16.msra.mxu1 %v1256_v52 }
  0x30   : > { %1160 = vmatprep.subr.bf16.mxu0 %v1345_v1  ;;  %777 = vmatprep.subr.bf16.mxu1 %v1257_v53 }
  0x33   : > { %1161 = vmatpush3.bf16.msra.mxu0 %v1220_v8  ;;  %778 = vmatpush1.bf16.msra.mxu1 %v1262_v57 }
  0x34   : > { %806 = vmatprep.subr.bf16.mxu0 %v1225_v27  ;;  %779 = vmatprep.subr.bf16.mxu1 %v1263_v58 }
  0x36   : > { %1163 = vmatmul.mubr.bf16.vlgmr.msra.gmra.mxu0 %v401_v9  ;;  %v585_v9 = vlaneseq }
  0x37   : > { %807 = vmatpush1.bf16.msra.mxu0 %v1223_v26  ;;  %838 = vmatprep.mubr.bf16.mxu0 %v1347_v55 }
  0x38   : > { %808 = vmatprep.subr.bf16.mxu0 %v1231_v30  ;;  %780 = vmatpush1.bf16.msra.mxu1 %v1268_v61 }
  0x3b   : > { %809 = vmatpush1.bf16.msra.mxu0 %v1229_v31 }
  0x3c   : > { %810 = vmatprep.subr.bf16.mxu0 %v1237_v38  ;;  %v1128_v38 = vsel %vm912_vm1, 1.0, %v1345_v1 }
  0x3f   : > { %811 = vmatpush1.bf16.msra.mxu0 %v1235_v39 }
  0x40   : > { %812 = vmatprep.subr.bf16.mxu0 %v1243_v43 }
  0x43   : > { %813 = vmatpush1.bf16.msra.mxu0 %v1241_v42 }
  0x44   : > { %814 = vmatprep.subr.bf16.mxu0 %v1249_v46 }
  0x47   : > { %815 = vmatpush1.bf16.msra.mxu0 %v1247_v47  ;;  %v1623_v47 = vand.u32 127, %v585_v9 }
  0x48   : > { %816 = vmatprep.subr.bf16.mxu0 %v1255_v50 }
  0x49   : > { %v893_v49 = vadd.s32 128, %v1623_v47  ;;  %v894_v50 = vadd.s32 256, %v1623_v47 }
  0x4b   : > { %817 = vmatpush1.bf16.msra.mxu0 %v1253_v51 }
  0x4c   : > { %818 = vmatprep.subr.bf16.mxu0 %v1261_v54 }
  0x4f   : > { %819 = vmatpush1.bf16.msra.mxu0 %v1259_v56  ;;  %v895_v56 = vadd.s32 384, %v1623_v47 }
  0x50   : > { %820 = vmatprep.subr.bf16.mxu0 %v1267_v59 }
  0x53   : > { %821 = vmatpush1.bf16.msra.mxu0 %v1265_v60 }
  0xf6   : > { %v507_v11 = vpop.f32.mrf.mxu0 }
  0xf7   : > { %v508_v12 = vadd.f32 %v1083_v10, %v507_v11  ;;  %v586_v10 = vshrl.u32 %v585_v9, 7 }
  0xf8   : > { %v1164_v13 = vpop.f32.mrf.mxu0 }
  0xf9   : > { %v514_v14 = vmul.f32 0.044715, %v508_v12  ;;  %v513_v22 = vmul.f32 0.5, %v508_v12  ;;  %v587_v11 = vsub.s32 0, %v586_v10  ;;  %v591_v13 = vsub.s32 1, %v586_v10 }
  0xfa   : > { %v510_v15 = vpop.f32.mrf.mxu0 }
  0xfb   : > { %v515_v16 = vmul.f32 %v514_v14, %v508_v12  ;;  %v599_v14 = vsub.s32 3, %v586_v10  ;;  %v583_v15 = vld [vmem:[%s1690_s6] sm:$0xf] }
  0xfc   : > { %v1165_v17 = vpop.f32.mrf.mxu0 }
  0xfd   : > { %v516_v18 = vmul.f32 %v515_v16, %v508_v12  ;;  %v588_v16 = vrot.slane %v583_v15, %v587_v11 }
  0xff   : > { %v517_v19 = vadd.f32 %v516_v18, %v508_v12  ;;  %v595_v12 = vsub.s32 2, %v586_v10  ;;  %v592_v18 = vrot.slane %v583_v15, %v591_v13 }
 0x101   : > { %v518_v20 = vmul.f32 0.7978846, %v517_v19  ;;  %v596_v17 = vrot.slane %v583_v15, %v595_v12  ;;  %v600_v19 = vrot.slane %v583_v15, %v599_v14 }
 0x103   : > { %1269 = vtanh.f32 %v518_v20 }
 0x110   : > { %v1270_v21 = vpop.eup %1269 }
 0x111   : > { %v520_v23 = vadd.f32 1.0, %v1270_v21 }
 0x113   : > { %v521_v24 = vmul.f32 %v520_v23, %v513_v22 }
 0x115   : > { %524 = vadd.xlane.f32.xlu0 %v521_v24 }
 0x19e   : > { %v525_v33 = vpop.xlane.xlu0 %524 }
 0x19f   : > { %v527_v34 = vmul.f32 0.0078125, %v525_v33 }
 0x1a1   : > { %v528_v35 = vsub.f32 %v521_v24, %v527_v34 }
 0x1a3   : > { %v529_v36 = vmul.f32 %v528_v35, %v528_v35 }
 0x1a5   : > { %530 = vadd.xlane.f32.xlu0 %v529_v36 }
 0x22e   : > { %v531_v62 = vpop.xlane.xlu0 %530 }
 0x22f   : > { %v532_v63 = vmul.f32 0.0078125, %v531_v62 }
 0x231   : > { %v533_v0 = vadd.f32 1e-12, %v532_v63 }
 0x233   : > { %1271 = vrsqrt.f32 %v533_v0 }
 0x240   : > { %v1272_v2 = vpop.eup %1271 }
 0x241   : > { %v535_v4 = vmul.f32 %v1272_v2, %v528_v35 }
 0x243   : > { %v542_v6 = vmul.f32 %v1092_v3, %v535_v4  ;;  %v917_v3 = vld [vmem:[%s391_s21] sm:$0xff]  ;;  %v1349_v4 = vmov 5   ;;  %s1283_s21 = scalar_lea.vmem %s965_s26, 256 }
 0x244   : > { %1212 = vset.pattern.permute.xlu0 %v1349_v4  ;;  %p1284_p11 = scmp.ne.s32.totalorder %s965_s26, %s1283_s21 }
 0x245   : > { %v549_v7 = vadd.f32 %v1093_v5, %v542_v6 }
 0x246   : > { %p1285_p12 = pnand %p1284_p11, %p1444_p5 }
 0x247   : > { %v550_v8 = vpack.c.bf16 %v549_v7, %v549_v7 }
 0x248   : > { %p1286_p13 = pneg %p1285_p12 }
 0x249   : > { %798 = vmatmul.mubr.bf16.vlgmr.msra.gmra.mxu1 %v550_v8  ;;  %839 = vmatmul.mubr.bf16.vlgmr.msra.gmra.mxu0 %v550_v8 }
 0x309   : > { %v799_v20 = vpop.f32.mrf.mxu1  ;;  %v840_v21 = vpop.f32.mrf.mxu0 }
 0x30a   : > { %v1606_v24 = vadd.f32 %v799_v20, %v588_v16  ;;  %v841_v25 = vadd.f32 %v840_v21, %v596_v17 }
 0x30b   : > { %v801_v22 = vpop.f32.mrf.mxu1  ;;  %v842_v23 = vpop.f32.mrf.mxu0 }
 0x30c   : > { %v802_v26 = vadd.f32 %v801_v22, %v592_v18  ;;  %v843_v27 = vadd.f32 %v842_v23, %v600_v19 }
 0x30d   : > { %v803_v28 = vpop.f32.mrf.mxu1  ;;  %v844_v29 = vpop.f32.mrf.mxu0 }
 0x30e   : > { %v866_v30 = vmax.f32 %v1606_v24, %v802_v26  ;;  %v867_v31 = vmax.f32 %v841_v25, %v843_v27  ;;  %v1134_v32 = vpack.c.bf16 %v802_v26, %v1606_v24  ;;  %v1135_v33 = vpack.c.bf16 %v843_v27, %v841_v25 }
 0x30f   : > { %v804_v34 = vpop.f32.mrf.mxu1  ;;  %v845_v35 = vpop.f32.mrf.mxu0 }
 0x310   : > { %v868_v36 = vmax.f32 %v866_v30, %v867_v31  ;;  %863 = vst [vmem:[%s1610_s29] sm:$0xff] %v1134_v32  ;;  %864 = vst [vmem:[%s1610_s29 + $0x8] sm:$0xff] %v1135_v33 }
 0x312   : > { %869 = vmax.xlane.f32.xlu1 %v868_v36 }
 0x323   : > { %897 = vperm.xlu1 %1210, %v865_v37  }
 0x327   : > { %928 = vperm.xlu1 %1210, %v1128_v38  }
 0x39b   : > { %v870_v39 = vpop.xlane.xlu1 %869 }
 0x39c   : > { %v871_v40 = vsub.f32 %v1606_v24, %v870_v39  ;;  %v872_v41 = vsub.f32 %v802_v26, %v870_v39  ;;  %v873_v42 = vsub.f32 %v841_v25, %v870_v39  ;;  %v874_v43 = vsub.f32 %v843_v27, %v870_v39 }
 0x39e   : > { %v875_v44 = vmul.f32 1.442695, %v871_v40  ;;  %v877_v45 = vmul.f32 1.442695, %v872_v41  ;;  %v879_v46 = vmul.f32 1.442695, %v873_v42 }
 0x39f   : > { %v881_v48 = vmul.f32 1.442695, %v874_v43  ;;  %v898_v1 = vpop.permute.xlu1 %897 }
 0x3a0   : > { %1273 = vpow2.f32 %v875_v44  ;;  %vm899_vm2 = vcmp.eq.s32.totalorder %v1623_v47, %v898_v1  ;;  %vm900_vm3 = vcmp.eq.s32.totalorder %v893_v49, %v898_v1  ;;  %vm901_vm4 = vcmp.eq.s32.totalorder %v894_v50, %v898_v1 }
 0x3a1   : > { %1275 = vpow2.f32 %v877_v45  ;;  %v903_v51 = vsel %vm899_vm2, %v1606_v24, 0.0  ;;  %v904_v52 = vsel %vm900_vm3, %v802_v26, 0.0  ;;  %v905_v61 = vsel %vm901_vm4, %v841_v25, 0.0 }
 0x3a2   : > { %1277 = vpow2.f32 %v879_v46  ;;  %v907_v57 = vadd.f32 %v904_v52, %v903_v51  ;;  %vm902_vm5 = vcmp.eq.s32.totalorder %v895_v56, %v898_v1 }
 0x3a3   : > { %1279 = vpow2.f32 %v881_v48  ;;  %v906_v0 = vsel %vm902_vm5, %v843_v27, 0.0 }
 0x3a4   : > { %v908_v63 = vadd.f32 %v907_v57, %v905_v61 }
 0x3a6   : > { %v909_v2 = vadd.f32 %v908_v63, %v906_v0 }
 0x3ad   : > { %v1274_v53 = vpop.eup %1273 }
 0x3ae   : > { %v1276_v54 = vpop.eup %1275 }
 0x3af   : > { %v883_v55 = vadd.f32 %v1276_v54, %v1274_v53  ;;  %v1278_v58 = vpop.eup %1277 }
 0x3b0   : > { %v1280_v60 = vpop.eup %1279 }
 0x3b1   : > { %v884_v59 = vadd.f32 %v1278_v58, %v883_v55 }
 0x3b3   : > { %v885_v62 = vadd.f32 %v1280_v60, %v884_v59 }
 0x3b5   : > { %886 = vadd.xlane.f32.xlu0 %v885_v62 }
 0x3b9   : > { %910 = vadd.xlane.f32.xlu0 %v909_v2 }
 0x3cf   : > { %919 = vrot.lane.b32.xlu0 %v917_v3, %s1348_s25  ;;  %s1350_s25 = smov [#allocation2]  }
 0x3d0   : > { %s1287_s17 = sshll.u32 %s1350_s25, 4  ;;  %s1288_s17 = int_to_ptr.vmem [resolvable:$false] %s1287_s17 }
 0x3d1   : > { %s1289_s0 = scalar_lea.vmem %s1288_s17, 512  ;;  %p1290_p0 = scmp.lt.s32.totalorder %s965_s26, %s1288_s17 }
 0x3d2   : > { %p1291_p1 = scmp.lt.s32.totalorder %s1289_s0, %s1283_s21 }
 0x3d4   : > { %p1292_p2 = por %p1291_p1, %p1290_p0 }
 0x3d6   : > { %p1293_p3 = pnand %p1292_p2, %p1286_p13 }
 0x43e   : > { %v887_v5 = vpop.xlane.xlu0 %886 }
 0x43f   : > { %1281 = vlog2.f32 %v887_v5 }
 0x442   : > { %v911_v9 = vpop.xlane.xlu0 %910 }
 0x446   : > { %v920_v12 = vpop.permute.xlu0 %919 }
 0x447   : > { %v922_v13 = vadd.f32 %v920_v12, %v1606_v24 }
 0x44c   : > { %v1282_v6 = vpop.eup %1281 }
 0x44d   : > { %v889_v7 = vmul.f32 0.6931472, %v1282_v6 }
 0x44f   : > { %v890_v8 = vadd.f32 %v889_v7, %v870_v39 }
 0x451   : > { %v915_v10 = vsub.f32 %v890_v8, %v911_v9 }
 0x453   : > { %v916_v11 = vmul.f32 %v1128_v38, %v915_v10 }
 0x455   : > { %934 = vperm.xlu1 %1210, %v916_v11  }
 0x459   : > { %1211 = vset.pattern.permute.xlu1 %v1349_v4 }
 0x45a   : > { %940 = vperm.xlu1 %1211, %v922_v13  }
 0x45b   : > { %1296 = shalt.err (!%p1293_p3)
}
 0x45c   : > { %s1297_s29 = scalar_lea.hbm %s1639_s18, 256  ;;  %s1301_s11 = scalar_lea.hbm %s1693_s9, 512 }
 0x45d   : > { %p1298_p4 = scmp.ne.s32.totalorder %s1639_s18, %s1297_s29  ;;  %p1302_p9 = scmp.lt.s32.totalorder %s1639_s18, %s1693_s9 }
 0x45e   : > { %p1303_p10 = scmp.lt.s32.totalorder %s1301_s11, %s1297_s29 }
 0x45f   : > { %p1299_p7 = pnand %p1298_p4, %p1444_p5 }
 0x460   : > { %p1304_p11 = por %p1303_p10, %p1302_p9 }
 0x461   : > { %p1300_p8 = pneg %p1299_p7 }
 0x463   : > { %p1305_p12 = pnand %p1304_p11, %p1300_p8 }
 0x465   : > { %1308 = shalt.err (!%p1305_p12)
}
 0x466   : > { %1166 = dma.vmem_to_hbm [thread:$0]  (%p1444_p5), %s965_s26, 256, %s1639_s18, %s946_s20   ;;  %v929_v14 = vpop.permute.xlu1 %928  ;;  %vm925_vm6 = vcmp.eq.s32.totalorder %v1623_v47, 2  ;;  %vm924_vm7 = vcmp.eq.s32.totalorder %v1623_v47, 1  ;;  %vm923_vm8 = vcmp.eq.s32.totalorder %v1623_v47, 0 }
 0x467   : > { %v931_v16 = vsel %vm925_vm6, %v929_v14, 0.0  ;;  %s399_s17 = scalar_lea.vmem %s1694_s10, %s1615_s30 }
 0x4d0   : > { %v935_v15 = vpop.permute.xlu1 %934 }
 0x4d1   : > { %v937_v17 = vsel %vm924_vm7, %v935_v15, %v931_v16 }
 0x4d5   : > { %v941_v18 = vpop.permute.xlu1 %940 }
 0x4d6   : > { %v943_v19 = vsel %vm923_vm8, %v941_v18, %v937_v17 }
 0x4d7   : > { %944 = vst [vmem:[%s399_s17] sm:$0xff] %v943_v19 }
 0x4d8 PF: > { %p1172_p5 = scmp.ge.s32.totalorder %s1343_s16, 2  ;;  %s979_s23 = sand.u32 1, %s1331_s13  }
 0x4d9   : > { %s980_s18 = scalar_lea.sflag [#allocation3], %s979_s23 }
 0x4da   : > { %p1169_p13 = pnand %p1172_p5, %p1448_p6 }
 0x4dc   : > { %p1170_p0 = pneg %p1169_p13 }
 0x4de   : > { %1326 = dma.done.wait (%p1170_p0), %s980_s18, 256  }
 0x4df   : > { %1328 = vsyncadd (%p1170_p0), %s980_s18, 4294967040  ;;  %p21_p1 = scmp.ge.s32.totalorder %s1431_s19, 4   ;;  %s1699_s13 = smov %s1335_s14 }
 0x4e0   : > { %s1700_s14 = smov %s1339_s15  ;;  %s1701_s15 = smov %s1442_s22 }
 0x4e1   : > { %s1702_s16 = smov %s1431_s19  ;;  %23 = sbr.rel (!%p21_p1) target bundleno = 5 (0x5), region = 109 }
 0x4e6   :  { %992 = vsyncpa [#allocation3], 1 }
 0x4e7   :  { %994 = vsyncpa [#allocation3 + $0x1], 1 }

// kernel: unimc_forward.6
= control target key start
LH: loop header
LB: loop body
LE: loop exit
PB: predicated region body
PF: predicated region fallthrough
CT: control target
= control target key end

     0   :  { %s1946_s29 = smov 0   ;;  %s2264_s0 = inlined_call_operand.vmem [shape: bf16[2,8,128], index: 0, kind: input, shape index: {}]   ;;  %s2265_s1 = inlined_call_operand.vmem [shape: f32[2,1,8], index: 1, kind: input, shape index: {}]   ;;  %s2266_s2 = inlined_call_operand.vmem [shape: bf16[128,384], index: 2, kind: input, shape index: {}]   ;;  %s2267_s3 = inlined_call_operand.vmem [shape: f32[1,384], index: 3, kind: input, shape index: {}]   ;;  %s2268_s4 = inlined_call_operand.vmem [shape: bf16[128,128], index: 4, kind: input, shape index: {}]   ;;  %s2269_s5 = inlined_call_operand.vmem [shape: f32[1,128], index: 5, kind: input, shape index: {}, may-alias: {5,7,11,13}]   ;;  %s2270_s6 = inlined_call_operand.vmem [shape: f32[1,128], index: 6, kind: input, shape index: {}, may-alias: {6,12}]   ;;  %s2271_s7 = inlined_call_operand.vmem [shape: f32[1,128], index: 7, kind: input, shape index: {}, may-alias: {5,7,11,13}]   ;;  %s2272_s8 = inlined_call_operand.vmem [shape: bf16[128,256], index: 8, kind: input, shape index: {}]   ;;  %s2273_s9 = inlined_call_operand.vmem [shape: f32[1,256], index: 9, kind: input, shape index: {}]   ;;  %s2274_s10 = inlined_call_operand.vmem [shape: bf16[256,128], index: 10, kind: input, shape index: {}]   ;;  %s2275_s11 = inlined_call_operand.vmem [shape: f32[1,128], index: 11, kind: input, shape index: {}, may-alias: {5,7,11,13}]   ;;  %s2276_s12 = inlined_call_operand.vmem [shape: f32[1,128], index: 12, kind: input, shape index: {}, may-alias: {6,12}]   ;;  %s2277_s13 = inlined_call_operand.vmem [shape: f32[1,128], index: 13, kind: input, shape index: {}, may-alias: {5,7,11,13}]   ;;  %s2278_s14 = inlined_call_operand.vmem [shape: bf16[2,8,128], index: 14, kind: output, shape index: {}]  }
   0x1 LB: > { %s1555_s30 = sadd.s32 4294967295, %s1865_s29   ;;  %p1559_p0 = scmp.ge.s32.totalorder %s1865_s29, 1  ;;  %s1865_s29 = sphi %s1946_s29, %s24_s29  }
   0x2   : > { %p419_p1 = scmp.lt.s32.totalorder %s1865_s29, 3 }
   0x4   : > { %p420_p2 = pnand %p1559_p0, %p419_p1 }
   0x5   : > { %p466_p3 = scmp.lt.s32.totalorder (!%p420_p2), %s1555_s30, 1  ;;  %s1870_s15 = smov (!%p420_p2), 64  }
   0x6   : > { %423 = sbr.rel (%p420_p2) target bundleno = 2831 (0xb0f), region = 76 }
   0xb   : > { %v1763_v0 = vld [vmem:[%s2266_s2 + $0xac] ss:$12 sps:$4 sm:$0xff]   ;;  %v1765_v1 = vld [vmem:[%s2266_s2 + $0xa8] ss:$12 sps:$4 sm:$0xff]   ;;  %v1867_v2 = vmov 0   ;;  %v1868_v4 = vmov 0.0   ;;  %v514_v27 = vlaneseq }
   0xc   : > { %689 = vmatprep.mubr.bf16.mxu0 %v1867_v2  ;;  %657 = vmatprep.subr.bf16.mxu0 %v1763_v0  ;;  %v1766_v3 = vld [vmem:[%s2266_s2 + $0x94] ss:$12 sps:$4 sm:$0xff]   ;;  %v1768_v5 = vld [vmem:[%s2266_s2 + $0x90] ss:$12 sps:$4 sm:$0xff]   ;;  %v1771_v7 = vld [vmem:[%s2266_s2 + $0x78] ss:$12 sps:$4 sm:$0xff]  }
   0xd   : > { %1687 = vmatprep.subr.bf16.mxu1 %v1868_v4  ;;  %658 = vmatpush1.bf16.msra.mxu0 %v1765_v1  ;;  %v1769_v6 = vld [vmem:[%s2266_s2 + $0x7c] ss:$12 sps:$4 sm:$0xff]   ;;  %v1772_v8 = vld [vmem:[%s2266_s2 + $0x64] ss:$12 sps:$4 sm:$0xff]   ;;  %v1774_v9 = vld [vmem:[%s2266_s2 + $0x60] ss:$12 sps:$4 sm:$0xff]  }
   0xe   : > { %659 = vmatprep.subr.bf16.mxu0 %v1766_v3  ;;  %s2280_s30 = smov (!%p466_p3, %s1555_s30), 1  ;;  %v1787_v10 = vld [vmem:[%s2266_s2 + $0xb0] ss:$12 sps:$4 sm:$0xff]   ;;  %v1775_v11 = vld [vmem:[%s2266_s2 + $0x4c] ss:$12 sps:$4 sm:$0xff]   ;;  %vm1869_vm0 = vmmov 0  }
   0xf   : > { %1688 = vmatpush3.bf16.msra.mxu1 %v1787_v10  ;;  %v1788_v12 = vld [vmem:[%s2266_s2 + $0x98] ss:$12 sps:$4 sm:$0xff]   ;;  %s1560_s23 = sshll.u32 %s2280_s30, 2  ;;  %v1777_v13 = vld [vmem:[%s2266_s2 + $0x48] ss:$12 sps:$4 sm:$0xff]   ;;  %1703 = vmatprep.mubr.msk.bf16.mxu1 %vm1869_vm0, %v1868_v4  ;;  %v2055_v28 = vshrl.u32 %v514_v27, 7  ;;  %s472_s18 = scalar_lea.vmem %s2265_s1, %s2280_s30 }
  0x10   : > { %1689 = vmatprep.subr.bf16.mxu1 %v1868_v4  ;;  %v1778_v14 = vld [vmem:[%s2266_s2 + $0x34] ss:$12 sps:$4 sm:$0xff]   ;;  %v1780_v15 = vld [vmem:[%s2266_s2 + $0x30] ss:$12 sps:$4 sm:$0xff]   ;;  %v1783_v19 = vld [vmem:[%s2266_s2 + $0x18] ss:$12 sps:$4 sm:$0xff]   ;;  %s469_s19 = scalar_lea.vmem %s2264_s0, %s1560_s23 }
  0x11   : > { %660 = vmatpush1.bf16.msra.mxu0 %v1768_v5  ;;  %v1789_v16 = vld [vmem:[%s2266_s2 + $0x80] ss:$12 sps:$4 sm:$0xff]   ;;  %v1781_v17 = vld [vmem:[%s2266_s2 + $0x1c] ss:$12 sps:$4 sm:$0xff]   ;;  %v1784_v20 = vld [vmem:[%s2266_s2 + $0x4] ss:$12 sps:$4 sm:$0xff]  }
  0x12   : > { %661 = vmatprep.subr.bf16.mxu0 %v1769_v6  ;;  %v1790_v18 = vld [vmem:[%s2266_s2 + $0x68] ss:$12 sps:$4 sm:$0xff]   ;;  %v1791_v21 = vld [vmem:[%s2266_s2 + $0x50] ss:$12 sps:$4 sm:$0xff]   ;;  %v1786_v22 = vld [vmem:[%s2266_s2] ss:$12 sps:$4 sm:$0xff]  }
  0x13   : > { %1690 = vmatpush3.bf16.msra.mxu1 %v1788_v12  ;;  %v1792_v23 = vld [vmem:[%s2266_s2 + $0x38] ss:$12 sps:$4 sm:$0xff]   ;;  %v2034_v24 = vld [vmem:[%s469_s19] sm:$0xf]  ;;  %v1794_v26 = vld [vmem:[%s2266_s2 + $0x8] ss:$12 sps:$4 sm:$0xff]  }
  0x14   : > { %1691 = vmatprep.subr.bf16.mxu1 %v1868_v4  ;;  %v1793_v25 = vld [vmem:[%s2266_s2 + $0x20] ss:$12 sps:$4 sm:$0xff]   ;;  %v516_v29 = vsub.s32 0, %v2055_v28  ;;  %v520_v31 = vsub.s32 1, %v2055_v28  ;;  %vm748_vm1 = vcmask 523264   ;;  %v524_v44 = vsub.s32 2, %v2055_v28 }
  0x15   : > { %662 = vmatpush1.bf16.msra.mxu0 %v1771_v7  ;;  %v512_v30 = vld [vmem:[%s2267_s3] sm:$0x7]  ;;  %vm811_vm2 = vcmask 1043456   ;;  %vm795_vm3 = vcmask 64512  }
  0x16   : > { %663 = vmatprep.subr.bf16.mxu0 %v1772_v8  ;;  %v517_v32 = vrot.slane %v512_v30, %v516_v29  ;;  %v521_v33 = vrot.slane %v512_v30, %v520_v31  ;;  %v525_v45 = vrot.slane %v512_v30, %v524_v44  ;;  %v1586_v53 = vld [vmem:[%s472_s18] ss:$0 sm:$0xff] }
  0x17   : > { %1692 = vmatpush3.bf16.msra.mxu1 %v1789_v16 }
  0x18   : > { %1693 = vmatprep.subr.bf16.mxu1 %v1868_v4 }
  0x19   : > { %664 = vmatpush1.bf16.msra.mxu0 %v1774_v9 }
  0x1a   : > { %665 = vmatprep.subr.bf16.mxu0 %v1775_v11 }
  0x1b   : > { %1694 = vmatpush3.bf16.msra.mxu1 %v1790_v18 }
  0x1c   : > { %1695 = vmatprep.subr.bf16.mxu1 %v1868_v4 }
  0x1d   : > { %666 = vmatpush1.bf16.msra.mxu0 %v1777_v13 }
  0x1e   : > { %667 = vmatprep.subr.bf16.mxu0 %v1778_v14 }
  0x1f   : > { %1696 = vmatpush3.bf16.msra.mxu1 %v1791_v21 }
  0x20   : > { %1697 = vmatprep.subr.bf16.mxu1 %v1868_v4 }
  0x21   : > { %668 = vmatpush1.bf16.msra.mxu0 %v1780_v15 }
  0x22   : > { %669 = vmatprep.subr.bf16.mxu0 %v1781_v17 }
  0x23   : > { %1698 = vmatpush3.bf16.msra.mxu1 %v1792_v23 }
  0x24   : > { %1699 = vmatprep.subr.bf16.mxu1 %v1868_v4 }
  0x25   : > { %670 = vmatpush1.bf16.msra.mxu0 %v1783_v19 }
  0x26   : > { %671 = vmatprep.subr.bf16.mxu0 %v1784_v20 }
  0x27   : > { %1700 = vmatpush3.bf16.msra.mxu1 %v1793_v25 }
  0x28   : > { %1701 = vmatprep.subr.bf16.mxu1 %v1868_v4 }
  0x29   : > { %672 = vmatpush1.bf16.msra.mxu0 %v1786_v22 }
  0x2a   : > { %1731 = vmatprep.subr.bf16.mxu0 %v1868_v4 }
  0x2b   : > { %1702 = vmatpush3.bf16.msra.mxu1 %v1794_v26 }
  0x2c   : > { %690 = vmatmul.mubr.bf16.vlgmr.msra.gmra.mxu0 %v2034_v24  ;;  %1707 = vmatprep.subr.bf16.mxu1 %v1868_v4 }
  0x2d   : > { %1747 = vmatprep.mubr.msk.bf16.mxu0 %vm1869_vm0, %v1868_v4 }
  0x2e   : > { %1704 = vmatmul.mubr.bf16.vlgmr.msra.gmra.mxu1 %v2034_v24 }
  0x2f   : > { %1709 = vmatprep.mubr.msk.bf16.mxu1 %vm1869_vm0, %v1868_v4 }
  0xec   : > { %v691_v34 = vpop.f32.mrf.mxu0 }
  0xed   : > { %v692_v35 = vadd.f32 %v691_v34, %v517_v32 }
  0xee   : > { %v693_v36 = vpop.f32.mrf.mxu0  ;;  %v732_v46 = vpop.f32.mrf.mxu1 }
  0xef   : > { %v694_v37 = vadd.f32 %v693_v36, %v521_v33  ;;  %v738_v39 = vmul.f32 0.125, %v692_v35  ;;  %v733_v47 = vadd.f32 %v732_v46, %v525_v45  ;;  %v1795_v35 = vld [vmem:[%s2268_s4 + $0x38] sm:$0xff]   ;;  %v1796_v36 = vld [vmem:[%s2268_s4 + $0x30] sm:$0xff]  }
  0xf0   : > { %v695_v38 = vpop.f32.mrf.mxu0  ;;  %v1705_v48 = vpop.f32.mrf.mxu1  ;;  %1732 = vmatpush3.bf16.msra.mxu0 %v1795_v35  ;;  %v1834_v35 = vld [vmem:[%s2274_s10 + $0x20] sm:$0xff]  }
  0xf1   : > { %v740_v40 = vpack.c.bf16 %v694_v37, %v694_v37  ;;  %v739_v43 = vpack.c.bf16 %v738_v39, %v738_v39  ;;  %v741_v49 = vpack.c.bf16 %v733_v47, %v733_v47  ;;  %1733 = vmatprep.subr.bf16.mxu0 %v1868_v4  ;;  %v1797_v37 = vld [vmem:[%s2268_s4 + $0x28] sm:$0xff]   ;;  %v1799_v38 = vld [vmem:[%s2268_s4 + $0x18] sm:$0xff]   ;;  %v1800_v39 = vld [vmem:[%s2268_s4 + $0x10] sm:$0xff]  }
  0xf2   : > { %v696_v41 = vpop.f32.mrf.mxu0  ;;  %v735_v50 = vpop.f32.mrf.mxu1 }
  0xf3   : > { %v753_v42 = vsel %vm748_vm1, %v740_v40, 0  ;;  %860 = vrot.lane.b32.xlu1 %v740_v40, %s1870_s15  ;;  %v813_v51 = vsel %vm811_vm2, %v741_v49, 0  ;;  %v1801_v40 = vld [vmem:[%s2268_s4 + $0x8] sm:$0xff]   ;;  %v1802_v41 = vld [vmem:[%s2268_s4] sm:$0xff]  }
  0xf4   : > { %1708 = vmatpush3.bf16.xpose.msra.mxu1 %v753_v42  ;;  %v1706_v52 = vpop.f32.mrf.mxu1  ;;  %1734 = vmatpush3.bf16.msra.mxu0 %v1796_v36  ;;  %v1591_v50 = vld [vmem:[%s2269_s5] ss:$0 sm:$0xff]  ;;  %v1835_v36 = vld [vmem:[%s2274_s10 + $0x58] sm:$0xff]  }
  0xf5   : > { %1713 = vmatprep.subr.bf16.mxu1 %v1868_v4  ;;  %1735 = vmatprep.subr.bf16.mxu0 %v1868_v4 }
  0xf7   : > { %857 = vrot.lane.b32.xlu1 %v739_v43, %s1870_s15 }
  0xf8   : > { %1736 = vmatpush3.bf16.msra.mxu0 %v1797_v37  ;;  %v1836_v37 = vld [vmem:[%s2274_s10 + $0x18] sm:$0xff]  }
  0xf9   : > { %1737 = vmatprep.subr.bf16.mxu0 %v1868_v4 }
  0xfb   : > { %1710 = vmatmul.mubr.msk.bf16.vlgmr.msra.gmra.mxu1 %vm748_vm1, %v739_v43 }
  0xfc   : > { %1715 = vmatprep.mubr.msk.bf16.mxu1 %vm1869_vm0, %v1868_v4  ;;  %1714 = vmatpush3.bf16.msra.mxu1 %v813_v51  ;;  %v1088_v51 = vunpack.c.l.bf16 %v2034_v24  ;;  %v1806_v24 = vld [vmem:[%s2272_s8 + $0x60] ss:$8 sps:$4 sm:$0xff]  }
  0xfd   : > { %1719 = vmatprep.subr.bf16.mxu1 %v1868_v4 }
 0x165   : > { %v861_v6 = vpop.permute.xlu1 %860 }
 0x166   : > { %v866_v8 = vsel %vm748_vm1, %v861_v6, 0  ;;  %v1817_v6 = vld [vmem:[%s2272_s8 + $0x34] ss:$8 sps:$4 sm:$0xff]  }
 0x169   : > { %v858_v9 = vpop.permute.xlu1 %857 }
 0x1bb   : > { %v789_v54 = vpop.f32.mrf.mxu1 }
 0x1bc   : > { %v790_v55 = vadd.f32 %v1586_v53, %v789_v54 }
 0x1bd   : > { %v1711_v56 = vpop.f32.mrf.mxu1 }
 0x1be   : > { %v796_v57 = vsel %vm795_vm3, %v790_v55, -inf }
 0x1bf   : > { %797 = vmax.xlane.f32.xlu0 %v796_v57  ;;  %v792_v58 = vpop.f32.mrf.mxu1  ;;  %v1803_v57 = vld [vmem:[%s2272_s8 + $0x70] ss:$8 sps:$4 sm:$0xff]  }
 0x1c0   : > { %v1805_v58 = vld [vmem:[%s2272_s8 + $0x74] ss:$8 sps:$4 sm:$0xff]  }
 0x1c1   : > { %v1712_v59 = vpop.f32.mrf.mxu1 }
 0x1c2   : > { %v1808_v59 = vld [vmem:[%s2272_s8 + $0x64] ss:$8 sps:$4 sm:$0xff]  }
 0x248   : > { %v798_v60 = vpop.xlane.xlu0 %797 }
 0x249   : > { %v799_v61 = vsub.f32 %v790_v55, %v798_v60 }
 0x24b   : > { %v800_v62 = vmul.f32 1.442695, %v799_v61 }
 0x24d   : > { %1843 = vpow2.f32 %v800_v62 }
 0x25a   : > { %v1844_v63 = vpop.eup %1843 }
 0x25b   : > { %v802_v0 = vsel %vm795_vm3, %v1844_v63, 0.0 }
 0x25c   : > { %803 = vadd.xlane.f32.xlu0 %v802_v0  ;;  %v1811_v0 = vld [vmem:[%s2272_s8 + $0x54] ss:$8 sps:$4 sm:$0xff]  }
 0x2e5   : > { %v804_v1 = vpop.xlane.xlu0 %803 }
 0x2e6   : > { %1845 = vrcp.f32 %v804_v1  ;;  %v1809_v1 = vld [vmem:[%s2272_s8 + $0x50] ss:$8 sps:$4 sm:$0xff]  }
 0x2f3   : > { %v1846_v3 = vpop.eup %1845 }
 0x2f4   : > { %v806_v5 = vmul.f32 %v1846_v3, %v1844_v63  ;;  %v1812_v3 = vld [vmem:[%s2272_s8 + $0x40] ss:$8 sps:$4 sm:$0xff]  }
 0x2f6   : > { %v807_v7 = vpack.c.bf16 %v806_v5, %v806_v5  ;;  %v1814_v5 = vld [vmem:[%s2272_s8 + $0x44] ss:$8 sps:$4 sm:$0xff]  }
 0x2f8   : > { %1716 = vmatmul.mubr.msk.bf16.vlgmr.msra.gmra.mxu1 %vm795_vm3, %v807_v7  ;;  %v1815_v7 = vld [vmem:[%s2272_s8 + $0x30] ss:$8 sps:$4 sm:$0xff]  }
 0x2f9   : > { %1720 = vmatpush3.bf16.xpose.msra.mxu1 %v866_v8  ;;  %1721 = vmatprep.mubr.msk.bf16.mxu1 %vm1869_vm0, %v1868_v4  ;;  %v1820_v8 = vld [vmem:[%s2272_s8 + $0x24] ss:$8 sps:$4 sm:$0xff]  }
 0x2fa   : > { %1725 = vmatprep.subr.bf16.mxu1 %v1868_v4 }
 0x300   : > { %1722 = vmatmul.mubr.msk.bf16.vlgmr.msra.gmra.mxu1 %vm748_vm1, %v858_v9  ;;  %v1818_v9 = vld [vmem:[%s2272_s8 + $0x20] ss:$8 sps:$4 sm:$0xff]  }
 0x301   : > { %1727 = vmatprep.mubr.msk.bf16.mxu1 %vm1869_vm0, %v1868_v4 }
 0x3b8   : > { %v849_v10 = vpop.f32.mrf.mxu1 }
 0x3b9   : > { %v855_v47 = vpack.c.bf16 %v849_v10, %v849_v10  ;;  %v1823_v10 = vld [vmem:[%s2272_s8 + $0x14] ss:$8 sps:$4 sm:$0xff]  }
 0x3ba   : > { %v1717_v11 = vpop.f32.mrf.mxu1 }
 0x3bb   : > { %v1821_v11 = vld [vmem:[%s2272_s8 + $0x10] ss:$8 sps:$4 sm:$0xff]  }
 0x3bc   : > { %v852_v12 = vpop.f32.mrf.mxu1 }
 0x3bd   : > { %v1826_v12 = vld [vmem:[%s2272_s8 + $0x4] ss:$8 sps:$4 sm:$0xff]  }
 0x3be   : > { %v1718_v13 = vpop.f32.mrf.mxu1 }
 0x3bf   : > { %v1824_v13 = vld [vmem:[%s2272_s8] ss:$8 sps:$4 sm:$0xff]  }
 0x3c0   : > { %v902_v14 = vpop.f32.mrf.mxu1 }
 0x3c1   : > { %v903_v15 = vadd.f32 %v1586_v53, %v902_v14 }
 0x3c2   : > { %v1723_v16 = vpop.f32.mrf.mxu1 }
 0x3c3   : > { %v908_v17 = vsel %vm795_vm3, %v903_v15, -inf }
 0x3c4   : > { %909 = vmax.xlane.f32.xlu0 %v908_v17  ;;  %v905_v18 = vpop.f32.mrf.mxu1 }
 0x3c5   : > { %v1600_v18 = vld [vmem:[%s2270_s6] ss:$0 sm:$0xff] }
 0x3c6   : > { %v1724_v19 = vpop.f32.mrf.mxu1 }
 0x3da   : > { %921 = vrot.lane.b32.xlu0 %v741_v49, %s1870_s15 }
 0x44d   : > { %v910_v20 = vpop.xlane.xlu0 %909 }
 0x44e   : > { %v911_v21 = vsub.f32 %v903_v15, %v910_v20  ;;  %v1601_v20 = vld [vmem:[%s2271_s7] ss:$0 sm:$0xff] }
 0x450   : > { %v912_v22 = vmul.f32 1.442695, %v911_v21 }
 0x451   : > { %v922_v23 = vpop.permute.xlu0 %921 }
 0x452   : > { %1847 = vpow2.f32 %v912_v22  ;;  %v927_v25 = vsel %vm811_vm2, %v922_v23, 0 }
 0x453   : > { %1726 = vmatpush3.bf16.msra.mxu1 %v927_v25  ;;  %v1827_v25 = vld [vmem:[%s2274_s10 + $0x78] sm:$0xff]  }
 0x454   : > { %1227 = vmatprep.subr.bf16.mxu1 %v1805_v58 }
 0x45f   : > { %v1848_v26 = vpop.eup %1847 }
 0x460   : > { %v914_v27 = vsel %vm795_vm3, %v1848_v26, 0.0 }
 0x461   : > { %915 = vadd.xlane.f32.xlu1 %v914_v27  ;;  %v1829_v27 = vld [vmem:[%s2274_s10 + $0x70] sm:$0xff]  }
 0x4ea   : > { %v916_v30 = vpop.xlane.xlu1 %915 }
 0x4eb   : > { %1849 = vrcp.f32 %v916_v30  ;;  %v1830_v30 = vld [vmem:[%s2274_s10 + $0x30] sm:$0xff]  }
 0x4f8   : > { %v1850_v32 = vpop.eup %1849 }
 0x4f9   : > { %v918_v33 = vmul.f32 %v1850_v32, %v1848_v26  ;;  %v1828_v26 = vld [vmem:[%s2274_s10 + $0x38] sm:$0xff]   ;;  %v1831_v32 = vld [vmem:[%s2274_s10 + $0x68] sm:$0xff]  }
 0x4fb   : > { %v919_v34 = vpack.c.bf16 %v918_v33, %v918_v33  ;;  %v1832_v33 = vld [vmem:[%s2274_s10 + $0x28] sm:$0xff]  }
 0x4fd   : > { %1728 = vmatmul.mubr.msk.bf16.vlgmr.msra.gmra.mxu1 %vm795_vm3, %v919_v34  ;;  %v1833_v34 = vld [vmem:[%s2274_s10 + $0x60] sm:$0xff]  }
 0x4fe   : > { %1259 = vmatprep.mubr.bf16.mxu1 %v1867_v2  ;;  %v1798_v2 = vld [vmem:[%s2268_s4 + $0x20] sm:$0xff]   ;;  %1228 = vmatpush1.bf16.msra.mxu1 %v1803_v57 }
 0x4ff   : > { %1738 = vmatpush3.bf16.msra.mxu0 %v1798_v2  ;;  %1229 = vmatprep.subr.bf16.mxu1 %v1808_v59  ;;  %v1837_v2 = vld [vmem:[%s2274_s10 + $0x50] sm:$0xff]  }
 0x500   : > { %1739 = vmatprep.subr.bf16.mxu0 %v1868_v4 }
 0x502   : > { %1230 = vmatpush1.bf16.msra.mxu1 %v1806_v24 }
 0x503   : > { %1740 = vmatpush3.bf16.msra.mxu0 %v1799_v38  ;;  %1231 = vmatprep.subr.bf16.mxu1 %v1811_v0  ;;  %v1838_v38 = vld [vmem:[%s2274_s10 + $0x10] sm:$0xff]  }
 0x504   : > { %1741 = vmatprep.subr.bf16.mxu0 %v1868_v4 }
 0x506   : > { %1232 = vmatpush1.bf16.msra.mxu1 %v1809_v1 }
 0x507   : > { %1742 = vmatpush3.bf16.msra.mxu0 %v1800_v39  ;;  %1233 = vmatprep.subr.bf16.mxu1 %v1814_v5  ;;  %v1839_v39 = vld [vmem:[%s2274_s10 + $0x48] sm:$0xff]  }
 0x508   : > { %1743 = vmatprep.subr.bf16.mxu0 %v1868_v4 }
 0x50a   : > { %1234 = vmatpush1.bf16.msra.mxu1 %v1812_v3 }
 0x50b   : > { %1744 = vmatpush3.bf16.msra.mxu0 %v1801_v40  ;;  %1235 = vmatprep.subr.bf16.mxu1 %v1817_v6  ;;  %v1840_v40 = vld [vmem:[%s2274_s10 + $0x8] sm:$0xff]   ;;  %v1618_v6 = vld [vmem:[%s2275_s11] ss:$0 sm:$0xff] }
 0x50c   : > { %1745 = vmatprep.subr.bf16.mxu0 %v1868_v4 }
 0x50e   : > { %1236 = vmatpush1.bf16.msra.mxu1 %v1815_v7 }
 0x50f   : > { %1746 = vmatpush3.bf16.msra.mxu0 %v1802_v41  ;;  %1237 = vmatprep.subr.bf16.mxu1 %v1820_v8  ;;  %v1841_v41 = vld [vmem:[%s2274_s10 + $0x40] sm:$0xff]  }
 0x510   : > { %1665 = vmatprep.subr.bf16.mxu0 %v1827_v25 }
 0x512   : > { %1238 = vmatpush1.bf16.msra.mxu1 %v1818_v9 }
 0x513   : > { %1239 = vmatprep.subr.bf16.mxu1 %v1823_v10 }
 0x516   : > { %1240 = vmatpush1.bf16.msra.mxu1 %v1821_v11 }
 0x517   : > { %1241 = vmatprep.subr.bf16.mxu1 %v1826_v12 }
 0x51a   : > { %1242 = vmatpush1.bf16.msra.mxu1 %v1824_v13 }
 0x5bd   : > { %v963_v42 = vpop.f32.mrf.mxu1 }
 0x5be   : > { %v969_v43 = vpack.c.bf16 %v963_v42, %v963_v42  ;;  %v1842_v42 = vld [vmem:[%s2274_s10] sm:$0xff]  }
 0x5bf   : > { %v1729_v44 = vpop.f32.mrf.mxu1 }
 0x5c0   : > { %971 = vrot.lane.b32.xlu0 %v969_v43, %s1870_s15  ;;  %v1135_v43 = vld [vmem:[%s2273_s9] sm:$0x3]  ;;  %s476_s15 = scalar_lea.vmem %s2278_s14, %s1560_s23 }
 0x5c1   : > { %v966_v45 = vpop.f32.mrf.mxu1  ;;  %v1140_v44 = vrot.slane %v1135_v43, %v516_v29 }
 0x5c2   : > { %v1144_v45 = vrot.slane %v1135_v43, %v520_v31 }
 0x5c3   : > { %v1730_v46 = vpop.f32.mrf.mxu1 }
 0x632   : > { %v972_v48 = vpop.permute.xlu0 %971 }
 0x633   : > { %v975_v49 = vsel %vm748_vm1, %v855_v47, %v972_v48 }
 0x634   : > { %1748 = vmatmul.mubr.bf16.vlgmr.msra.gmra.mxu0 %v975_v49 }
 0x635   : > { %1666 = vmatpush3.bf16.msra.mxu0 %v1828_v26 }
 0x636   : > { %1667 = vmatprep.subr.bf16.mxu0 %v1829_v27 }
 0x639   : > { %1668 = vmatpush3.bf16.msra.mxu0 %v1830_v30 }
 0x63a   : > { %1669 = vmatprep.subr.bf16.mxu0 %v1831_v32 }
 0x63d   : > { %1670 = vmatpush3.bf16.msra.mxu0 %v1832_v33 }
 0x63e   : > { %1671 = vmatprep.subr.bf16.mxu0 %v1833_v34 }
 0x641   : > { %1672 = vmatpush3.bf16.msra.mxu0 %v1834_v35 }
 0x642   : > { %1673 = vmatprep.subr.bf16.mxu0 %v1835_v36 }
 0x645   : > { %1674 = vmatpush3.bf16.msra.mxu0 %v1836_v37 }
 0x646   : > { %1675 = vmatprep.subr.bf16.mxu0 %v1837_v2 }
 0x649   : > { %1676 = vmatpush3.bf16.msra.mxu0 %v1838_v38 }
 0x64a   : > { %1677 = vmatprep.subr.bf16.mxu0 %v1839_v39 }
 0x64d   : > { %1678 = vmatpush3.bf16.msra.mxu0 %v1840_v40 }
 0x64e   : > { %1679 = vmatprep.subr.bf16.mxu0 %v1841_v41 }
 0x651   : > { %1680 = vmatpush3.bf16.msra.mxu0 %v1842_v42 }
 0x6f4   : > { %v1082_v4 = vpop.f32.mrf.mxu0 }
 0x6f5   : > { %v1083_v52 = vadd.f32 %v1591_v50, %v1082_v4 }
 0x6f6   : > { %v1749_v53 = vpop.f32.mrf.mxu0 }
 0x6f7   : > { %v1089_v54 = vadd.f32 %v1088_v51, %v1083_v52 }
 0x6f8   : > { %v1085_v55 = vpop.f32.mrf.mxu0 }
 0x6f9   : > { %1092 = vadd.xlane.f32.xlu0 %v1089_v54 }
 0x6fa   : > { %v1750_v56 = vpop.f32.mrf.mxu0 }
 0x782   : > { %v1093_v60 = vpop.xlane.xlu0 %1092 }
 0x783   : > { %v1095_v61 = vmul.f32 0.0078125, %v1093_v60 }
 0x785   : > { %v1096_v62 = vsub.f32 %v1089_v54, %v1095_v61 }
 0x787   : > { %v1097_v63 = vmul.f32 %v1096_v62, %v1096_v62 }
 0x789   : > { %1098 = vadd.xlane.f32.xlu1 %v1097_v63 }
 0x812   : > { %v1099_v14 = vpop.xlane.xlu1 %1098 }
 0x813   : > { %v1100_v15 = vmul.f32 0.0078125, %v1099_v14 }
 0x815   : > { %v1101_v16 = vadd.f32 1e-12, %v1100_v15 }
 0x817   : > { %1851 = vrsqrt.f32 %v1101_v16 }
 0x824   : > { %v1852_v17 = vpop.eup %1851 }
 0x825   : > { %v1103_v19 = vmul.f32 %v1852_v17, %v1096_v62 }
 0x827   : > { %v1110_v21 = vmul.f32 %v1600_v18, %v1103_v19 }
 0x829   : > { %v2187_v22 = vadd.f32 %v1601_v20, %v1110_v21  ;;  %v1635_v21 = vld [vmem:[%s2276_s12] ss:$0 sm:$0xff] }
 0x82b   : > { %v1118_v23 = vpack.c.bf16 %v2187_v22, %v2187_v22 }
 0x82d   : > { %1260 = vmatmul.mubr.bf16.vlgmr.msra.gmra.mxu1 %v1118_v23 }
 0x8ed   : > { %v1261_v46 = vpop.f32.mrf.mxu1 }
 0x8ee   : > { %v1262_v47 = vadd.f32 %v1261_v46, %v1140_v44 }
 0x8ef   : > { %v1263_v48 = vpop.f32.mrf.mxu1 }
 0x8f0   : > { %v1270_v49 = vmul.f32 0.044715, %v1262_v47  ;;  %v1264_v50 = vadd.f32 %v1263_v48, %v1144_v45  ;;  %v1268_v60 = vmul.f32 0.5, %v1262_v47 }
 0x8f1   : > { %v1265_v51 = vpop.f32.mrf.mxu1 }
 0x8f2   : > { %v1272_v4 = vmul.f32 %v1270_v49, %v1262_v47  ;;  %v1271_v52 = vmul.f32 0.044715, %v1264_v50  ;;  %v1269_v61 = vmul.f32 0.5, %v1264_v50 }
 0x8f3   : > { %v1266_v53 = vpop.f32.mrf.mxu1 }
 0x8f4   : > { %v1274_v54 = vmul.f32 %v1272_v4, %v1262_v47  ;;  %v1273_v55 = vmul.f32 %v1271_v52, %v1264_v50 }
 0x8f6   : > { %v1276_v56 = vadd.f32 %v1274_v54, %v1262_v47  ;;  %v1275_v57 = vmul.f32 %v1273_v55, %v1264_v50 }
 0x8f8   : > { %v1278_v58 = vmul.f32 0.7978846, %v1276_v56  ;;  %v1277_v59 = vadd.f32 %v1275_v57, %v1264_v50 }
 0x8fa   : > { %v1279_v24 = vmul.f32 0.7978846, %v1277_v59  ;;  %1853 = vtanh.f32 %v1278_v58 }
 0x8fc   : > { %1855 = vtanh.f32 %v1279_v24 }
 0x907   : > { %v1854_v28 = vpop.eup %1853 }
 0x908   : > { %v1282_v29 = vadd.f32 1.0, %v1854_v28 }
 0x909   : > { %v1856_v31 = vpop.eup %1855 }
 0x90a   : > { %v1283_v62 = vadd.f32 1.0, %v1856_v31  ;;  %v1284_v63 = vmul.f32 %v1282_v29, %v1268_v60 }
 0x90c   : > { %v1285_v0 = vmul.f32 %v1283_v62, %v1269_v61  ;;  %v1286_v3 = vpack.c.bf16 %v1284_v63, %v1284_v63 }
 0x90e   : > { %v1287_v1 = vpack.c.bf16 %v1285_v0, %v1285_v0 }
 0x910   : > { %1455 = vmatprep.mubr.bf16.mxu0 %v1287_v1 }
 0x911   : > { %1456 = vmatmul.mubr.bf16.vlgmr.msra.gmra.mxu0 %v1286_v3 }
 0x9d1   : > { %v1681_v5 = vpop.f32.mrf.mxu0 }
 0x9d3   : > { %v1682_v7 = vpop.f32.mrf.mxu0 }
 0x9d4   : > { %v1683_v8 = vadd.f32 %v1682_v7, %v1681_v5 }
 0x9d5   : > { %v1684_v9 = vpop.f32.mrf.mxu0 }
 0x9d6   : > { %v1458_v10 = vadd.f32 %v1683_v8, %v1618_v6 }
 0x9d7   : > { %v1685_v11 = vpop.f32.mrf.mxu0 }
 0x9d8   : > { %v1463_v12 = vadd.f32 %v1458_v10, %v2187_v22  ;;  %v1636_v22 = vld [vmem:[%s2277_s13] ss:$0 sm:$0xff] }
 0x9da   : > { %1466 = vadd.xlane.f32.xlu1 %v1463_v12 }
 0xa63   : > { %v1467_v13 = vpop.xlane.xlu1 %1466 }
 0xa64   : > { %v1468_v14 = vmul.f32 0.0078125, %v1467_v13 }
 0xa66   : > { %v1469_v15 = vsub.f32 %v1463_v12, %v1468_v14 }
 0xa68   : > { %v1470_v16 = vmul.f32 %v1469_v15, %v1469_v15 }
 0xa6a   : > { %1471 = vadd.xlane.f32.xlu1 %v1470_v16 }
 0xaf3   : > { %v1472_v17 = vpop.xlane.xlu1 %1471 }
 0xaf4   : > { %v1473_v18 = vmul.f32 0.0078125, %v1472_v17 }
 0xaf6   : > { %v1474_v19 = vadd.f32 1e-12, %v1473_v18 }
 0xaf8   : > { %1857 = vrsqrt.f32 %v1474_v19 }
 0xb05   : > { %v1858_v20 = vpop.eup %1857 }
 0xb06   : > { %v1476_v23 = vmul.f32 %v1858_v20, %v1469_v15 }
 0xb08   : > { %v1483_v25 = vmul.f32 %v1635_v21, %v1476_v23 }
 0xb0a   : > { %v1490_v26 = vadd.f32 %v1636_v22, %v1483_v25 }
 0xb0c   : > { %v1491_v27 = vpack.c.bf16 %v1490_v26, %v1490_v26 }
 0xb0e   : > { %1492 = vst [vmem:[%s476_s15] sm:$0xf] %v1491_v27 }
 0xb0f PF: > { %s24_s29 = sadd.s32 1, %s1865_s29  }
 0xb10   : > { %p21_p4 = scmp.ge.s32.totalorder %s24_s29, 4  }
 0xb12   :  { %23 = sbr.rel (!%p21_p4) target bundleno = 1 (0x1), region = 109 }

// kernel: unimc_forward.5
= control target key start
LH: loop header
LB: loop body
LE: loop exit
PB: predicated region body
PF: predicated region fallthrough
CT: control target
= control target key end

     0   :  { %19 = vsyncpa [#allocation3], 0  ;;  %s2380_s0 = inlined_call_operand.vmem [shape: bf16[2,8,128], index: 0, kind: input, shape index: {}]   ;;  %s2381_s1 = inlined_call_operand.vmem [shape: f32[2,1,8], index: 1, kind: input, shape index: {}]   ;;  %s2382_s2 = inlined_call_operand.vmem [shape: bf16[128,384], index: 2, kind: input, shape index: {}]   ;;  %s2383_s3 = inlined_call_operand.vmem [shape: f32[1,384], index: 3, kind: input, shape index: {}]   ;;  %s2384_s4 = inlined_call_operand.hbm [shape: bf16[128,128], index: 4, kind: input, shape index: {}]   ;;  %s2385_s5 = inlined_call_operand.vmem [shape: f32[1,128], index: 5, kind: input, shape index: {}, may-alias: {5,7,11,13}]   ;;  %s2386_s6 = inlined_call_operand.vmem [shape: f32[1,128], index: 6, kind: input, shape index: {}, may-alias: {6,12}]   ;;  %s2387_s7 = inlined_call_operand.vmem [shape: f32[1,128], index: 7, kind: input, shape index: {}, may-alias: {5,7,11,13}]   ;;  %s2388_s8 = inlined_call_operand.vmem [shape: bf16[128,256], index: 8, kind: input, shape index: {}]   ;;  %s2389_s9 = inlined_call_operand.vmem [shape: f32[1,256], index: 9, kind: input, shape index: {}]   ;;  %s2390_s10 = inlined_call_operand.hbm [shape: bf16[256,128], index: 10, kind: input, shape index: {}]   ;;  %s2391_s11 = inlined_call_operand.vmem [shape: f32[1,128], index: 11, kind: input, shape index: {}, may-alias: {5,7,11,13}]   ;;  %s2392_s12 = inlined_call_operand.vmem [shape: f32[1,128], index: 12, kind: input, shape index: {}, may-alias: {6,12}]   ;;  %s2393_s13 = inlined_call_operand.vmem [shape: f32[1,128], index: 13, kind: input, shape index: {}, may-alias: {5,7,11,13}]   ;;  %s2394_s14 = inlined_call_operand.vmem [shape: bf16[2,8,128], index: 14, kind: output, shape index: {}]  }
   0x1   :  { %20 = vsyncpa [#allocation5], 0  ;;  %s2089_s29 = smov 0  }
   0x2 LB: > { %s2095_s30 = sadd.s32 4294967295, %s2004_s29   ;;  %p1609_p0 = scmp.ge.s32.totalorder %s2004_s29, 1  ;;  %s2004_s29 = sphi %s2089_s29, %s26_s29  }
   0x3   : > { %p361_p1 = scmp.lt.s32.totalorder %s2004_s29, 3  ;;  %s2006_s15 = smov [#allocation2]  }
   0x4   : > { %s379_s16 = sshll.u32 %s2006_s15, 4  ;;  %p1822_p3 = scmp.eq.s32.totalorder %s2095_s30, 0  ;;  %s380_s16 = int_to_ptr.vmem [resolvable:$true] %s379_s16 }
   0x5   : > { %p2099_p2 = pnand %p1609_p0, %p361_p1  ;;  %s2007_s18 = smov [#allocation4]  }
   0x6   : > { %s407_s19 = sshll.u32 %s2007_s18, 4  ;;  %s1949_s21 = scalar_lea.vmem %s380_s16, 1024  ;;  %s408_s19 = int_to_ptr.vmem [resolvable:$true] %s407_s19 }
   0x7   : > { %p1815_p4 = pneg %p2099_p2  ;;  %p1950_p7 = scmp.ne.s32.totalorder %s380_s16, %s1949_s21 }
   0x8   : > { %p1957_p10 = scmp.lt.s32.totalorder %s380_s16, %s380_s16  ;;  %p1958_p11 = scmp.lt.s32.totalorder %s1949_s21, %s1949_s21 }
   0x9   : > { %p2108_p5 = pnand %p1822_p3, %p1815_p4 }
   0xa   : > { %p1959_p12 = por %p1958_p11, %p1957_p10 }
   0xb   : > { %p1940_p6 = pneg %p2108_p5 }
   0xd   : > { %p1952_p8 = pnand %p1950_p7, %p1940_p6 }
   0xf   : > { %p1953_p9 = pneg %p1952_p8 }
  0x11   : > { %p1960_p13 = pnand %p1959_p12, %p1953_p9 }
  0x13   : > { %1963 = shalt.err (!%p1960_p13)
}
  0x14   : > { %s2008_s22 = smov 64   ;;  %s2009_s23 = smov 4  }
  0x15   : > { %1818 = dma.hbm_to_vmem [thread:$0]  (!%p2108_p5), %s2384_s4, 1024, %s380_s16, [#allocation3], %s2008_s22, %s2008_s22, %s2009_s23  }
  0x16   : > { %s1975_s26 = scalar_lea.vmem %s408_s19, 2048  ;;  %p1983_p7 = scmp.lt.s32.totalorder %s408_s19, %s408_s19 }
  0x17   : > { %p1976_p0 = scmp.ne.s32.totalorder %s408_s19, %s1975_s26  ;;  %p1984_p8 = scmp.lt.s32.totalorder %s1975_s26, %s1975_s26 }
  0x19   : > { %p1978_p1 = pnand %p1976_p0, %p1940_p6  ;;  %p1985_p10 = por %p1984_p8, %p1983_p7 }
  0x1b   : > { %p1979_p4 = pneg %p1978_p1 }
  0x1d   : > { %p1986_p9 = pnand %p1985_p10, %p1979_p4 }
  0x1f   : > { %1989 = shalt.err (!%p1986_p9)
}
  0x20   : > { %1821 = dma.hbm_to_vmem [thread:$0]  (!%p2108_p5), %s2390_s10, 2048, %s408_s19, [#allocation5], %s2008_s22, %s2008_s22, %s2009_s23  }
  0x21   : > { %445 = sbr.rel (%p2099_p2) target bundleno = 2862 (0xb2e), region = 76 }
  0x26   : > { %1995 = dma.done.wait (%p1822_p3), [#allocation3], 1024  }
  0x27   : > { %1997 = vsyncadd (%p1822_p3), [#allocation3], 4294966272 }
  0x28   : > { %1999 = dma.done.wait (%p1822_p3), [#allocation5], 2048  }
  0x29   : > { %2001 = vsyncadd (%p1822_p3), [#allocation5], 4294965248  ;;  %v2010_v0 = vmov 0   ;;  %v2011_v1 = vmov 0.0   ;;  %v1842_v2 = vld [vmem:[%s2382_s2 + $0xac] ss:$12 sps:$4 sm:$0xff]   ;;  %v544_v27 = vlaneseq }
  0x2a   : > { %719 = vmatprep.mubr.bf16.mxu0 %v2010_v0  ;;  %1743 = vmatprep.subr.bf16.mxu1 %v2011_v1  ;;  %v1844_v3 = vld [vmem:[%s2382_s2 + $0xa8] ss:$12 sps:$4 sm:$0xff]   ;;  %v1847_v5 = vld [vmem:[%s2382_s2 + $0x90] ss:$12 sps:$4 sm:$0xff]   ;;  %p496_p2 = scmp.lt.s32.totalorder %s2095_s30, 1  ;;  %vm2012_vm0 = vmmov 0  }
  0x2b   : > { %687 = vmatprep.subr.bf16.mxu0 %v1842_v2  ;;  %v1845_v4 = vld [vmem:[%s2382_s2 + $0x94] ss:$12 sps:$4 sm:$0xff]   ;;  %v1848_v6 = vld [vmem:[%s2382_s2 + $0x7c] ss:$12 sps:$4 sm:$0xff]   ;;  %v1850_v7 = vld [vmem:[%s2382_s2 + $0x78] ss:$12 sps:$4 sm:$0xff]   ;;  %1759 = vmatprep.mubr.msk.bf16.mxu1 %vm2012_vm0, %v2011_v1 }
  0x2c   : > { %688 = vmatpush1.bf16.msra.mxu0 %v1844_v3  ;;  %v1851_v8 = vld [vmem:[%s2382_s2 + $0x64] ss:$12 sps:$4 sm:$0xff]   ;;  %v1853_v9 = vld [vmem:[%s2382_s2 + $0x60] ss:$12 sps:$4 sm:$0xff]   ;;  %s2398_s30 = smov (!%p496_p2, %s2095_s30), 1  ;;  %v2243_v28 = vshrl.u32 %v544_v27, 7 }
  0x2d   : > { %689 = vmatprep.subr.bf16.mxu0 %v1845_v4  ;;  %v1866_v10 = vld [vmem:[%s2382_s2 + $0xb0] ss:$12 sps:$4 sm:$0xff]   ;;  %v1854_v11 = vld [vmem:[%s2382_s2 + $0x4c] ss:$12 sps:$4 sm:$0xff]   ;;  %s1616_s23 = sshll.u32 %s2398_s30, 2  ;;  %vm778_vm1 = vcmask 523264   ;;  %s502_s18 = scalar_lea.vmem %s2381_s1, %s2398_s30 }
  0x2e   : > { %1744 = vmatpush3.bf16.msra.mxu1 %v1866_v10  ;;  %v1867_v12 = vld [vmem:[%s2382_s2 + $0x98] ss:$12 sps:$4 sm:$0xff]   ;;  %v1856_v13 = vld [vmem:[%s2382_s2 + $0x48] ss:$12 sps:$4 sm:$0xff]   ;;  %v1859_v15 = vld [vmem:[%s2382_s2 + $0x30] ss:$12 sps:$4 sm:$0xff]   ;;  %s499_s19 = scalar_lea.vmem %s2380_s0, %s1616_s23 }
  0x2f   : > { %1745 = vmatprep.subr.bf16.mxu1 %v2011_v1  ;;  %v1857_v14 = vld [vmem:[%s2382_s2 + $0x34] ss:$12 sps:$4 sm:$0xff]   ;;  %v1860_v17 = vld [vmem:[%s2382_s2 + $0x1c] ss:$12 sps:$4 sm:$0xff]   ;;  %v1862_v19 = vld [vmem:[%s2382_s2 + $0x18] ss:$12 sps:$4 sm:$0xff]  }
  0x30   : > { %690 = vmatpush1.bf16.msra.mxu0 %v1847_v5  ;;  %v1868_v16 = vld [vmem:[%s2382_s2 + $0x80] ss:$12 sps:$4 sm:$0xff]   ;;  %v1869_v18 = vld [vmem:[%s2382_s2 + $0x68] ss:$12 sps:$4 sm:$0xff]   ;;  %v1863_v20 = vld [vmem:[%s2382_s2 + $0x4] ss:$12 sps:$4 sm:$0xff]  }
  0x31   : > { %691 = vmatprep.subr.bf16.mxu0 %v1848_v6  ;;  %v1870_v21 = vld [vmem:[%s2382_s2 + $0x50] ss:$12 sps:$4 sm:$0xff]   ;;  %v1865_v22 = vld [vmem:[%s2382_s2] ss:$12 sps:$4 sm:$0xff]   ;;  %v1871_v23 = vld [vmem:[%s2382_s2 + $0x38] ss:$12 sps:$4 sm:$0xff]  }
  0x32   : > { %1746 = vmatpush3.bf16.msra.mxu1 %v1867_v12  ;;  %v2222_v24 = vld [vmem:[%s499_s19] sm:$0xf]  ;;  %v1873_v26 = vld [vmem:[%s2382_s2 + $0x8] ss:$12 sps:$4 sm:$0xff]   ;;  %v546_v29 = vsub.s32 0, %v2243_v28  ;;  %v550_v31 = vsub.s32 1, %v2243_v28 }
  0x33   : > { %1747 = vmatprep.subr.bf16.mxu1 %v2011_v1  ;;  %v1872_v25 = vld [vmem:[%s2382_s2 + $0x20] ss:$12 sps:$4 sm:$0xff]   ;;  %s2013_s15 = smov 64   ;;  %v554_v44 = vsub.s32 2, %v2243_v28  ;;  %vm841_vm2 = vcmask 1043456   ;;  %vm825_vm3 = vcmask 64512  }
  0x34   : > { %692 = vmatpush1.bf16.msra.mxu0 %v1850_v7  ;;  %v542_v30 = vld [vmem:[%s2383_s3] sm:$0x7] }
  0x35   : > { %693 = vmatprep.subr.bf16.mxu0 %v1851_v8  ;;  %v547_v32 = vrot.slane %v542_v30, %v546_v29  ;;  %v551_v33 = vrot.slane %v542_v30, %v550_v31  ;;  %v555_v45 = vrot.slane %v542_v30, %v554_v44  ;;  %v1642_v53 = vld [vmem:[%s502_s18] ss:$0 sm:$0xff] }
  0x36   : > { %1748 = vmatpush3.bf16.msra.mxu1 %v1868_v16 }
  0x37   : > { %1749 = vmatprep.subr.bf16.mxu1 %v2011_v1 }
  0x38   : > { %694 = vmatpush1.bf16.msra.mxu0 %v1853_v9 }
  0x39   : > { %695 = vmatprep.subr.bf16.mxu0 %v1854_v11 }
  0x3a   : > { %1750 = vmatpush3.bf16.msra.mxu1 %v1869_v18 }
  0x3b   : > { %1751 = vmatprep.subr.bf16.mxu1 %v2011_v1 }
  0x3c   : > { %696 = vmatpush1.bf16.msra.mxu0 %v1856_v13 }
  0x3d   : > { %697 = vmatprep.subr.bf16.mxu0 %v1857_v14 }
  0x3e   : > { %1752 = vmatpush3.bf16.msra.mxu1 %v1870_v21 }
  0x3f   : > { %1753 = vmatprep.subr.bf16.mxu1 %v2011_v1 }
  0x40   : > { %698 = vmatpush1.bf16.msra.mxu0 %v1859_v15 }
  0x41   : > { %699 = vmatprep.subr.bf16.mxu0 %v1860_v17 }
  0x42   : > { %1754 = vmatpush3.bf16.msra.mxu1 %v1871_v23 }
  0x43   : > { %1755 = vmatprep.subr.bf16.mxu1 %v2011_v1 }
  0x44   : > { %700 = vmatpush1.bf16.msra.mxu0 %v1862_v19 }
  0x45   : > { %701 = vmatprep.subr.bf16.mxu0 %v1863_v20 }
  0x46   : > { %1756 = vmatpush3.bf16.msra.mxu1 %v1872_v25 }
  0x47   : > { %1757 = vmatprep.subr.bf16.mxu1 %v2011_v1 }
  0x48   : > { %702 = vmatpush1.bf16.msra.mxu0 %v1865_v22 }
  0x49   : > { %1787 = vmatprep.subr.bf16.mxu0 %v2011_v1 }
  0x4a   : > { %1758 = vmatpush3.bf16.msra.mxu1 %v1873_v26 }
  0x4b   : > { %720 = vmatmul.mubr.bf16.vlgmr.msra.gmra.mxu0 %v2222_v24  ;;  %1763 = vmatprep.subr.bf16.mxu1 %v2011_v1 }
  0x4c   : > { %1803 = vmatprep.mubr.msk.bf16.mxu0 %vm2012_vm0, %v2011_v1 }
  0x4d   : > { %1760 = vmatmul.mubr.bf16.vlgmr.msra.gmra.mxu1 %v2222_v24 }
  0x4e   : > { %1765 = vmatprep.mubr.msk.bf16.mxu1 %vm2012_vm0, %v2011_v1 }
 0x10b   : > { %v721_v34 = vpop.f32.mrf.mxu0 }
 0x10c   : > { %v722_v35 = vadd.f32 %v721_v34, %v547_v32 }
 0x10d   : > { %v723_v36 = vpop.f32.mrf.mxu0  ;;  %v762_v46 = vpop.f32.mrf.mxu1 }
 0x10e   : > { %v724_v37 = vadd.f32 %v723_v36, %v551_v33  ;;  %v768_v39 = vmul.f32 0.125, %v722_v35  ;;  %v763_v47 = vadd.f32 %v762_v46, %v555_v45  ;;  %v1874_v35 = vld [vmem:[#allocation2 + $0x38] sm:$0xff]   ;;  %v1875_v36 = vld [vmem:[#allocation2 + $0x30] sm:$0xff]  }
 0x10f   : > { %v725_v38 = vpop.f32.mrf.mxu0  ;;  %v1761_v48 = vpop.f32.mrf.mxu1  ;;  %1788 = vmatpush3.bf16.msra.mxu0 %v1874_v35  ;;  %v1913_v35 = vld [vmem:[#allocation4 + $0x20] sm:$0xff]  }
 0x110   : > { %v770_v40 = vpack.c.bf16 %v724_v37, %v724_v37  ;;  %v769_v43 = vpack.c.bf16 %v768_v39, %v768_v39  ;;  %v771_v49 = vpack.c.bf16 %v763_v47, %v763_v47  ;;  %1789 = vmatprep.subr.bf16.mxu0 %v2011_v1  ;;  %v1876_v37 = vld [vmem:[#allocation2 + $0x28] sm:$0xff]   ;;  %v1877_v38 = vld [vmem:[#allocation2 + $0x20] sm:$0xff]   ;;  %v1878_v39 = vld [vmem:[#allocation2 + $0x18] sm:$0xff]  }
 0x111   : > { %v726_v41 = vpop.f32.mrf.mxu0  ;;  %v765_v50 = vpop.f32.mrf.mxu1 }
 0x112   : > { %v783_v42 = vsel %vm778_vm1, %v770_v40, 0  ;;  %890 = vrot.lane.b32.xlu1 %v770_v40, %s2013_s15  ;;  %v843_v51 = vsel %vm841_vm2, %v771_v49, 0  ;;  %v1879_v40 = vld [vmem:[#allocation2 + $0x10] sm:$0xff]   ;;  %v1881_v41 = vld [vmem:[#allocation2] sm:$0xff]  }
 0x113   : > { %1764 = vmatpush3.bf16.xpose.msra.mxu1 %v783_v42  ;;  %v1762_v52 = vpop.f32.mrf.mxu1  ;;  %1790 = vmatpush3.bf16.msra.mxu0 %v1875_v36  ;;  %v1647_v50 = vld [vmem:[%s2385_s5] ss:$0 sm:$0xff]  ;;  %v1914_v36 = vld [vmem:[#allocation4 + $0x58] sm:$0xff]  }
 0x114   : > { %1769 = vmatprep.subr.bf16.mxu1 %v2011_v1  ;;  %1791 = vmatprep.subr.bf16.mxu0 %v2011_v1 }
 0x116   : > { %887 = vrot.lane.b32.xlu1 %v769_v43, %s2013_s15 }
 0x117   : > { %1792 = vmatpush3.bf16.msra.mxu0 %v1876_v37  ;;  %v1915_v37 = vld [vmem:[#allocation4 + $0x18] sm:$0xff]  }
 0x118   : > { %1793 = vmatprep.subr.bf16.mxu0 %v2011_v1 }
 0x11a   : > { %1766 = vmatmul.mubr.msk.bf16.vlgmr.msra.gmra.mxu1 %vm778_vm1, %v769_v43 }
 0x11b   : > { %1771 = vmatprep.mubr.msk.bf16.mxu1 %vm2012_vm0, %v2011_v1  ;;  %1770 = vmatpush3.bf16.msra.mxu1 %v843_v51  ;;  %v1118_v51 = vunpack.c.l.bf16 %v2222_v24  ;;  %v1885_v24 = vld [vmem:[%s2388_s8 + $0x60] ss:$8 sps:$4 sm:$0xff]  }
 0x11c   : > { %1775 = vmatprep.subr.bf16.mxu1 %v2011_v1  ;;  %1794 = vmatpush3.bf16.msra.mxu0 %v1877_v38  ;;  %v1916_v38 = vld [vmem:[#allocation4 + $0x50] sm:$0xff]  }
 0x11d   : > { %1795 = vmatprep.subr.bf16.mxu0 %v2011_v1 }
 0x120   : > { %1796 = vmatpush3.bf16.msra.mxu0 %v1878_v39  ;;  %v1917_v39 = vld [vmem:[#allocation4 + $0x10] sm:$0xff]  }
 0x121   : > { %1797 = vmatprep.subr.bf16.mxu0 %v2011_v1 }
 0x124   : > { %1798 = vmatpush3.bf16.msra.mxu0 %v1879_v40  ;;  %v1918_v40 = vld [vmem:[#allocation4 + $0x48] sm:$0xff]  }
 0x125   : > { %1799 = vmatprep.subr.bf16.mxu0 %v2011_v1 }
 0x184   : > { %v891_v6 = vpop.permute.xlu1 %890 }
 0x185   : > { %v896_v8 = vsel %vm778_vm1, %v891_v6, 0  ;;  %v1896_v6 = vld [vmem:[%s2388_s8 + $0x34] ss:$8 sps:$4 sm:$0xff]  }
 0x188   : > { %v888_v9 = vpop.permute.xlu1 %887 }
 0x1da   : > { %v819_v54 = vpop.f32.mrf.mxu1 }
 0x1db   : > { %v820_v55 = vadd.f32 %v1642_v53, %v819_v54 }
 0x1dc   : > { %v1767_v56 = vpop.f32.mrf.mxu1 }
 0x1dd   : > { %v826_v57 = vsel %vm825_vm3, %v820_v55, -inf }
 0x1de   : > { %827 = vmax.xlane.f32.xlu0 %v826_v57  ;;  %v822_v58 = vpop.f32.mrf.mxu1  ;;  %v1882_v57 = vld [vmem:[%s2388_s8 + $0x70] ss:$8 sps:$4 sm:$0xff]  }
 0x1df   : > { %v1884_v58 = vld [vmem:[%s2388_s8 + $0x74] ss:$8 sps:$4 sm:$0xff]  }
 0x1e0   : > { %v1768_v59 = vpop.f32.mrf.mxu1 }
 0x1e1   : > { %v1887_v59 = vld [vmem:[%s2388_s8 + $0x64] ss:$8 sps:$4 sm:$0xff]  }
 0x267   : > { %v828_v60 = vpop.xlane.xlu0 %827 }
 0x268   : > { %v829_v61 = vsub.f32 %v820_v55, %v828_v60 }
 0x26a   : > { %v830_v62 = vmul.f32 1.442695, %v829_v61 }
 0x26c   : > { %1922 = vpow2.f32 %v830_v62 }
 0x279   : > { %v1923_v63 = vpop.eup %1922 }
 0x27a   : > { %v832_v2 = vsel %vm825_vm3, %v1923_v63, 0.0 }
 0x27b   : > { %833 = vadd.xlane.f32.xlu0 %v832_v2  ;;  %v1890_v2 = vld [vmem:[%s2388_s8 + $0x54] ss:$8 sps:$4 sm:$0xff]  }
 0x304   : > { %v834_v3 = vpop.xlane.xlu0 %833 }
 0x305   : > { %1924 = vrcp.f32 %v834_v3  ;;  %v1888_v3 = vld [vmem:[%s2388_s8 + $0x50] ss:$8 sps:$4 sm:$0xff]  }
 0x312   : > { %v1925_v4 = vpop.eup %1924 }
 0x313   : > { %v836_v5 = vmul.f32 %v1925_v4, %v1923_v63  ;;  %v1891_v4 = vld [vmem:[%s2388_s8 + $0x40] ss:$8 sps:$4 sm:$0xff]  }
 0x315   : > { %v837_v7 = vpack.c.bf16 %v836_v5, %v836_v5  ;;  %v1893_v5 = vld [vmem:[%s2388_s8 + $0x44] ss:$8 sps:$4 sm:$0xff]  }
 0x317   : > { %1772 = vmatmul.mubr.msk.bf16.vlgmr.msra.gmra.mxu1 %vm825_vm3, %v837_v7  ;;  %v1894_v7 = vld [vmem:[%s2388_s8 + $0x30] ss:$8 sps:$4 sm:$0xff]  }
 0x318   : > { %1776 = vmatpush3.bf16.xpose.msra.mxu1 %v896_v8  ;;  %1777 = vmatprep.mubr.msk.bf16.mxu1 %vm2012_vm0, %v2011_v1  ;;  %v1899_v8 = vld [vmem:[%s2388_s8 + $0x24] ss:$8 sps:$4 sm:$0xff]  }
 0x319   : > { %1781 = vmatprep.subr.bf16.mxu1 %v2011_v1 }
 0x31f   : > { %1778 = vmatmul.mubr.msk.bf16.vlgmr.msra.gmra.mxu1 %vm778_vm1, %v888_v9  ;;  %v1897_v9 = vld [vmem:[%s2388_s8 + $0x20] ss:$8 sps:$4 sm:$0xff]  }
 0x320   : > { %1783 = vmatprep.mubr.msk.bf16.mxu1 %vm2012_vm0, %v2011_v1 }
 0x3d7   : > { %v879_v10 = vpop.f32.mrf.mxu1 }
 0x3d8   : > { %v885_v47 = vpack.c.bf16 %v879_v10, %v879_v10  ;;  %v1902_v10 = vld [vmem:[%s2388_s8 + $0x14] ss:$8 sps:$4 sm:$0xff]  }
 0x3d9   : > { %v1773_v11 = vpop.f32.mrf.mxu1 }
 0x3da   : > { %v1900_v11 = vld [vmem:[%s2388_s8 + $0x10] ss:$8 sps:$4 sm:$0xff]  }
 0x3db   : > { %v882_v12 = vpop.f32.mrf.mxu1 }
 0x3dc   : > { %v1905_v12 = vld [vmem:[%s2388_s8 + $0x4] ss:$8 sps:$4 sm:$0xff]  }
 0x3dd   : > { %v1774_v13 = vpop.f32.mrf.mxu1 }
 0x3de   : > { %v1903_v13 = vld [vmem:[%s2388_s8] ss:$8 sps:$4 sm:$0xff]  }
 0x3df   : > { %v932_v14 = vpop.f32.mrf.mxu1 }
 0x3e0   : > { %v933_v15 = vadd.f32 %v1642_v53, %v932_v14 }
 0x3e1   : > { %v1779_v16 = vpop.f32.mrf.mxu1 }
 0x3e2   : > { %v938_v17 = vsel %vm825_vm3, %v933_v15, -inf }
 0x3e3   : > { %939 = vmax.xlane.f32.xlu0 %v938_v17  ;;  %v935_v18 = vpop.f32.mrf.mxu1 }
 0x3e4   : > { %v1656_v18 = vld [vmem:[%s2386_s6] ss:$0 sm:$0xff] }
 0x3e5   : > { %v1780_v19 = vpop.f32.mrf.mxu1 }
 0x3f9   : > { %951 = vrot.lane.b32.xlu0 %v771_v49, %s2013_s15 }
 0x46c   : > { %v940_v20 = vpop.xlane.xlu0 %939 }
 0x46d   : > { %v941_v21 = vsub.f32 %v933_v15, %v940_v20  ;;  %v1657_v20 = vld [vmem:[%s2387_s7] ss:$0 sm:$0xff] }
 0x46f   : > { %v942_v22 = vmul.f32 1.442695, %v941_v21 }
 0x470   : > { %v952_v23 = vpop.permute.xlu0 %951 }
 0x471   : > { %1926 = vpow2.f32 %v942_v22  ;;  %v957_v25 = vsel %vm841_vm2, %v952_v23, 0 }
 0x472   : > { %1782 = vmatpush3.bf16.msra.mxu1 %v957_v25  ;;  %v1906_v25 = vld [vmem:[#allocation4 + $0x78] sm:$0xff]  }
 0x473   : > { %1257 = vmatprep.subr.bf16.mxu1 %v1884_v58 }
 0x47e   : > { %v1927_v26 = vpop.eup %1926 }
 0x47f   : > { %v944_v27 = vsel %vm825_vm3, %v1927_v26, 0.0 }
 0x480   : > { %945 = vadd.xlane.f32.xlu1 %v944_v27  ;;  %v1908_v27 = vld [vmem:[#allocation4 + $0x70] sm:$0xff]  }
 0x509   : > { %v946_v30 = vpop.xlane.xlu1 %945 }
 0x50a   : > { %1928 = vrcp.f32 %v946_v30  ;;  %v1909_v30 = vld [vmem:[#allocation4 + $0x30] sm:$0xff]  }
 0x517   : > { %v1929_v32 = vpop.eup %1928 }
 0x518   : > { %v948_v33 = vmul.f32 %v1929_v32, %v1927_v26  ;;  %v1907_v26 = vld [vmem:[#allocation4 + $0x38] sm:$0xff]   ;;  %v1910_v32 = vld [vmem:[#allocation4 + $0x68] sm:$0xff]  }
 0x51a   : > { %v949_v34 = vpack.c.bf16 %v948_v33, %v948_v33  ;;  %v1911_v33 = vld [vmem:[#allocation4 + $0x28] sm:$0xff]  }
 0x51c   : > { %1784 = vmatmul.mubr.msk.bf16.vlgmr.msra.gmra.mxu1 %vm825_vm3, %v949_v34  ;;  %v1912_v34 = vld [vmem:[#allocation4 + $0x60] sm:$0xff]  }
 0x51d   : > { %1289 = vmatprep.mubr.bf16.mxu1 %v2010_v0  ;;  %v1880_v0 = vld [vmem:[#allocation2 + $0x8] sm:$0xff]   ;;  %1258 = vmatpush1.bf16.msra.mxu1 %v1882_v57 }
 0x51e   : > { %1800 = vmatpush3.bf16.msra.mxu0 %v1880_v0  ;;  %1259 = vmatprep.subr.bf16.mxu1 %v1887_v59  ;;  %v1919_v0 = vld [vmem:[#allocation4 + $0x8] sm:$0xff]  }
 0x51f   : > { %1801 = vmatprep.subr.bf16.mxu0 %v2011_v1 }
 0x521   : > { %1260 = vmatpush1.bf16.msra.mxu1 %v1885_v24 }
 0x522   : > { %1802 = vmatpush3.bf16.msra.mxu0 %v1881_v41  ;;  %1261 = vmatprep.subr.bf16.mxu1 %v1890_v2  ;;  %v1920_v41 = vld [vmem:[#allocation4 + $0x40] sm:$0xff]  }
 0x523   : > { %1721 = vmatprep.subr.bf16.mxu0 %v1906_v25 }
 0x525   : > { %1262 = vmatpush1.bf16.msra.mxu1 %v1888_v3 }
 0x526   : > { %1263 = vmatprep.subr.bf16.mxu1 %v1893_v5 }
 0x529   : > { %1264 = vmatpush1.bf16.msra.mxu1 %v1891_v4 }
 0x52a   : > { %1265 = vmatprep.subr.bf16.mxu1 %v1896_v6  ;;  %v1674_v6 = vld [vmem:[%s2391_s11] ss:$0 sm:$0xff] }
 0x52d   : > { %1266 = vmatpush1.bf16.msra.mxu1 %v1894_v7 }
 0x52e   : > { %1267 = vmatprep.subr.bf16.mxu1 %v1899_v8 }
 0x531   : > { %1268 = vmatpush1.bf16.msra.mxu1 %v1897_v9 }
 0x532   : > { %1269 = vmatprep.subr.bf16.mxu1 %v1902_v10 }
 0x535   : > { %1270 = vmatpush1.bf16.msra.mxu1 %v1900_v11 }
 0x536   : > { %1271 = vmatprep.subr.bf16.mxu1 %v1905_v12 }
 0x539   : > { %1272 = vmatpush1.bf16.msra.mxu1 %v1903_v13 }
 0x5dc   : > { %v993_v42 = vpop.f32.mrf.mxu1 }
 0x5dd   : > { %v999_v43 = vpack.c.bf16 %v993_v42, %v993_v42  ;;  %v1921_v42 = vld [vmem:[#allocation4] sm:$0xff]  }
 0x5de   : > { %v1785_v44 = vpop.f32.mrf.mxu1 }
 0x5df   : > { %1001 = vrot.lane.b32.xlu0 %v999_v43, %s2013_s15  ;;  %v1165_v43 = vld [vmem:[%s2389_s9] sm:$0x3]  ;;  %s506_s15 = scalar_lea.vmem %s2394_s14, %s1616_s23 }
 0x5e0   : > { %v996_v45 = vpop.f32.mrf.mxu1  ;;  %v1170_v44 = vrot.slane %v1165_v43, %v546_v29 }
 0x5e1   : > { %v1174_v45 = vrot.slane %v1165_v43, %v550_v31 }
 0x5e2   : > { %v1786_v46 = vpop.f32.mrf.mxu1 }
 0x651   : > { %v1002_v48 = vpop.permute.xlu0 %1001 }
 0x652   : > { %v1005_v49 = vsel %vm778_vm1, %v885_v47, %v1002_v48 }
 0x653   : > { %1804 = vmatmul.mubr.bf16.vlgmr.msra.gmra.mxu0 %v1005_v49 }
 0x654   : > { %1722 = vmatpush3.bf16.msra.mxu0 %v1907_v26 }
 0x655   : > { %1723 = vmatprep.subr.bf16.mxu0 %v1908_v27 }
 0x658   : > { %1724 = vmatpush3.bf16.msra.mxu0 %v1909_v30 }
 0x659   : > { %1725 = vmatprep.subr.bf16.mxu0 %v1910_v32 }
 0x65c   : > { %1726 = vmatpush3.bf16.msra.mxu0 %v1911_v33 }
 0x65d   : > { %1727 = vmatprep.subr.bf16.mxu0 %v1912_v34 }
 0x660   : > { %1728 = vmatpush3.bf16.msra.mxu0 %v1913_v35 }
 0x661   : > { %1729 = vmatprep.subr.bf16.mxu0 %v1914_v36 }
 0x664   : > { %1730 = vmatpush3.bf16.msra.mxu0 %v1915_v37 }
 0x665   : > { %1731 = vmatprep.subr.bf16.mxu0 %v1916_v38 }
 0x668   : > { %1732 = vmatpush3.bf16.msra.mxu0 %v1917_v39 }
 0x669   : > { %1733 = vmatprep.subr.bf16.mxu0 %v1918_v40 }
 0x66c   : > { %1734 = vmatpush3.bf16.msra.mxu0 %v1919_v0 }
 0x66d   : > { %1735 = vmatprep.subr.bf16.mxu0 %v1920_v41 }
 0x670   : > { %1736 = vmatpush3.bf16.msra.mxu0 %v1921_v42 }
 0x713   : > { %v1112_v1 = vpop.f32.mrf.mxu0 }
 0x714   : > { %v1113_v52 = vadd.f32 %v1647_v50, %v1112_v1 }
 0x715   : > { %v1805_v53 = vpop.f32.mrf.mxu0 }
 0x716   : > { %v1119_v54 = vadd.f32 %v1118_v51, %v1113_v52 }
 0x717   : > { %v1115_v55 = vpop.f32.mrf.mxu0 }
 0x718   : > { %1122 = vadd.xlane.f32.xlu0 %v1119_v54 }
 0x719   : > { %v1806_v56 = vpop.f32.mrf.mxu0 }
 0x7a1   : > { %v1123_v60 = vpop.xlane.xlu0 %1122 }
 0x7a2   : > { %v1125_v61 = vmul.f32 0.0078125, %v1123_v60 }
 0x7a4   : > { %v1126_v62 = vsub.f32 %v1119_v54, %v1125_v61 }
 0x7a6   : > { %v1127_v63 = vmul.f32 %v1126_v62, %v1126_v62 }
 0x7a8   : > { %1128 = vadd.xlane.f32.xlu1 %v1127_v63 }
 0x831   : > { %v1129_v14 = vpop.xlane.xlu1 %1128 }
 0x832   : > { %v1130_v15 = vmul.f32 0.0078125, %v1129_v14 }
 0x834   : > { %v1131_v16 = vadd.f32 1e-12, %v1130_v15 }
 0x836   : > { %1930 = vrsqrt.f32 %v1131_v16 }
 0x843   : > { %v1931_v17 = vpop.eup %1930 }
 0x844   : > { %v1133_v19 = vmul.f32 %v1931_v17, %v1126_v62 }
 0x846   : > { %v1140_v21 = vmul.f32 %v1656_v18, %v1133_v19 }
 0x848   : > { %v2351_v22 = vadd.f32 %v1657_v20, %v1140_v21  ;;  %v1691_v21 = vld [vmem:[%s2392_s12] ss:$0 sm:$0xff] }
 0x84a   : > { %v1148_v23 = vpack.c.bf16 %v2351_v22, %v2351_v22 }
 0x84c   : > { %1290 = vmatmul.mubr.bf16.vlgmr.msra.gmra.mxu1 %v1148_v23 }
 0x90c   : > { %v1291_v46 = vpop.f32.mrf.mxu1 }
 0x90d   : > { %v1292_v47 = vadd.f32 %v1291_v46, %v1170_v44 }
 0x90e   : > { %v1293_v48 = vpop.f32.mrf.mxu1 }
 0x90f   : > { %v1300_v49 = vmul.f32 0.044715, %v1292_v47  ;;  %v1294_v50 = vadd.f32 %v1293_v48, %v1174_v45  ;;  %v1298_v60 = vmul.f32 0.5, %v1292_v47 }
 0x910   : > { %v1295_v51 = vpop.f32.mrf.mxu1 }
 0x911   : > { %v1302_v1 = vmul.f32 %v1300_v49, %v1292_v47  ;;  %v1301_v52 = vmul.f32 0.044715, %v1294_v50  ;;  %v1299_v61 = vmul.f32 0.5, %v1294_v50 }
 0x912   : > { %v1296_v53 = vpop.f32.mrf.mxu1 }
 0x913   : > { %v1304_v54 = vmul.f32 %v1302_v1, %v1292_v47  ;;  %v1303_v55 = vmul.f32 %v1301_v52, %v1294_v50 }
 0x915   : > { %v1306_v56 = vadd.f32 %v1304_v54, %v1292_v47  ;;  %v1305_v57 = vmul.f32 %v1303_v55, %v1294_v50 }
 0x917   : > { %v1308_v58 = vmul.f32 0.7978846, %v1306_v56  ;;  %v1307_v59 = vadd.f32 %v1305_v57, %v1294_v50 }
 0x919   : > { %v1309_v24 = vmul.f32 0.7978846, %v1307_v59  ;;  %1932 = vtanh.f32 %v1308_v58 }
 0x91b   : > { %1934 = vtanh.f32 %v1309_v24 }
 0x926   : > { %v1933_v28 = vpop.eup %1932 }
 0x927   : > { %v1312_v29 = vadd.f32 1.0, %v1933_v28 }
 0x928   : > { %v1935_v31 = vpop.eup %1934 }
 0x929   : > { %v1313_v62 = vadd.f32 1.0, %v1935_v31  ;;  %v1314_v63 = vmul.f32 %v1312_v29, %v1298_v60 }
 0x92b   : > { %v1315_v2 = vmul.f32 %v1313_v62, %v1299_v61  ;;  %v1316_v4 = vpack.c.bf16 %v1314_v63, %v1314_v63 }
 0x92d   : > { %v1317_v3 = vpack.c.bf16 %v1315_v2, %v1315_v2 }
 0x92f   : > { %1485 = vmatprep.mubr.bf16.mxu0 %v1317_v3 }
 0x930   : > { %1486 = vmatmul.mubr.bf16.vlgmr.msra.gmra.mxu0 %v1316_v4 }
 0x9f0   : > { %v1737_v5 = vpop.f32.mrf.mxu0 }
 0x9f2   : > { %v1738_v7 = vpop.f32.mrf.mxu0 }
 0x9f3   : > { %v1739_v8 = vadd.f32 %v1738_v7, %v1737_v5 }
 0x9f4   : > { %v1740_v9 = vpop.f32.mrf.mxu0 }
 0x9f5   : > { %v1488_v10 = vadd.f32 %v1739_v8, %v1674_v6 }
 0x9f6   : > { %v1741_v11 = vpop.f32.mrf.mxu0 }
 0x9f7   : > { %v1493_v12 = vadd.f32 %v1488_v10, %v2351_v22  ;;  %v1692_v22 = vld [vmem:[%s2393_s13] ss:$0 sm:$0xff] }
 0x9f9   : > { %1496 = vadd.xlane.f32.xlu1 %v1493_v12 }
 0xa82   : > { %v1497_v13 = vpop.xlane.xlu1 %1496 }
 0xa83   : > { %v1498_v14 = vmul.f32 0.0078125, %v1497_v13 }
 0xa85   : > { %v1499_v15 = vsub.f32 %v1493_v12, %v1498_v14 }
 0xa87   : > { %v1500_v16 = vmul.f32 %v1499_v15, %v1499_v15 }
 0xa89   : > { %1501 = vadd.xlane.f32.xlu1 %v1500_v16 }
 0xb12   : > { %v1502_v17 = vpop.xlane.xlu1 %1501 }
 0xb13   : > { %v1503_v18 = vmul.f32 0.0078125, %v1502_v17 }
 0xb15   : > { %v1504_v19 = vadd.f32 1e-12, %v1503_v18 }
 0xb17   : > { %1936 = vrsqrt.f32 %v1504_v19 }
 0xb24   : > { %v1937_v20 = vpop.eup %1936 }
 0xb25   : > { %v1506_v23 = vmul.f32 %v1937_v20, %v1499_v15 }
 0xb27   : > { %v1513_v25 = vmul.f32 %v1691_v21, %v1506_v23 }
 0xb29   : > { %v1520_v26 = vadd.f32 %v1692_v22, %v1513_v25 }
 0xb2b   : > { %v1521_v27 = vpack.c.bf16 %v1520_v26, %v1520_v26 }
 0xb2d   : > { %1522 = vst [vmem:[%s506_s15] sm:$0xf] %v1521_v27 }
 0xb2e PF: > { %s26_s29 = sadd.s32 1, %s2004_s29  }
 0xb2f   : > { %p23_p3 = scmp.ge.s32.totalorder %s26_s29, 4  }
 0xb31   :  { %25 = sbr.rel (!%p23_p3) target bundleno = 2 (0x2), region = 118 }
 0xb36   :  { %1542 = vsyncpa [#allocation3], 1 }
 0xb37   :  { %1544 = vsyncpa [#allocation3 + $0x1], 1 }
 0xb38   :  { %1545 = vsyncpa [#allocation5], 1 }

</bundles_post_ra>
